<compile_context>
chip_gen: v6e
topology: v6e:2x2x1
jax: 0.10.0
libtpu: 0.0.40
codegen_flags: <defaults>
</compile_context>

<pallas_src>
import jax
import jax.numpy as jnp
from jax.experimental import pallas as pl
from jax.experimental.pallas import tpu as pltpu

HIDDEN = 1024


def encoder_kernel(x_ref, w1_ref, b1_ref, w2_ref, b2_ref, w3_ref, b3_ref,
                   o_ref):
    # fc[0] + fc[1]: Linear(input_dim, 1024) + LeakyReLU(0.2)
    # bf16 operands on the MXU, f32 accumulation; elementwise math in f32.
    x_bf = x_ref[...].astype(jnp.bfloat16)
    h1 = jnp.dot(x_bf, w1_ref[...], preferred_element_type=jnp.float32)
    h1 = h1 + b1_ref[...]
    h1 = jnp.where(h1 > 0, h1, 0.2 * h1)

    # fc[2]: Linear(1024, 1024)
    h2 = jnp.dot(h1.astype(jnp.bfloat16), w2_ref[...],
                 preferred_element_type=jnp.float32) + b2_ref[...]

    # fc[3]: BatchNorm1d(1024, affine=False) — training mode, biased variance
    # (divide by N), eps=1e-5, no gamma/beta.  Pure f32.
    mean = jnp.mean(h2, axis=0, keepdims=True)
    var = jnp.mean((h2 - mean) * (h2 - mean), axis=0, keepdims=True)
    h2 = (h2 - mean) * jax.lax.rsqrt(var + 1e-5)

    # fc[4]: LeakyReLU(0.2)
    h2 = jnp.where(h2 > 0, h2, 0.2 * h2)

    # fc[5]: Linear(1024, output_dim)
    out = jnp.dot(h2.astype(jnp.bfloat16), w3_ref[...],
                  preferred_element_type=jnp.float32) + b3_ref[...]
    o_ref[...] = out.astype(o_ref.dtype)


def make_encoder_params(key, input_dim, output_dim, hidden=HIDDEN):
    """PyTorch-style init U(-1/sqrt(fan_in), 1/sqrt(fan_in)).
    Weights are stored transposed (in, out) and cast to bf16 (halves the
    HBM->VMEM weight traffic, which is the critical path); biases stay f32."""
    ks = jax.random.split(key, 6)

    def lin(kw, kb, fan_in, fan_out):
        bound = 1.0 / jnp.sqrt(fan_in)
        w = jax.random.uniform(kw, (fan_in, fan_out), jnp.float32, -bound, bound)
        b = jax.random.uniform(kb, (1, fan_out), jnp.float32, -bound, bound)
        return w.astype(jnp.bfloat16), b

    w1, b1 = lin(ks[0], ks[1], input_dim, hidden)
    w2, b2 = lin(ks[2], ks[3], hidden, hidden)
    w3, b3 = lin(ks[4], ks[5], hidden, output_dim)
    return w1, b1, w2, b2, w3, b3


def encoder_forward(x_nchw, params):
    w1, b1, w2, b2, w3, b3 = params
    B = x_nchw.shape[0]
    # BatchNorm1d in training mode needs B >= 2 (PyTorch errors at B=1;
    # var == 0 would blow up the rsqrt here).
    assert B >= 2, "Encoder uses BatchNorm1d batch stats; requires batch >= 2"

    x = x_nchw.reshape(B, -1).astype(jnp.float32)  # == torch .view(B, -1)
    output_dim = w3.shape[1]

    # Real VMEM footprint (single-buffered, no grid => no double buffering):
    # inputs + output, plus ~50% + 4 MiB headroom for intermediates/compiler
    # scratch.  Stays well under v5e's 16 MiB scoped budget.
    footprint = (
        x.size * 4
        + (w1.size + w2.size + w3.size) * 2            # bf16 weights
        + (b1.size + b2.size + b3.size) * 4             # f32 biases
        + B * output_dim * 4                            # output
    )
    vmem_limit = int(footprint * 1.5) + 4 * 1024 * 1024

    # Grid collapsed: single invocation, every operand fully resident in VMEM.
    vmem_spec = pl.BlockSpec(memory_space=pltpu.MemorySpace.VMEM)
    return pl.pallas_call(
        encoder_kernel,
        out_shape=jax.ShapeDtypeStruct((B, output_dim), jnp.float32),
        in_specs=[vmem_spec] * 7,
        out_specs=vmem_spec,
        compiler_params=pltpu.CompilerParams(vmem_limit_bytes=vmem_limit),
    )(x, w1, b1, w2, b2, w3, b3)


def encoder_reference(x_nchw, params):
    """Pure-JAX reference mirroring the kernel's numerics (bf16 dot operands,
    f32 accumulation and f32 elementwise math).  Note: this validates the
    kernel against the same bf16-weight recipe, not the f32 PyTorch module;
    the bf16-vs-f32 gap is a deliberate DMA/accuracy trade-off."""
    w1, b1, w2, b2, w3, b3 = params
    x = x_nchw.reshape(x_nchw.shape[0], -1).astype(jnp.float32)
    h = jnp.dot(x.astype(jnp.bfloat16), w1,
                preferred_element_type=jnp.float32) + b1
    h = jnp.where(h > 0, h, 0.2 * h)
    h = jnp.dot(h.astype(jnp.bfloat16), w2,
                preferred_element_type=jnp.float32) + b2
    mean = jnp.mean(h, axis=0, keepdims=True)
    var = jnp.mean((h - mean) ** 2, axis=0, keepdims=True)
    h = (h - mean) * jax.lax.rsqrt(var + 1e-5)
    h = jnp.where(h > 0, h, 0.2 * h)
    return jnp.dot(h.astype(jnp.bfloat16), w3,
                   preferred_element_type=jnp.float32) + b3


if __name__ == "__main__":
    key = jax.random.PRNGKey(0)
    k_x, k_p = jax.random.split(key)

    # Image input (2, 4, 16, 16) -> input_dim = 4*16*16 = 1024, latent dim 32.
    B, C, H, W = 2, 4, 16, 16
    input_dim = C * H * W
    output_dim = 32

    x = jax.random.normal(k_x, (B, C, H, W), jnp.float32)
    params = make_encoder_params(k_p, input_dim, output_dim)

    out = encoder_forward(x, params)
    out = jax.block_until_ready(out)

    ref = encoder_reference(x, params)
    assert out.shape == (B, output_dim), out.shape
    assert jnp.allclose(out, ref, atol=1e-2, rtol=1e-2), \
        float(jnp.max(jnp.abs(out - ref)))

    print("KERNEL_OK")
</pallas_src>

<mosaic_0001>
module attributes {stable_mosaic.version = 11 : i64} {
  func.func @encoder_kernel(%arg0: memref<2x1024xf32, #tpu.memory_space<vmem>>, %arg1: memref<1024x1024xbf16, #tpu.memory_space<vmem>>, %arg2: memref<1x1024xf32, #tpu.memory_space<vmem>>, %arg3: memref<1024x1024xbf16, #tpu.memory_space<vmem>>, %arg4: memref<1x1024xf32, #tpu.memory_space<vmem>>, %arg5: memref<1024x32xbf16, #tpu.memory_space<vmem>>, %arg6: memref<1x32xf32, #tpu.memory_space<vmem>>, %arg7: memref<2x32xf32, #tpu.memory_space<vmem>>) attributes {dimension_semantics = [], scalar_prefetch = 0 : i64, scratch_operands = 0 : i64, tpu.core_type = #tpu.core_type<tc>} {
    %c0 = arith.constant 0 : index
    %c0_0 = arith.constant 0 : index
    %0 = vector.load %arg0[%c0, %c0_0] : memref<2x1024xf32, #tpu.memory_space<vmem>>, vector<2x1024xf32>
    %1 = arith.truncf %0 : vector<2x1024xf32> to vector<2x1024xbf16>
    %c0_1 = arith.constant 0 : index
    %c0_2 = arith.constant 0 : index
    %2 = vector.load %arg1[%c0_1, %c0_2] : memref<1024x1024xbf16, #tpu.memory_space<vmem>>, vector<1024x1024xbf16>
    %cst = arith.constant dense<0.000000e+00> : vector<2x1024xf32>
    %3 = tpu.matmul %1, %2, %cst {dimension_numbers = #tpu.dot_dimension_numbers<[1], [0], [0], [1], [0, 0, 1, 1], [], []>} : vector<2x1024xbf16>, vector<1024x1024xbf16>, vector<2x1024xf32> -> vector<2x1024xf32>
    %c0_3 = arith.constant 0 : index
    %c0_4 = arith.constant 0 : index
    %4 = vector.load %arg2[%c0_3, %c0_4] : memref<1x1024xf32, #tpu.memory_space<vmem>>, vector<1x1024xf32>
    %5 = vector.broadcast %4 : vector<1x1024xf32> to vector<2x1024xf32>
    %6 = arith.addf %3, %5 : vector<2x1024xf32>
    %cst_5 = arith.constant 0.000000e+00 : f32
    %7 = vector.broadcast %cst_5 : f32 to vector<2x1024xf32>
    %8 = arith.cmpf ogt, %6, %7 : vector<2x1024xf32>
    %cst_6 = arith.constant 2.000000e-01 : f32
    %9 = vector.broadcast %cst_6 : f32 to vector<2x1024xf32>
    %10 = arith.mulf %9, %6 : vector<2x1024xf32>
    %11 = arith.select %8, %6, %10 : vector<2x1024xi1>, vector<2x1024xf32>
    %12 = arith.truncf %11 : vector<2x1024xf32> to vector<2x1024xbf16>
    %c0_7 = arith.constant 0 : index
    %c0_8 = arith.constant 0 : index
    %13 = vector.load %arg3[%c0_7, %c0_8] : memref<1024x1024xbf16, #tpu.memory_space<vmem>>, vector<1024x1024xbf16>
    %cst_9 = arith.constant dense<0.000000e+00> : vector<2x1024xf32>
    %14 = tpu.matmul %12, %13, %cst_9 {dimension_numbers = #tpu.dot_dimension_numbers<[1], [0], [0], [1], [0, 0, 1, 1], [], []>} : vector<2x1024xbf16>, vector<1024x1024xbf16>, vector<2x1024xf32> -> vector<2x1024xf32>
    %c0_10 = arith.constant 0 : index
    %c0_11 = arith.constant 0 : index
    %15 = vector.load %arg4[%c0_10, %c0_11] : memref<1x1024xf32, #tpu.memory_space<vmem>>, vector<1x1024xf32>
    %16 = vector.broadcast %15 : vector<1x1024xf32> to vector<2x1024xf32>
    %17 = arith.addf %14, %16 : vector<2x1024xf32>
    %cst_12 = arith.constant dense<0.000000e+00> : vector<1024xf32>
    %18 = vector.multi_reduction <add>, %17, %cst_12 [0] : vector<2x1024xf32> to vector<1024xf32>
    %19 = vector.shape_cast %18 : vector<1024xf32> to vector<1x1024xf32>
    %cst_13 = arith.constant 2.000000e+00 : f32
    %20 = vector.broadcast %cst_13 : f32 to vector<1x1024xf32>
    %21 = arith.divf %19, %20 : vector<1x1024xf32>
    %22 = vector.broadcast %21 : vector<1x1024xf32> to vector<2x1024xf32>
    %23 = arith.subf %17, %22 : vector<2x1024xf32>
    %24 = vector.broadcast %21 : vector<1x1024xf32> to vector<2x1024xf32>
    %25 = arith.subf %17, %24 : vector<2x1024xf32>
    %26 = arith.mulf %23, %25 : vector<2x1024xf32>
    %cst_14 = arith.constant dense<0.000000e+00> : vector<1024xf32>
    %27 = vector.multi_reduction <add>, %26, %cst_14 [0] : vector<2x1024xf32> to vector<1024xf32>
    %28 = vector.shape_cast %27 : vector<1024xf32> to vector<1x1024xf32>
    %cst_15 = arith.constant 2.000000e+00 : f32
    %29 = vector.broadcast %cst_15 : f32 to vector<1x1024xf32>
    %30 = arith.divf %28, %29 : vector<1x1024xf32>
    %31 = vector.broadcast %21 : vector<1x1024xf32> to vector<2x1024xf32>
    %32 = arith.subf %17, %31 : vector<2x1024xf32>
    %cst_16 = arith.constant 9.99999974E-6 : f32
    %33 = vector.broadcast %cst_16 : f32 to vector<1x1024xf32>
    %34 = arith.addf %30, %33 : vector<1x1024xf32>
    %35 = math.rsqrt %34 : vector<1x1024xf32>
    %36 = vector.broadcast %35 : vector<1x1024xf32> to vector<2x1024xf32>
    %37 = arith.mulf %32, %36 : vector<2x1024xf32>
    %cst_17 = arith.constant 0.000000e+00 : f32
    %38 = vector.broadcast %cst_17 : f32 to vector<2x1024xf32>
    %39 = arith.cmpf ogt, %37, %38 : vector<2x1024xf32>
    %cst_18 = arith.constant 2.000000e-01 : f32
    %40 = vector.broadcast %cst_18 : f32 to vector<2x1024xf32>
    %41 = arith.mulf %40, %37 : vector<2x1024xf32>
    %42 = arith.select %39, %37, %41 : vector<2x1024xi1>, vector<2x1024xf32>
    %43 = arith.truncf %42 : vector<2x1024xf32> to vector<2x1024xbf16>
    %c0_19 = arith.constant 0 : index
    %c0_20 = arith.constant 0 : index
    %44 = vector.load %arg5[%c0_19, %c0_20] : memref<1024x32xbf16, #tpu.memory_space<vmem>>, vector<1024x32xbf16>
    %cst_21 = arith.constant dense<0.000000e+00> : vector<2x32xf32>
    %45 = tpu.matmul %43, %44, %cst_21 {dimension_numbers = #tpu.dot_dimension_numbers<[1], [0], [0], [1], [0, 0, 1, 1], [], []>} : vector<2x1024xbf16>, vector<1024x32xbf16>, vector<2x32xf32> -> vector<2x32xf32>
    %c0_22 = arith.constant 0 : index
    %c0_23 = arith.constant 0 : index
    %46 = vector.load %arg6[%c0_22, %c0_23] : memref<1x32xf32, #tpu.memory_space<vmem>>, vector<1x32xf32>
    %47 = vector.broadcast %46 : vector<1x32xf32> to vector<2x32xf32>
    %48 = arith.addf %45, %47 : vector<2x32xf32>
    %c0_24 = arith.constant 0 : index
    %c0_25 = arith.constant 0 : index
    %49 = vector.load %arg7[%c0_24, %c0_25] : memref<2x32xf32, #tpu.memory_space<vmem>>, vector<2x32xf32>
    tpu.vector_store %arg7[%c0_24, %c0_25], %48 {strides = array<i32>} : memref<2x32xf32, #tpu.memory_space<vmem>>, vector<2x32xf32>,
    return
  }
}

</mosaic_0001>

<bundles_post_ra>
// kernel: tpu_custom_call.1
= control target key start
LH: loop header
LB: loop body
LE: loop exit
PB: predicated region body
PF: predicated region fallthrough
CT: control target
= control target key end

     0   :  { %12 = vsyncpa [#allocation3], 0  ;;  %s10661_s0 = inlined_call_operand.hbm [shape: f32[2,1024], index: 0, kind: input, shape index: {}]   ;;  %s10662_s1 = inlined_call_operand.hbm [shape: bf16[1024,1024], index: 1, kind: input, shape index: {}]   ;;  %s10663_s2 = inlined_call_operand.hbm [shape: f32[1,1024], index: 2, kind: input, shape index: {}]   ;;  %s10664_s3 = inlined_call_operand.hbm [shape: bf16[1024,1024], index: 3, kind: input, shape index: {}]   ;;  %s10665_s4 = inlined_call_operand.hbm [shape: f32[1,1024], index: 4, kind: input, shape index: {}]   ;;  %s10666_s5 = inlined_call_operand.vmem [shape: bf16[1024,32], index: 5, kind: input, shape index: {}]   ;;  %s10667_s6 = inlined_call_operand.hbm [shape: f32[1,32], index: 6, kind: input, shape index: {}]   ;;  %s10668_s7 = inlined_call_operand.hbm [shape: f32[2,32], index: 7, kind: output, shape index: {}]  }
   0x1   :  { %13 = vsyncpa [#allocation6], 0 }
   0x2   :  { %14 = vsyncpa [#allocation9], 0 }
   0x3   :  { %15 = vsyncpa [#allocation12], 0 }
   0x4   :  { %16 = vsyncpa [#allocation4], 0  ;;  %s10052_s24 = smov [#allocation5]  }
   0x5   :  { %s32_s25 = sshll.u32 %s10052_s24, 4  ;;  %s33_s25 = int_to_ptr.vmem [resolvable:$true] %s32_s25 }
   0x6   :  { %s9910_s26 = scalar_lea.vmem %s33_s25, 65536  ;;  %p9915_p1 = scmp.lt.s32.totalorder %s33_s25, %s33_s25 }
   0x7   :  { %p9911_p0 = scmp.ne.s32.totalorder %s33_s25, %s9910_s26  ;;  %p9916_p2 = scmp.lt.s32.totalorder %s9910_s26, %s9910_s26 }
   0x9   :  { %p9917_p3 = por %p9916_p2, %p9915_p1 }
   0xb   :  { %p9918_p4 = pnand %p9917_p3, %p9911_p0 }
   0xd   :  { %9921 = shalt.err (!%p9918_p4)
}
   0xe   :  { %s10053_s27 = smov 512   ;;  %s10054_s28 = smov 32  }
   0xf   :  { %38 = dma.hbm_to_vmem [thread:$0]  %s10662_s1, 65536, %s33_s25, [#allocation6], %s10053_s27, %s10053_s27, %s10054_s28  }
  0x10   :  { %s10055_s8 = smov [#allocation8]   ;;  %s10056_s10 = smov [#allocation2]  }
  0x11   :  { %s54_s9 = sshll.u32 %s10055_s8, 4  ;;  %s23_s11 = sshll.u32 %s10056_s10, 4  ;;  %s55_s9 = int_to_ptr.vmem [resolvable:$true] %s54_s9  ;;  %s24_s11 = int_to_ptr.vmem [resolvable:$true] %s23_s11 }
  0x12   :  { %s9930_s12 = scalar_lea.vmem %s55_s9, 65536  ;;  %p9935_p6 = scmp.lt.s32.totalorder %s55_s9, %s55_s9 }
  0x13   :  { %p9931_p5 = scmp.ne.s32.totalorder %s55_s9, %s9930_s12  ;;  %p9936_p7 = scmp.lt.s32.totalorder %s9930_s12, %s9930_s12 }
  0x15   :  { %p9937_p8 = por %p9936_p7, %p9935_p6 }
  0x17   :  { %p9938_p9 = pnand %p9937_p8, %p9931_p5 }
  0x19   :  { %9941 = shalt.err (!%p9938_p9)
}
  0x1a   :  { %60 = dma.hbm_to_vmem [thread:$0]  %s10664_s3, 65536, %s55_s9, [#allocation9], %s10053_s27, %s10053_s27, %s10054_s28  }
  0x1b   :  { %s9950_s15 = scalar_lea.vmem %s24_s11, 256  ;;  %p9955_p11 = scmp.lt.s32.totalorder %s24_s11, %s24_s11 }
  0x1c   :  { %p9951_p10 = scmp.ne.s32.totalorder %s24_s11, %s9950_s15  ;;  %p9956_p12 = scmp.lt.s32.totalorder %s9950_s15, %s9950_s15 }
  0x1e   :  { %p9957_p13 = por %p9956_p12, %p9955_p11 }
  0x20   :  { %p9958_p0 = pnand %p9957_p13, %p9951_p10 }
  0x22   :  { %9961 = shalt.err (!%p9958_p0)
}
  0x23   :  { %26 = dma.hbm_to_vmem [thread:$0]  %s10661_s0, 256, %s24_s11, [#allocation3]  }
  0x24   :  { %s10057_s17 = smov [#allocation7]   ;;  %s10058_s19 = smov [#allocation10]  }
  0x25   :  { %s45_s18 = sshll.u32 %s10057_s17, 4  ;;  %s67_s20 = sshll.u32 %s10058_s19, 4  ;;  %s46_s18 = int_to_ptr.vmem [resolvable:$true] %s45_s18  ;;  %s68_s20 = int_to_ptr.vmem [resolvable:$true] %s67_s20 }
  0x26   :  { %s9970_s21 = scalar_lea.vmem %s46_s18, 128  ;;  %p9975_p2 = scmp.lt.s32.totalorder %s46_s18, %s46_s18 }
  0x27   :  { %p9971_p1 = scmp.ne.s32.totalorder %s46_s18, %s9970_s21  ;;  %p9976_p3 = scmp.lt.s32.totalorder %s9970_s21, %s9970_s21 }
  0x29   :  { %p9977_p4 = por %p9976_p3, %p9975_p2 }
  0x2b   :  { %p9978_p5 = pnand %p9977_p4, %p9971_p1 }
  0x2d   :  { %9981 = shalt.err (!%p9978_p5)
}
  0x2e   :  { %48 = dma.hbm_to_vmem [thread:$0]  %s10663_s2, 128, %s46_s18, [#allocation6]  }
  0x2f   :  { %s9990_s23 = scalar_lea.vmem %s68_s20, 128  ;;  %p9995_p7 = scmp.lt.s32.totalorder %s68_s20, %s68_s20 }
  0x30   :  { %p9991_p6 = scmp.ne.s32.totalorder %s68_s20, %s9990_s23  ;;  %p9996_p8 = scmp.lt.s32.totalorder %s9990_s23, %s9990_s23 }
  0x32   :  { %p9997_p9 = por %p9996_p8, %p9995_p7 }
  0x34   :  { %p9998_p10 = pnand %p9997_p9, %p9991_p6 }
  0x36   :  { %10001 = shalt.err (!%p9998_p10)
}
  0x37   :  { %70 = dma.hbm_to_vmem [thread:$0]  %s10665_s4, 128, %s68_s20, [#allocation9]  }
  0x38   :  { %s10059_s25 = smov [#allocation11]  }
  0x39   :  { %s79_s26 = sshll.u32 %s10059_s25, 4  ;;  %s80_s26 = int_to_ptr.vmem [resolvable:$true] %s79_s26 }
  0x3a   :  { %s10010_s27 = scalar_lea.vmem %s80_s26, 16  ;;  %s10014_s28 = scalar_lea.vmem %s80_s26, 32 }
  0x3b   :  { %p10011_p11 = scmp.ne.s32.totalorder %s80_s26, %s10010_s27  ;;  %p10015_p12 = scmp.lt.s32.totalorder %s80_s26, %s80_s26 }
  0x3c   :  { %p10016_p13 = scmp.lt.s32.totalorder %s10014_s28, %s10010_s27 }
  0x3e   :  { %p10017_p0 = por %p10016_p13, %p10015_p12 }
  0x40   :  { %p10018_p1 = pnand %p10017_p0, %p10011_p11 }
  0x42   :  { %10021 = shalt.err (!%p10018_p1)
}
  0x43   :  { %82 = dma.hbm_to_vmem [thread:$0]  %s10667_s6, 16, %s80_s26, [#allocation12]  }
  0x44   :  { %10042 = dma.done.wait [#allocation3], 256  }
  0x45   :  { %10043 = vsyncadd [#allocation3], 4294967040 }
  0x46   :  { %10044 = dma.done.wait [#allocation6], 65664  }
  0x47   :  { %10045 = vsyncadd [#allocation6], 4294901632 }
  0x48   :  { %10046 = dma.done.wait [#allocation9], 65664  }
  0x49   :  { %10047 = vsyncadd [#allocation9], 4294901632 }
  0x4a   :  { %10048 = dma.done.wait [#allocation12], 16  }
  0x4b   :  { %10049 = vsyncadd [#allocation12], 4294967280  ;;  %v212_v0 = vld [vmem:[#allocation5 + $0x1c0] sm:$0xff]  ;;  %v10060_v32 = vmov 1983009808   ;;  %v110_v34 = vlaneseq  ;;  %v102_v59 = vld [vmem:[#allocation2] sm:$0xff] }
  0x4c   :  { %v216_v1 = vld [vmem:[#allocation5 + $0x1e0] sm:$0xff]  ;;  %v108_v33 = vunpack.c.l.s4 %v10060_v32  ;;  %vm7728_vm8 = vcmask 1041408  }
  0x4d   :  { %v340_v2 = vld [vmem:[#allocation5 + $0x5c0] sm:$0xff]  ;;  %v8686_v3 = vcombine.high %v212_v0, %v216_v1  ;;  %v8685_v5 = vcombine.low %v212_v0, %v216_v1  ;;  %v10120_v44 = vshrl.u32 %v110_v34, 7  ;;  %v106_v0 = vcombine.high %v102_v59, %v102_v59 }
  0x4e   :  { %v344_v4 = vld [vmem:[#allocation5 + $0x5e0] sm:$0xff]  ;;  %v109_v43 = vunpack.c.0.s8 %v108_v33 }
  0x4f   :  { %v204_v6 = vld [vmem:[#allocation5 + $0x180] sm:$0xff]  ;;  %v8814_v8 = vcombine.high %v340_v2, %v344_v4  ;;  %v8813_v9 = vcombine.low %v340_v2, %v344_v4  ;;  %3270 = vmatprep.subr.bf16.mxu0 %v8686_v3 }
  0x50   :  { %v208_v7 = vld [vmem:[#allocation5 + $0x1a0] sm:$0xff]  ;;  %3271 = vmatpush1.bf16.msra.mxu0 %v8685_v5  ;;  %v10123_v53 = vsub.s32 %v109_v43, %v10120_v44 }
  0x51   :  { %v8678_v10 = vcombine.high %v204_v6, %v208_v7  ;;  %v332_v11 = vld [vmem:[#allocation5 + $0x580] sm:$0xff]  ;;  %3311 = vmatprep.subr.bf16.mxu1 %v8814_v8  ;;  %v8677_v18 = vcombine.low %v204_v6, %v208_v7 }
  0x52   :  { %v336_v12 = vld [vmem:[#allocation5 + $0x5a0] sm:$0xff]  ;;  %3312 = vmatpush1.bf16.msra.mxu1 %v8813_v9  ;;  %v10126_v63 = vrot.slane %v102_v59, %v10123_v53  ;;  %v10131_v5 = vrot.slane %v106_v0, %v10123_v53 }
  0x53   :  { %v196_v13 = vld [vmem:[#allocation5 + $0x140] sm:$0xff]  ;;  %v8806_v14 = vcombine.high %v332_v11, %v336_v12  ;;  %3272 = vmatprep.subr.bf16.mxu0 %v8678_v10  ;;  %v8805_v19 = vcombine.low %v332_v11, %v336_v12 }
  0x54   :  { %v200_v15 = vld [vmem:[#allocation5 + $0x160] sm:$0xff]  ;;  %3273 = vmatpush1.bf16.msra.mxu0 %v8677_v18  ;;  %v121_v4 = vcombine.high %v10126_v63, %v10126_v63  ;;  %v122_v12 = vcombine.high %v10131_v5, %v10131_v5 }
  0x55   :  { %v324_v16 = vld [vmem:[#allocation5 + $0x540] sm:$0xff]  ;;  %v8670_v20 = vcombine.high %v196_v13, %v200_v15  ;;  %3313 = vmatprep.subr.bf16.mxu1 %v8806_v14  ;;  %v8669_v26 = vcombine.low %v196_v13, %v200_v15 }
  0x56   :  { %v328_v17 = vld [vmem:[#allocation5 + $0x560] sm:$0xff]  ;;  %3314 = vmatpush1.bf16.msra.mxu1 %v8805_v19  ;;  %v10133_v11 = vpack.c.bf16 %v121_v4, %v121_v4  ;;  %v103_v4 = vld [vmem:[#allocation2 + $0x8] sm:$0xff] }
  0x57   :  { %v8798_v21 = vcombine.high %v324_v16, %v328_v17  ;;  %v188_v22 = vld [vmem:[#allocation5 + $0x100] sm:$0xff]  ;;  %3274 = vmatprep.subr.bf16.mxu0 %v8670_v20  ;;  %v8797_v27 = vcombine.low %v324_v16, %v328_v17  ;;  %v10138_v16 = vpack.c.bf16 %v122_v12, %v122_v12 }
  0x58   :  { %v192_v23 = vld [vmem:[#allocation5 + $0x120] sm:$0xff]  ;;  %3275 = vmatpush1.bf16.msra.mxu0 %v8669_v26  ;;  %3302 = vmatprep.mubr.bf16.mxu0 %v10133_v11 }
  0x59   :  { %v316_v24 = vld [vmem:[#allocation5 + $0x500] sm:$0xff]  ;;  %v8662_v28 = vcombine.high %v188_v22, %v192_v23  ;;  %3315 = vmatprep.subr.bf16.mxu1 %v8798_v21  ;;  %v8661_v37 = vcombine.low %v188_v22, %v192_v23  ;;  %3343 = vmatprep.mubr.bf16.mxu1 %v10138_v16 }
  0x5a   :  { %v320_v25 = vld [vmem:[#allocation5 + $0x520] sm:$0xff]  ;;  %3316 = vmatpush1.bf16.msra.mxu1 %v8797_v27 }
  0x5b   :  { %v8790_v29 = vcombine.high %v316_v24, %v320_v25  ;;  %v180_v30 = vld [vmem:[#allocation5 + $0xc0] sm:$0xff]  ;;  %3276 = vmatprep.subr.bf16.mxu0 %v8662_v28  ;;  %v8789_v38 = vcombine.low %v316_v24, %v320_v25 }
  0x5c   :  { %v184_v31 = vld [vmem:[#allocation5 + $0xe0] sm:$0xff]  ;;  %3277 = vmatpush1.bf16.msra.mxu0 %v8661_v37 }
  0x5d   :  { %v308_v35 = vld [vmem:[#allocation5 + $0x4c0] sm:$0xff]  ;;  %v8654_v39 = vcombine.high %v180_v30, %v184_v31  ;;  %3317 = vmatprep.subr.bf16.mxu1 %v8790_v29  ;;  %v8653_v47 = vcombine.low %v180_v30, %v184_v31 }
  0x5e   :  { %v312_v36 = vld [vmem:[#allocation5 + $0x4e0] sm:$0xff]  ;;  %3318 = vmatpush1.bf16.msra.mxu1 %v8789_v38 }
  0x5f   :  { %v8782_v40 = vcombine.high %v308_v35, %v312_v36  ;;  %v172_v41 = vld [vmem:[#allocation5 + $0x80] sm:$0xff]  ;;  %3278 = vmatprep.subr.bf16.mxu0 %v8654_v39  ;;  %v8781_v48 = vcombine.low %v308_v35, %v312_v36 }
  0x60   :  { %v176_v42 = vld [vmem:[#allocation5 + $0xa0] sm:$0xff]  ;;  %3279 = vmatpush1.bf16.msra.mxu0 %v8653_v47 }
  0x61   :  { %v300_v45 = vld [vmem:[#allocation5 + $0x480] sm:$0xff]  ;;  %v8646_v49 = vcombine.high %v172_v41, %v176_v42  ;;  %3319 = vmatprep.subr.bf16.mxu1 %v8782_v40  ;;  %v8645_v56 = vcombine.low %v172_v41, %v176_v42 }
  0x62   :  { %v304_v46 = vld [vmem:[#allocation5 + $0x4a0] sm:$0xff]  ;;  %3320 = vmatpush1.bf16.msra.mxu1 %v8781_v48 }
  0x63   :  { %v8774_v50 = vcombine.high %v300_v45, %v304_v46  ;;  %v164_v51 = vld [vmem:[#allocation5 + $0x40] sm:$0xff]  ;;  %3280 = vmatprep.subr.bf16.mxu0 %v8646_v49  ;;  %v8773_v57 = vcombine.low %v300_v45, %v304_v46 }
  0x64   :  { %v168_v52 = vld [vmem:[#allocation5 + $0x60] sm:$0xff]  ;;  %3281 = vmatpush1.bf16.msra.mxu0 %v8645_v56 }
  0x65   :  { %v292_v54 = vld [vmem:[#allocation5 + $0x440] sm:$0xff]  ;;  %v8638_v58 = vcombine.high %v164_v51, %v168_v52  ;;  %3321 = vmatprep.subr.bf16.mxu1 %v8774_v50  ;;  %v8637_v3 = vcombine.low %v164_v51, %v168_v52 }
  0x66   :  { %v296_v55 = vld [vmem:[#allocation5 + $0x460] sm:$0xff]  ;;  %3322 = vmatpush1.bf16.msra.mxu1 %v8773_v57 }
  0x67   :  { %v8766_v60 = vcombine.high %v292_v54, %v296_v55  ;;  %v156_v61 = vld [vmem:[#allocation5] sm:$0xff]  ;;  %3282 = vmatprep.subr.bf16.mxu0 %v8638_v58  ;;  %v8765_v6 = vcombine.low %v292_v54, %v296_v55 }
  0x68   :  { %v160_v62 = vld [vmem:[#allocation5 + $0x20] sm:$0xff]  ;;  %3283 = vmatpush1.bf16.msra.mxu0 %v8637_v3 }
  0x69   :  { %v284_v1 = vld [vmem:[#allocation5 + $0x400] sm:$0xff]  ;;  %v8630_v7 = vcombine.high %v156_v61, %v160_v62  ;;  %3323 = vmatprep.subr.bf16.mxu1 %v8766_v60  ;;  %v8629_v15 = vcombine.low %v156_v61, %v160_v62 }
  0x6a   :  { %v288_v2 = vld [vmem:[#allocation5 + $0x420] sm:$0xff]  ;;  %3324 = vmatpush1.bf16.msra.mxu1 %v8765_v6 }
  0x6b   :  { %v8758_v8 = vcombine.high %v284_v1, %v288_v2  ;;  %v276_v9 = vld [vmem:[#allocation5 + $0x3c0] sm:$0xff]  ;;  %3284 = vmatprep.subr.bf16.mxu0 %v8630_v7  ;;  %v8757_v17 = vcombine.low %v284_v1, %v288_v2 }
  0x6c   :  { %v280_v10 = vld [vmem:[#allocation5 + $0x3e0] sm:$0xff]  ;;  %3285 = vmatpush1.bf16.msra.mxu0 %v8629_v15 }
  0x6d   :  { %v404_v13 = vld [vmem:[#allocation5 + $0x7c0] sm:$0xff]  ;;  %v8750_v18 = vcombine.high %v276_v9, %v280_v10  ;;  %3325 = vmatprep.subr.bf16.mxu1 %v8758_v8  ;;  %v8749_v24 = vcombine.low %v276_v9, %v280_v10 }
  0x6e   :  { %v408_v14 = vld [vmem:[#allocation5 + $0x7e0] sm:$0xff]  ;;  %3326 = vmatpush1.bf16.msra.mxu1 %v8757_v17 }
  0x6f   :  { %v8878_v19 = vcombine.high %v404_v13, %v408_v14  ;;  %v268_v20 = vld [vmem:[#allocation5 + $0x380] sm:$0xff]  ;;  %3286 = vmatprep.subr.bf16.mxu0 %v8750_v18  ;;  %v8877_v25 = vcombine.low %v404_v13, %v408_v14  ;;  %v123_v14 = vcombine.high %v103_v4, %v103_v4 }
  0x70   :  { %v272_v21 = vld [vmem:[#allocation5 + $0x3a0] sm:$0xff]  ;;  %3287 = vmatpush2.bf16.msra.mxu0 %v8749_v24 }
  0x71   :  { %v396_v22 = vld [vmem:[#allocation5 + $0x780] sm:$0xff]  ;;  %v8742_v26 = vcombine.high %v268_v20, %v272_v21  ;;  %3327 = vmatprep.subr.bf16.mxu1 %v8878_v19  ;;  %v8741_v32 = vcombine.low %v268_v20, %v272_v21 }
  0x72   :  { %v400_v23 = vld [vmem:[#allocation5 + $0x7a0] sm:$0xff]  ;;  %3328 = vmatpush2.bf16.msra.mxu1 %v8877_v25  ;;  %v10145_v25 = vrot.slane %v123_v14, %v10123_v53 }
  0x73   :  { %v8870_v27 = vcombine.high %v396_v22, %v400_v23  ;;  %v260_v28 = vld [vmem:[#allocation5 + $0x340] sm:$0xff]  ;;  %3288 = vmatprep.subr.bf16.mxu0 %v8742_v26  ;;  %v8869_v33 = vcombine.low %v396_v22, %v400_v23  ;;  %v10142_v22 = vrot.slane %v103_v4, %v10123_v53 }
  0x74   :  { %v264_v29 = vld [vmem:[#allocation5 + $0x360] sm:$0xff]  ;;  %3289 = vmatpush2.bf16.msra.mxu0 %v8741_v32 }
  0x75   :  { %v388_v30 = vld [vmem:[#allocation5 + $0x740] sm:$0xff]  ;;  %v8734_v34 = vcombine.high %v260_v28, %v264_v29  ;;  %3329 = vmatprep.subr.bf16.mxu1 %v8870_v27  ;;  %v8733_v40 = vcombine.low %v260_v28, %v264_v29  ;;  %v138_v32 = vcombine.high %v10142_v22, %v10142_v22 }
  0x76   :  { %v392_v31 = vld [vmem:[#allocation5 + $0x760] sm:$0xff]  ;;  %3330 = vmatpush2.bf16.msra.mxu1 %v8869_v33  ;;  %v10151_v33 = vpack.c.bf16 %v10126_v63, %v10126_v63 }
  0x77   :  { %v8862_v35 = vcombine.high %v388_v30, %v392_v31  ;;  %v252_v36 = vld [vmem:[#allocation5 + $0x300] sm:$0xff]  ;;  %3290 = vmatprep.subr.bf16.mxu0 %v8734_v34  ;;  %v8861_v41 = vcombine.low %v388_v30, %v392_v31 }
  0x78   :  { %v256_v37 = vld [vmem:[#allocation5 + $0x320] sm:$0xff]  ;;  %3291 = vmatpush2.bf16.msra.mxu0 %v8733_v40 }
  0x79   :  { %v380_v38 = vld [vmem:[#allocation5 + $0x700] sm:$0xff]  ;;  %v8726_v42 = vcombine.high %v252_v36, %v256_v37  ;;  %3331 = vmatprep.subr.bf16.mxu1 %v8862_v35  ;;  %v8725_v49 = vcombine.low %v252_v36, %v256_v37  ;;  %v139_v35 = vcombine.high %v10145_v25, %v10145_v25  ;;  %v10157_v36 = vpack.c.bf16 %v10131_v5, %v10131_v5 }
  0x7a   :  { %v384_v39 = vld [vmem:[#allocation5 + $0x720] sm:$0xff]  ;;  %3332 = vmatpush2.bf16.msra.mxu1 %v8861_v41 }
  0x7b   :  { %v8854_v43 = vcombine.high %v380_v38, %v384_v39  ;;  %v244_v45 = vld [vmem:[#allocation5 + $0x2c0] sm:$0xff]  ;;  %3292 = vmatprep.subr.bf16.mxu0 %v8726_v42  ;;  %v8853_v50 = vcombine.low %v380_v38, %v384_v39 }
  0x7c   :  { %v248_v46 = vld [vmem:[#allocation5 + $0x2e0] sm:$0xff]  ;;  %3293 = vmatpush2.bf16.msra.mxu0 %v8725_v49 }
  0x7d   :  { %v372_v47 = vld [vmem:[#allocation5 + $0x6c0] sm:$0xff]  ;;  %v8718_v51 = vcombine.high %v244_v45, %v248_v46  ;;  %3333 = vmatprep.subr.bf16.mxu1 %v8854_v43  ;;  %v8717_v58 = vcombine.low %v244_v45, %v248_v46  ;;  %v10159_v45 = vpack.c.bf16 %v138_v32, %v138_v32  ;;  %v10162_v46 = vpack.c.bf16 %v139_v35, %v139_v35 }
  0x7e   :  { %v376_v48 = vld [vmem:[#allocation5 + $0x6e0] sm:$0xff]  ;;  %3334 = vmatpush2.bf16.msra.mxu1 %v8853_v50 }
  0x7f   :  { %v8846_v52 = vcombine.high %v372_v47, %v376_v48  ;;  %v236_v54 = vld [vmem:[#allocation5 + $0x280] sm:$0xff]  ;;  %3294 = vmatprep.subr.bf16.mxu0 %v8718_v51  ;;  %v8845_v59 = vcombine.low %v372_v47, %v376_v48 }
  0x80   :  { %v240_v55 = vld [vmem:[#allocation5 + $0x2a0] sm:$0xff]  ;;  %3295 = vmatpush2.bf16.msra.mxu0 %v8717_v58 }
  0x81   :  { %v364_v56 = vld [vmem:[#allocation5 + $0x680] sm:$0xff]  ;;  %v8710_v60 = vcombine.high %v236_v54, %v240_v55  ;;  %3335 = vmatprep.subr.bf16.mxu1 %v8846_v52  ;;  %v8709_v3 = vcombine.low %v236_v54, %v240_v55 }
  0x82   :  { %v368_v57 = vld [vmem:[#allocation5 + $0x6a0] sm:$0xff]  ;;  %3336 = vmatpush2.bf16.msra.mxu1 %v8845_v59 }
  0x83   :  { %v8838_v61 = vcombine.high %v364_v56, %v368_v57  ;;  %v228_v62 = vld [vmem:[#allocation5 + $0x240] sm:$0xff]  ;;  %3296 = vmatprep.subr.bf16.mxu0 %v8710_v60  ;;  %v8837_v6 = vcombine.low %v364_v56, %v368_v57 }
  0x84   :  { %v232_v0 = vld [vmem:[#allocation5 + $0x260] sm:$0xff]  ;;  %3297 = vmatpush2.bf16.msra.mxu0 %v8709_v3 }
  0x85   :  { %v356_v1 = vld [vmem:[#allocation5 + $0x640] sm:$0xff]  ;;  %v8702_v7 = vcombine.high %v228_v62, %v232_v0  ;;  %3337 = vmatprep.subr.bf16.mxu1 %v8838_v61  ;;  %v8701_v15 = vcombine.low %v228_v62, %v232_v0 }
  0x86   :  { %v360_v2 = vld [vmem:[#allocation5 + $0x660] sm:$0xff]  ;;  %3338 = vmatpush2.bf16.msra.mxu1 %v8837_v6 }
  0x87   :  { %v8830_v8 = vcombine.high %v356_v1, %v360_v2  ;;  %v220_v9 = vld [vmem:[#allocation5 + $0x200] sm:$0xff]  ;;  %3298 = vmatprep.subr.bf16.mxu0 %v8702_v7  ;;  %v8829_v17 = vcombine.low %v356_v1, %v360_v2 }
  0x88   :  { %v224_v10 = vld [vmem:[#allocation5 + $0x220] sm:$0xff]  ;;  %3299 = vmatpush2.bf16.msra.mxu0 %v8701_v15 }
  0x89   :  { %v348_v12 = vld [vmem:[#allocation5 + $0x600] sm:$0xff]  ;;  %v8694_v18 = vcombine.high %v220_v9, %v224_v10  ;;  %3339 = vmatprep.subr.bf16.mxu1 %v8830_v8  ;;  %v8693_v26 = vcombine.low %v220_v9, %v224_v10 }
  0x8a   :  { %v352_v13 = vld [vmem:[#allocation5 + $0x620] sm:$0xff]  ;;  %3340 = vmatpush2.bf16.msra.mxu1 %v8829_v17 }
  0x8b   :  { %v8822_v19 = vcombine.high %v348_v12, %v352_v13  ;;  %v468_v20 = vld [vmem:[#allocation5 + $0x9c0] sm:$0xff]  ;;  %3300 = vmatprep.subr.bf16.mxu0 %v8694_v18  ;;  %v8821_v27 = vcombine.low %v348_v12, %v352_v13 }
  0x8c   :  { %v472_v21 = vld [vmem:[#allocation5 + $0x9e0] sm:$0xff]  ;;  %3301 = vmatpush2.bf16.msra.mxu0 %v8693_v26 }
  0x8d   :  { %v596_v23 = vld [vmem:[#allocation5 + $0xdc0] sm:$0xff]  ;;  %v8942_v28 = vcombine.high %v468_v20, %v472_v21  ;;  %3341 = vmatprep.subr.bf16.mxu1 %v8822_v19  ;;  %v8941_v37 = vcombine.low %v468_v20, %v472_v21 }
  0x8e   :  { %v600_v24 = vld [vmem:[#allocation5 + $0xde0] sm:$0xff]  ;;  %3342 = vmatpush2.bf16.msra.mxu1 %v8821_v27 }
  0x8f   :  { %v9070_v29 = vcombine.high %v596_v23, %v600_v24  ;;  %v460_v30 = vld [vmem:[#allocation5 + $0x980] sm:$0xff]  ;;  %3352 = vmatprep.subr.bf16.mxu0 %v8942_v28  ;;  %v9069_v38 = vcombine.low %v596_v23, %v600_v24  ;;  %3303 = vmatmul.mubr.bf16.vlgmr.msra.gmra.mxu0 %v10151_v33 }
  0x90   :  { %v464_v31 = vld [vmem:[#allocation5 + $0x9a0] sm:$0xff]  ;;  %3353 = vmatpush1.bf16.msra.mxu0 %v8941_v37  ;;  %3384 = vmatprep.mubr.bf16.mxu0 %v10159_v45 }
  0x91   :  { %v588_v34 = vld [vmem:[#allocation5 + $0xd80] sm:$0xff]  ;;  %v8934_v39 = vcombine.high %v460_v30, %v464_v31  ;;  %3393 = vmatprep.subr.bf16.mxu1 %v9070_v29  ;;  %3344 = vmatmul.mubr.bf16.vlgmr.msra.gmra.mxu1 %v10157_v36  ;;  %v8933_v5 = vcombine.low %v460_v30, %v464_v31 }
  0x92   :  { %v592_v53 = vld [vmem:[#allocation5 + $0xda0] sm:$0xff]  ;;  %3394 = vmatpush1.bf16.msra.mxu1 %v9069_v38  ;;  %3425 = vmatprep.mubr.bf16.mxu1 %v10162_v46 }
  0x93   :  { %v452_v40 = vld [vmem:[#allocation5 + $0x940] sm:$0xff]  ;;  %v9062_v63 = vcombine.high %v588_v34, %v592_v53  ;;  %3354 = vmatprep.subr.bf16.mxu0 %v8934_v39  ;;  %v9061_v47 = vcombine.low %v588_v34, %v592_v53 }
  0x94   :  { %v456_v41 = vld [vmem:[#allocation5 + $0x960] sm:$0xff]  ;;  %3355 = vmatpush1.bf16.msra.mxu0 %v8933_v5 }
  0x95   :  { %v580_v42 = vld [vmem:[#allocation5 + $0xd40] sm:$0xff]  ;;  %v8926_v48 = vcombine.high %v452_v40, %v456_v41  ;;  %3395 = vmatprep.subr.bf16.mxu1 %v9062_v63  ;;  %v8925_v55 = vcombine.low %v452_v40, %v456_v41 }
  0x96   :  { %v584_v43 = vld [vmem:[#allocation5 + $0xd60] sm:$0xff]  ;;  %3396 = vmatpush1.bf16.msra.mxu1 %v9061_v47 }
  0x97   :  { %v444_v49 = vld [vmem:[#allocation5 + $0x900] sm:$0xff]  ;;  %v9054_v52 = vcombine.high %v580_v42, %v584_v43  ;;  %3356 = vmatprep.subr.bf16.mxu0 %v8926_v48  ;;  %v9053_v56 = vcombine.low %v580_v42, %v584_v43 }
  0x98   :  { %v448_v50 = vld [vmem:[#allocation5 + $0x920] sm:$0xff]  ;;  %3357 = vmatpush1.bf16.msra.mxu0 %v8925_v55 }
  0x99   :  { %v572_v51 = vld [vmem:[#allocation5 + $0xd00] sm:$0xff]  ;;  %v8918_v57 = vcombine.high %v444_v49, %v448_v50  ;;  %3397 = vmatprep.subr.bf16.mxu1 %v9054_v52  ;;  %v8917_v0 = vcombine.low %v444_v49, %v448_v50 }
  0x9a   :  { %v576_v54 = vld [vmem:[#allocation5 + $0xd20] sm:$0xff]  ;;  %3398 = vmatpush1.bf16.msra.mxu1 %v9053_v56 }
  0x9b   :  { %v436_v58 = vld [vmem:[#allocation5 + $0x8c0] sm:$0xff]  ;;  %v9046_v61 = vcombine.high %v572_v51, %v576_v54  ;;  %3358 = vmatprep.subr.bf16.mxu0 %v8918_v57  ;;  %v9045_v1 = vcombine.low %v572_v51, %v576_v54 }
  0x9c   :  { %v440_v59 = vld [vmem:[#allocation5 + $0x8e0] sm:$0xff]  ;;  %3359 = vmatpush1.bf16.msra.mxu0 %v8917_v0 }
  0x9d   :  { %v564_v60 = vld [vmem:[#allocation5 + $0xcc0] sm:$0xff]  ;;  %v8910_v2 = vcombine.high %v436_v58, %v440_v59  ;;  %3399 = vmatprep.subr.bf16.mxu1 %v9046_v61  ;;  %v8909_v9 = vcombine.low %v436_v58, %v440_v59 }
  0x9e   :  { %v568_v62 = vld [vmem:[#allocation5 + $0xce0] sm:$0xff]  ;;  %3400 = vmatpush1.bf16.msra.mxu1 %v9045_v1 }
  0x9f   :  { %v428_v3 = vld [vmem:[#allocation5 + $0x880] sm:$0xff]  ;;  %v9038_v7 = vcombine.high %v564_v60, %v568_v62  ;;  %3360 = vmatprep.subr.bf16.mxu0 %v8910_v2  ;;  %v9037_v10 = vcombine.low %v564_v60, %v568_v62 }
  0xa0   :  { %v432_v4 = vld [vmem:[#allocation5 + $0x8a0] sm:$0xff]  ;;  %3361 = vmatpush1.bf16.msra.mxu0 %v8909_v9 }
  0xa1   :  { %v556_v6 = vld [vmem:[#allocation5 + $0xc80] sm:$0xff]  ;;  %v8902_v12 = vcombine.high %v428_v3, %v432_v4  ;;  %3401 = vmatprep.subr.bf16.mxu1 %v9038_v7  ;;  %v8901_v19 = vcombine.low %v428_v3, %v432_v4 }
  0xa2   :  { %v560_v8 = vld [vmem:[#allocation5 + $0xca0] sm:$0xff]  ;;  %3402 = vmatpush1.bf16.msra.mxu1 %v9037_v10 }
  0xa3   :  { %v420_v13 = vld [vmem:[#allocation5 + $0x840] sm:$0xff]  ;;  %v9030_v17 = vcombine.high %v556_v6, %v560_v8  ;;  %3362 = vmatprep.subr.bf16.mxu0 %v8902_v12  ;;  %v9029_v20 = vcombine.low %v556_v6, %v560_v8 }
  0xa4   :  { %v424_v14 = vld [vmem:[#allocation5 + $0x860] sm:$0xff]  ;;  %3363 = vmatpush1.bf16.msra.mxu0 %v8901_v19 }
  0xa5   :  { %v548_v15 = vld [vmem:[#allocation5 + $0xc40] sm:$0xff]  ;;  %v8894_v21 = vcombine.high %v420_v13, %v424_v14  ;;  %3403 = vmatprep.subr.bf16.mxu1 %v9030_v17  ;;  %v8893_v29 = vcombine.low %v420_v13, %v424_v14 }
  0xa6   :  { %v552_v18 = vld [vmem:[#allocation5 + $0xc60] sm:$0xff]  ;;  %3404 = vmatpush1.bf16.msra.mxu1 %v9029_v20 }
  0xa7   :  { %v412_v23 = vld [vmem:[#allocation5 + $0x800] sm:$0xff]  ;;  %v9022_v27 = vcombine.high %v548_v15, %v552_v18  ;;  %3364 = vmatprep.subr.bf16.mxu0 %v8894_v21  ;;  %v9021_v30 = vcombine.low %v548_v15, %v552_v18 }
  0xa8   :  { %v416_v24 = vld [vmem:[#allocation5 + $0x820] sm:$0xff]  ;;  %3365 = vmatpush1.bf16.msra.mxu0 %v8893_v29 }
  0xa9   :  { %v540_v26 = vld [vmem:[#allocation5 + $0xc00] sm:$0xff]  ;;  %v8886_v31 = vcombine.high %v412_v23, %v416_v24  ;;  %3405 = vmatprep.subr.bf16.mxu1 %v9022_v27  ;;  %v8885_v38 = vcombine.low %v412_v23, %v416_v24 }
  0xaa   :  { %v544_v28 = vld [vmem:[#allocation5 + $0xc20] sm:$0xff]  ;;  %3406 = vmatpush1.bf16.msra.mxu1 %v9021_v30 }
  0xab   :  { %v532_v32 = vld [vmem:[#allocation5 + $0xbc0] sm:$0xff]  ;;  %v9014_v35 = vcombine.high %v540_v26, %v544_v28  ;;  %3366 = vmatprep.subr.bf16.mxu0 %v8886_v31  ;;  %v9013_v39 = vcombine.low %v540_v26, %v544_v28 }
  0xac   :  { %v536_v34 = vld [vmem:[#allocation5 + $0xbe0] sm:$0xff]  ;;  %3367 = vmatpush1.bf16.msra.mxu0 %v8885_v38 }
  0xad   :  { %v660_v53 = vld [vmem:[#allocation5 + $0xfc0] sm:$0xff]  ;;  %v9006_v40 = vcombine.high %v532_v32, %v536_v34  ;;  %3407 = vmatprep.subr.bf16.mxu1 %v9014_v35  ;;  %v9005_v47 = vcombine.low %v532_v32, %v536_v34 }
  0xae   :  { %v664_v37 = vld [vmem:[#allocation5 + $0xfe0] sm:$0xff]  ;;  %3408 = vmatpush1.bf16.msra.mxu1 %v9013_v39 }
  0xaf   :  { %v524_v41 = vld [vmem:[#allocation5 + $0xb80] sm:$0xff]  ;;  %v9134_v43 = vcombine.high %v660_v53, %v664_v37  ;;  %3368 = vmatprep.subr.bf16.mxu0 %v9006_v40  ;;  %v9133_v48 = vcombine.low %v660_v53, %v664_v37 }
  0xb0   :  { %v528_v42 = vld [vmem:[#allocation5 + $0xba0] sm:$0xff]  ;;  %3369 = vmatpush2.bf16.msra.mxu0 %v9005_v47  ;;  %v345_v47 = vld [vmem:[#allocation5 + $0x5e8] sm:$0xff] }
  0xb1   :  { %v652_v63 = vld [vmem:[#allocation5 + $0xf80] sm:$0xff]  ;;  %v8998_v49 = vcombine.high %v524_v41, %v528_v42  ;;  %3409 = vmatprep.subr.bf16.mxu1 %v9134_v43  ;;  %v8997_v56 = vcombine.low %v524_v41, %v528_v42  ;;  %v213_v42 = vld [vmem:[#allocation5 + $0x1c8] sm:$0xff] }
  0xb2   :  { %v656_v5 = vld [vmem:[#allocation5 + $0xfa0] sm:$0xff]  ;;  %3410 = vmatpush2.bf16.msra.mxu1 %v9133_v48  ;;  %v341_v43 = vld [vmem:[#allocation5 + $0x5c8] sm:$0xff] }
  0xb3   :  { %v516_v50 = vld [vmem:[#allocation5 + $0xb40] sm:$0xff]  ;;  %v9126_v54 = vcombine.high %v652_v63, %v656_v5  ;;  %3370 = vmatprep.subr.bf16.mxu0 %v8998_v49  ;;  %v9125_v57 = vcombine.low %v652_v63, %v656_v5  ;;  %v217_v63 = vld [vmem:[#allocation5 + $0x1e8] sm:$0xff] }
  0xb4   :  { %v520_v51 = vld [vmem:[#allocation5 + $0xb60] sm:$0xff]  ;;  %3371 = vmatpush2.bf16.msra.mxu0 %v8997_v56  ;;  %v337_v56 = vld [vmem:[#allocation5 + $0x5a8] sm:$0xff] }
  0xb5   :  { %v644_v52 = vld [vmem:[#allocation5 + $0xf40] sm:$0xff]  ;;  %v8990_v58 = vcombine.high %v516_v50, %v520_v51  ;;  %3411 = vmatprep.subr.bf16.mxu1 %v9126_v54  ;;  %v8989_v1 = vcombine.low %v516_v50, %v520_v51  ;;  %v8688_v50 = vcombine.high %v213_v42, %v217_v63  ;;  %v205_v51 = vld [vmem:[#allocation5 + $0x188] sm:$0xff] }
  0xb6   :  { %v648_v55 = vld [vmem:[#allocation5 + $0xf60] sm:$0xff]  ;;  %3412 = vmatpush2.bf16.msra.mxu1 %v9125_v57  ;;  %v333_v54 = vld [vmem:[#allocation5 + $0x588] sm:$0xff]  ;;  %v10169_v57 = vpack.c.bf16 %v10142_v22, %v10142_v22 }
  0xb7   :  { %v508_v59 = vld [vmem:[#allocation5 + $0xb00] sm:$0xff]  ;;  %v9118_v62 = vcombine.high %v644_v52, %v648_v55  ;;  %3372 = vmatprep.subr.bf16.mxu0 %v8990_v58  ;;  %v9117_v2 = vcombine.low %v644_v52, %v648_v55  ;;  %v209_v52 = vld [vmem:[#allocation5 + $0x1a8] sm:$0xff]  ;;  %v8816_v55 = vcombine.high %v341_v43, %v345_v47  ;;  %v10173_v58 = vpack.c.bf16 %v10145_v25, %v10145_v25 }
  0xb8   :  { %v512_v60 = vld [vmem:[#allocation5 + $0xb20] sm:$0xff]  ;;  %3373 = vmatpush2.bf16.msra.mxu0 %v8989_v1  ;;  %v201_v1 = vld [vmem:[#allocation5 + $0x168] sm:$0xff]  ;;  %v8679_v22 = vcombine.low %v205_v51, %v209_v52  ;;  %v8807_v25 = vcombine.low %v333_v54, %v337_v56 }
  0xb9   :  { %v636_v61 = vld [vmem:[#allocation5 + $0xf00] sm:$0xff]  ;;  %v8982_v3 = vcombine.high %v508_v59, %v512_v60  ;;  %3413 = vmatprep.subr.bf16.mxu1 %v9118_v62  ;;  %v8981_v10 = vcombine.low %v508_v59, %v512_v60  ;;  %v8687_v59 = vcombine.low %v213_v42, %v217_v63  ;;  %v8815_v60 = vcombine.low %v341_v43, %v345_v47  ;;  %v157_v43 = vld [vmem:[#allocation5 + $0x8] sm:$0xff] }
  0xba   :  { %v640_v0 = vld [vmem:[#allocation5 + $0xf20] sm:$0xff]  ;;  %3414 = vmatpush2.bf16.msra.mxu1 %v9117_v2  ;;  %v8808_v62 = vcombine.high %v333_v54, %v337_v56  ;;  %v325_v2 = vld [vmem:[#allocation5 + $0x548] sm:$0xff] }
  0xbb   :  { %v500_v4 = vld [vmem:[#allocation5 + $0xac0] sm:$0xff]  ;;  %v9110_v8 = vcombine.high %v636_v61, %v640_v0  ;;  %3374 = vmatprep.subr.bf16.mxu0 %v8982_v3  ;;  %v9109_v12 = vcombine.low %v636_v61, %v640_v0  ;;  %v8680_v61 = vcombine.high %v205_v51, %v209_v52  ;;  %v197_v0 = vld [vmem:[#allocation5 + $0x148] sm:$0xff] }
  0xbc   :  { %v504_v6 = vld [vmem:[#allocation5 + $0xae0] sm:$0xff]  ;;  %3375 = vmatpush2.bf16.msra.mxu0 %v8981_v10  ;;  %v329_v3 = vld [vmem:[#allocation5 + $0x568] sm:$0xff] }
  0xbd   :  { %v628_v7 = vld [vmem:[#allocation5 + $0xec0] sm:$0xff]  ;;  %v8974_v13 = vcombine.high %v500_v4, %v504_v6  ;;  %3415 = vmatprep.subr.bf16.mxu1 %v9110_v8  ;;  %v8973_v20 = vcombine.low %v500_v4, %v504_v6  ;;  %v8672_v4 = vcombine.high %v197_v0, %v201_v1  ;;  %v8800_v6 = vcombine.high %v325_v2, %v329_v3  ;;  %v193_v8 = vld [vmem:[#allocation5 + $0x128] sm:$0xff] }
  0xbe   :  { %v632_v9 = vld [vmem:[#allocation5 + $0xee0] sm:$0xff]  ;;  %3416 = vmatpush2.bf16.msra.mxu1 %v9109_v12  ;;  %v321_v10 = vld [vmem:[#allocation5 + $0x528] sm:$0xff]  ;;  %v8671_v12 = vcombine.low %v197_v0, %v201_v1 }
  0xbf   :  { %v492_v14 = vld [vmem:[#allocation5 + $0xa80] sm:$0xff]  ;;  %v9102_v18 = vcombine.high %v628_v7, %v632_v9  ;;  %3376 = vmatprep.subr.bf16.mxu0 %v8974_v13  ;;  %v9101_v21 = vcombine.low %v628_v7, %v632_v9  ;;  %v189_v7 = vld [vmem:[#allocation5 + $0x108] sm:$0xff]  ;;  %v8799_v13 = vcombine.low %v325_v2, %v329_v3 }
  0xc0   :  { %v496_v15 = vld [vmem:[#allocation5 + $0xaa0] sm:$0xff]  ;;  %3377 = vmatpush2.bf16.msra.mxu0 %v8973_v20  ;;  %v317_v9 = vld [vmem:[#allocation5 + $0x508] sm:$0xff] }
  0xc1   :  { %v620_v17 = vld [vmem:[#allocation5 + $0xe80] sm:$0xff]  ;;  %v8966_v23 = vcombine.high %v492_v14, %v496_v15  ;;  %3417 = vmatprep.subr.bf16.mxu1 %v9102_v18  ;;  %v8965_v30 = vcombine.low %v492_v14, %v496_v15  ;;  %v8664_v14 = vcombine.high %v189_v7, %v193_v8  ;;  %v8792_v15 = vcombine.high %v317_v9, %v321_v10  ;;  %v185_v18 = vld [vmem:[#allocation5 + $0xe8] sm:$0xff] }
  0xc2   :  { %v624_v19 = vld [vmem:[#allocation5 + $0xea0] sm:$0xff]  ;;  %3418 = vmatpush2.bf16.msra.mxu1 %v9101_v21  ;;  %v313_v20 = vld [vmem:[#allocation5 + $0x4e8] sm:$0xff]  ;;  %v8663_v21 = vcombine.low %v189_v7, %v193_v8 }
  0xc3   :  { %v484_v24 = vld [vmem:[#allocation5 + $0xa40] sm:$0xff]  ;;  %v9094_v28 = vcombine.high %v620_v17, %v624_v19  ;;  %3378 = vmatprep.subr.bf16.mxu0 %v8966_v23  ;;  %v9093_v31 = vcombine.low %v620_v17, %v624_v19  ;;  %v181_v17 = vld [vmem:[#allocation5 + $0xc8] sm:$0xff]  ;;  %v8791_v23 = vcombine.low %v317_v9, %v321_v10 }
  0xc4   :  { %v488_v26 = vld [vmem:[#allocation5 + $0xa60] sm:$0xff]  ;;  %3379 = vmatpush2.bf16.msra.mxu0 %v8965_v30  ;;  %v309_v19 = vld [vmem:[#allocation5 + $0x4c8] sm:$0xff] }
  0xc5   :  { %v612_v27 = vld [vmem:[#allocation5 + $0xe40] sm:$0xff]  ;;  %v8958_v32 = vcombine.high %v484_v24, %v488_v26  ;;  %3419 = vmatprep.subr.bf16.mxu1 %v9094_v28  ;;  %v8957_v39 = vcombine.low %v484_v24, %v488_v26  ;;  %v8656_v24 = vcombine.high %v181_v17, %v185_v18  ;;  %v8784_v26 = vcombine.high %v309_v19, %v313_v20  ;;  %v177_v28 = vld [vmem:[#allocation5 + $0xa8] sm:$0xff] }
  0xc6   :  { %v616_v29 = vld [vmem:[#allocation5 + $0xe60] sm:$0xff]  ;;  %3420 = vmatpush2.bf16.msra.mxu1 %v9093_v31  ;;  %v305_v30 = vld [vmem:[#allocation5 + $0x4a8] sm:$0xff]  ;;  %v8655_v31 = vcombine.low %v181_v17, %v185_v18 }
  0xc7   :  { %v476_v34 = vld [vmem:[#allocation5 + $0xa00] sm:$0xff]  ;;  %v9086_v37 = vcombine.high %v612_v27, %v616_v29  ;;  %3380 = vmatprep.subr.bf16.mxu0 %v8958_v32  ;;  %v9085_v40 = vcombine.low %v612_v27, %v616_v29  ;;  %v173_v27 = vld [vmem:[#allocation5 + $0x88] sm:$0xff]  ;;  %v8783_v32 = vcombine.low %v309_v19, %v313_v20 }
  0xc8   :  { %v480_v53 = vld [vmem:[#allocation5 + $0xa20] sm:$0xff]  ;;  %3381 = vmatpush2.bf16.msra.mxu0 %v8957_v39  ;;  %v301_v29 = vld [vmem:[#allocation5 + $0x488] sm:$0xff] }
  0xc9   :  { %v604_v35 = vld [vmem:[#allocation5 + $0xe00] sm:$0xff]  ;;  %v8950_v41 = vcombine.high %v476_v34, %v480_v53  ;;  %3421 = vmatprep.subr.bf16.mxu1 %v9086_v37  ;;  %v8949_v48 = vcombine.low %v476_v34, %v480_v53  ;;  %v8648_v34 = vcombine.high %v173_v27, %v177_v28  ;;  %v8776_v53 = vcombine.high %v301_v29, %v305_v30  ;;  %v169_v37 = vld [vmem:[#allocation5 + $0x68] sm:$0xff] }
  0xca   :  { %v608_v38 = vld [vmem:[#allocation5 + $0xe20] sm:$0xff]  ;;  %3422 = vmatpush2.bf16.msra.mxu1 %v9085_v40  ;;  %v297_v39 = vld [vmem:[#allocation5 + $0x468] sm:$0xff]  ;;  %v8647_v40 = vcombine.low %v173_v27, %v177_v28 }
  0xcb   :  { %v9078_v5 = vcombine.high %v604_v35, %v608_v38  ;;  %3382 = vmatprep.subr.bf16.mxu0 %v8950_v41  ;;  %v9077_v49 = vcombine.low %v604_v35, %v608_v38  ;;  %v165_v35 = vld [vmem:[#allocation5 + $0x48] sm:$0xff]  ;;  %v8775_v41 = vcombine.low %v301_v29, %v305_v30 }
  0xcc   :  { %3383 = vmatpush2.bf16.msra.mxu0 %v8949_v48  ;;  %v293_v38 = vld [vmem:[#allocation5 + $0x448] sm:$0xff]  ;;  %v8640_v42 = vcombine.high %v165_v35, %v169_v37 }
  0xcd   :  { %3423 = vmatprep.subr.bf16.mxu1 %v9078_v5  ;;  %3434 = vmatprep.subr.bf16.mxu0 %v8688_v50  ;;  %v8768_v63 = vcombine.high %v293_v38, %v297_v39  ;;  %v161_v5 = vld [vmem:[#allocation5 + $0x28] sm:$0xff]  ;;  %v8767_v50 = vcombine.low %v293_v38, %v297_v39 }
  0xce   :  { %3424 = vmatpush2.bf16.msra.mxu1 %v9077_v49  ;;  %v285_v47 = vld [vmem:[#allocation5 + $0x408] sm:$0xff]  ;;  %v8639_v49 = vcombine.low %v165_v35, %v169_v37  ;;  %v8632_v51 = vcombine.high %v157_v43, %v161_v5 }
  0xcf   :  { %3475 = vmatprep.subr.bf16.mxu1 %v8816_v55  ;;  %3385 = vmatmul.mubr.bf16.vlgmr.msra.gmra.mxu0 %v10169_v57  ;;  %v289_v48 = vld [vmem:[#allocation5 + $0x428] sm:$0xff] }
  0xd0   :  { %3435 = vmatpush1.bf16.msra.mxu0 %v8687_v59  ;;  %3466 = vmatprep.mubr.bf16.mxu0 %v10133_v11  ;;  %v8760_v52 = vcombine.high %v285_v47, %v289_v48  ;;  %v277_v54 = vld [vmem:[#allocation5 + $0x3c8] sm:$0xff] }
  0xd1   :  { %3426 = vmatmul.mubr.bf16.vlgmr.msra.gmra.mxu1 %v10173_v58  ;;  %3436 = vmatprep.subr.bf16.mxu0 %v8680_v61  ;;  %v281_v55 = vld [vmem:[#allocation5 + $0x3e8] sm:$0xff]  ;;  %v8759_v61 = vcombine.low %v285_v47, %v289_v48 }
  0xd2   :  { %3476 = vmatpush1.bf16.msra.mxu1 %v8815_v60  ;;  %3507 = vmatprep.mubr.bf16.mxu1 %v10138_v16  ;;  %v405_v56 = vld [vmem:[#allocation5 + $0x7c8] sm:$0xff]  ;;  %v8631_v60 = vcombine.low %v157_v43, %v161_v5 }
  0xd3   :  { %3477 = vmatprep.subr.bf16.mxu1 %v8808_v62  ;;  %v409_v59 = vld [vmem:[#allocation5 + $0x7e8] sm:$0xff]  ;;  %v8752_v62 = vcombine.high %v277_v54, %v281_v55 }
  0xd4   :  { %3437 = vmatpush1.bf16.msra.mxu0 %v8679_v22  ;;  %v8880_v0 = vcombine.high %v405_v56, %v409_v59  ;;  %v269_v1 = vld [vmem:[#allocation5 + $0x388] sm:$0xff] }
  0xd5   :  { %3438 = vmatprep.subr.bf16.mxu0 %v8672_v4  ;;  %v273_v2 = vld [vmem:[#allocation5 + $0x3a8] sm:$0xff]  ;;  %v8879_v4 = vcombine.low %v405_v56, %v409_v59 }
  0xd6   :  { %3478 = vmatpush1.bf16.msra.mxu1 %v8807_v25  ;;  %v397_v3 = vld [vmem:[#allocation5 + $0x788] sm:$0xff]  ;;  %v8751_v25 = vcombine.low %v277_v54, %v281_v55 }
  0xd7   :  { %3479 = vmatprep.subr.bf16.mxu1 %v8800_v6  ;;  %v401_v22 = vld [vmem:[#allocation5 + $0x7a8] sm:$0xff]  ;;  %v8744_v6 = vcombine.high %v269_v1, %v273_v2 }
  0xd8   :  { %3439 = vmatpush1.bf16.msra.mxu0 %v8671_v12  ;;  %v8872_v7 = vcombine.high %v397_v3, %v401_v22  ;;  %v261_v8 = vld [vmem:[#allocation5 + $0x348] sm:$0xff] }
  0xd9   :  { %3440 = vmatprep.subr.bf16.mxu0 %v8664_v14  ;;  %v265_v9 = vld [vmem:[#allocation5 + $0x368] sm:$0xff]  ;;  %v8871_v14 = vcombine.low %v397_v3, %v401_v22 }
  0xda   :  { %3480 = vmatpush1.bf16.msra.mxu1 %v8799_v13  ;;  %v389_v10 = vld [vmem:[#allocation5 + $0x748] sm:$0xff]  ;;  %v8743_v13 = vcombine.low %v269_v1, %v273_v2 }
  0xdb   :  { %3481 = vmatprep.subr.bf16.mxu1 %v8792_v15  ;;  %v393_v12 = vld [vmem:[#allocation5 + $0x768] sm:$0xff]  ;;  %v8736_v15 = vcombine.high %v261_v8, %v265_v9 }
  0xdc   :  { %3441 = vmatpush1.bf16.msra.mxu0 %v8663_v21  ;;  %v8864_v17 = vcombine.high %v389_v10, %v393_v12  ;;  %v253_v18 = vld [vmem:[#allocation5 + $0x308] sm:$0xff] }
  0xdd   :  { %3442 = vmatprep.subr.bf16.mxu0 %v8656_v24  ;;  %v257_v19 = vld [vmem:[#allocation5 + $0x328] sm:$0xff]  ;;  %v8863_v24 = vcombine.low %v389_v10, %v393_v12 }
  0xde   :  { %3482 = vmatpush1.bf16.msra.mxu1 %v8791_v23  ;;  %v381_v20 = vld [vmem:[#allocation5 + $0x708] sm:$0xff]  ;;  %v8735_v23 = vcombine.low %v261_v8, %v265_v9 }
  0xdf   :  { %3483 = vmatprep.subr.bf16.mxu1 %v8784_v26  ;;  %v385_v21 = vld [vmem:[#allocation5 + $0x728] sm:$0xff]  ;;  %v8728_v26 = vcombine.high %v253_v18, %v257_v19 }
  0xe0   :  { %3443 = vmatpush1.bf16.msra.mxu0 %v8655_v31  ;;  %v8856_v27 = vcombine.high %v381_v20, %v385_v21  ;;  %v245_v28 = vld [vmem:[#allocation5 + $0x2c8] sm:$0xff] }
  0xe1   :  { %3444 = vmatprep.subr.bf16.mxu0 %v8648_v34  ;;  %v249_v29 = vld [vmem:[#allocation5 + $0x2e8] sm:$0xff]  ;;  %v8855_v34 = vcombine.low %v381_v20, %v385_v21 }
  0xe2   :  { %3484 = vmatpush1.bf16.msra.mxu1 %v8783_v32  ;;  %v373_v30 = vld [vmem:[#allocation5 + $0x6c8] sm:$0xff]  ;;  %v8727_v32 = vcombine.low %v253_v18, %v257_v19 }
  0xe3   :  { %3485 = vmatprep.subr.bf16.mxu1 %v8776_v53  ;;  %v377_v31 = vld [vmem:[#allocation5 + $0x6e8] sm:$0xff]  ;;  %v8720_v53 = vcombine.high %v245_v28, %v249_v29 }
  0xe4   :  { %3445 = vmatpush1.bf16.msra.mxu0 %v8647_v40  ;;  %v8848_v35 = vcombine.high %v373_v30, %v377_v31  ;;  %v237_v37 = vld [vmem:[#allocation5 + $0x288] sm:$0xff] }
  0xe5   :  { %3446 = vmatprep.subr.bf16.mxu0 %v8640_v42  ;;  %v241_v38 = vld [vmem:[#allocation5 + $0x2a8] sm:$0xff]  ;;  %v8847_v42 = vcombine.low %v373_v30, %v377_v31 }
  0xe6   :  { %3486 = vmatpush1.bf16.msra.mxu1 %v8775_v41  ;;  %v365_v39 = vld [vmem:[#allocation5 + $0x688] sm:$0xff]  ;;  %v8719_v41 = vcombine.low %v245_v28, %v249_v29 }
  0xe7   :  { %3487 = vmatprep.subr.bf16.mxu1 %v8768_v63  ;;  %v369_v40 = vld [vmem:[#allocation5 + $0x6a8] sm:$0xff]  ;;  %v8712_v63 = vcombine.high %v237_v37, %v241_v38 }
  0xe8   :  { %3447 = vmatpush1.bf16.msra.mxu0 %v8639_v49  ;;  %v8840_v43 = vcombine.high %v365_v39, %v369_v40  ;;  %v229_v5 = vld [vmem:[#allocation5 + $0x248] sm:$0xff] }
  0xe9   :  { %3448 = vmatprep.subr.bf16.mxu0 %v8632_v51  ;;  %v233_v47 = vld [vmem:[#allocation5 + $0x268] sm:$0xff]  ;;  %v8839_v51 = vcombine.low %v365_v39, %v369_v40 }
  0xea   :  { %3488 = vmatpush1.bf16.msra.mxu1 %v8767_v50  ;;  %v357_v48 = vld [vmem:[#allocation5 + $0x648] sm:$0xff]  ;;  %v8711_v50 = vcombine.low %v237_v37, %v241_v38 }
  0xeb   :  { %3489 = vmatprep.subr.bf16.mxu1 %v8760_v52  ;;  %v361_v49 = vld [vmem:[#allocation5 + $0x668] sm:$0xff]  ;;  %v8704_v52 = vcombine.high %v229_v5, %v233_v47 }
  0xec   :  { %3449 = vmatpush1.bf16.msra.mxu0 %v8631_v60  ;;  %v8832_v54 = vcombine.high %v357_v48, %v361_v49  ;;  %v221_v55 = vld [vmem:[#allocation5 + $0x208] sm:$0xff] }
  0xed   :  { %3450 = vmatprep.subr.bf16.mxu0 %v8752_v62  ;;  %v225_v56 = vld [vmem:[#allocation5 + $0x228] sm:$0xff]  ;;  %v8831_v62 = vcombine.low %v357_v48, %v361_v49 }
  0xee   :  { %3490 = vmatpush1.bf16.msra.mxu1 %v8759_v61  ;;  %v349_v59 = vld [vmem:[#allocation5 + $0x608] sm:$0xff]  ;;  %v8703_v61 = vcombine.low %v229_v5, %v233_v47 }
  0xef   :  { %3491 = vmatprep.subr.bf16.mxu1 %v8880_v0  ;;  %v353_v60 = vld [vmem:[#allocation5 + $0x628] sm:$0xff]  ;;  %v8696_v0 = vcombine.high %v221_v55, %v225_v56 }
  0xf0   :  { %3451 = vmatpush2.bf16.msra.mxu0 %v8751_v25  ;;  %v8824_v1 = vcombine.high %v349_v59, %v353_v60  ;;  %v469_v2 = vld [vmem:[#allocation5 + $0x9c8] sm:$0xff] }
  0xf1   :  { %3452 = vmatprep.subr.bf16.mxu0 %v8744_v6  ;;  %v473_v3 = vld [vmem:[#allocation5 + $0x9e8] sm:$0xff]  ;;  %v8823_v6 = vcombine.low %v349_v59, %v353_v60 }
  0xf2   :  { %3492 = vmatpush2.bf16.msra.mxu1 %v8879_v4  ;;  %v597_v22 = vld [vmem:[#allocation5 + $0xdc8] sm:$0xff]  ;;  %v8695_v4 = vcombine.low %v221_v55, %v225_v56 }
  0xf3   :  { %3493 = vmatprep.subr.bf16.mxu1 %v8872_v7  ;;  %v601_v25 = vld [vmem:[#allocation5 + $0xde8] sm:$0xff]  ;;  %v8944_v7 = vcombine.high %v469_v2, %v473_v3 }
  0xf4   :  { %3453 = vmatpush2.bf16.msra.mxu0 %v8743_v13  ;;  %v9072_v8 = vcombine.high %v597_v22, %v601_v25  ;;  %v461_v9 = vld [vmem:[#allocation5 + $0x988] sm:$0xff] }
  0xf5   :  { %3454 = vmatprep.subr.bf16.mxu0 %v8736_v15  ;;  %v465_v10 = vld [vmem:[#allocation5 + $0x9a8] sm:$0xff]  ;;  %v9071_v15 = vcombine.low %v597_v22, %v601_v25 }
  0xf6   :  { %3494 = vmatpush2.bf16.msra.mxu1 %v8871_v14  ;;  %v589_v12 = vld [vmem:[#allocation5 + $0xd88] sm:$0xff]  ;;  %v8943_v14 = vcombine.low %v469_v2, %v473_v3 }
  0xf7   :  { %3495 = vmatprep.subr.bf16.mxu1 %v8864_v17  ;;  %v593_v13 = vld [vmem:[#allocation5 + $0xda8] sm:$0xff]  ;;  %v8936_v17 = vcombine.high %v461_v9, %v465_v10 }
  0xf8   :  { %3455 = vmatpush2.bf16.msra.mxu0 %v8735_v23  ;;  %v9064_v18 = vcombine.high %v589_v12, %v593_v13  ;;  %v453_v19 = vld [vmem:[#allocation5 + $0x948] sm:$0xff] }
  0xf9   :  { %3456 = vmatprep.subr.bf16.mxu0 %v8728_v26  ;;  %v457_v20 = vld [vmem:[#allocation5 + $0x968] sm:$0xff]  ;;  %v9063_v26 = vcombine.low %v589_v12, %v593_v13 }
  0xfa   :  { %3496 = vmatpush2.bf16.msra.mxu1 %v8863_v24  ;;  %v581_v21 = vld [vmem:[#allocation5 + $0xd48] sm:$0xff]  ;;  %v8935_v24 = vcombine.low %v461_v9, %v465_v10 }
  0xfb   :  { %3497 = vmatprep.subr.bf16.mxu1 %v8856_v27  ;;  %v585_v23 = vld [vmem:[#allocation5 + $0xd68] sm:$0xff]  ;;  %v8928_v27 = vcombine.high %v453_v19, %v457_v20 }
  0xfc   :  { %3457 = vmatpush2.bf16.msra.mxu0 %v8727_v32  ;;  %v9056_v28 = vcombine.high %v581_v21, %v585_v23  ;;  %v445_v29 = vld [vmem:[#allocation5 + $0x908] sm:$0xff] }
  0xfd   :  { %3458 = vmatprep.subr.bf16.mxu0 %v8720_v53  ;;  %v449_v30 = vld [vmem:[#allocation5 + $0x928] sm:$0xff]  ;;  %v9055_v53 = vcombine.low %v581_v21, %v585_v23 }
  0xfe   :  { %3498 = vmatpush2.bf16.msra.mxu1 %v8855_v34  ;;  %v573_v31 = vld [vmem:[#allocation5 + $0xd08] sm:$0xff]  ;;  %v8927_v34 = vcombine.low %v453_v19, %v457_v20 }
  0xff   :  { %3499 = vmatprep.subr.bf16.mxu1 %v8848_v35  ;;  %v577_v32 = vld [vmem:[#allocation5 + $0xd28] sm:$0xff]  ;;  %v8920_v35 = vcombine.high %v445_v29, %v449_v30 }
 0x100   :  { %3459 = vmatpush2.bf16.msra.mxu0 %v8719_v41  ;;  %v9048_v37 = vcombine.high %v573_v31, %v577_v32  ;;  %v437_v38 = vld [vmem:[#allocation5 + $0x8c8] sm:$0xff] }
 0x101   :  { %3460 = vmatprep.subr.bf16.mxu0 %v8712_v63  ;;  %v441_v39 = vld [vmem:[#allocation5 + $0x8e8] sm:$0xff]  ;;  %v9047_v63 = vcombine.low %v573_v31, %v577_v32 }
 0x102   :  { %3500 = vmatpush2.bf16.msra.mxu1 %v8847_v42  ;;  %v565_v40 = vld [vmem:[#allocation5 + $0xcc8] sm:$0xff]  ;;  %v8919_v42 = vcombine.low %v445_v29, %v449_v30 }
 0x103   :  { %3501 = vmatprep.subr.bf16.mxu1 %v8840_v43  ;;  %v569_v41 = vld [vmem:[#allocation5 + $0xce8] sm:$0xff]  ;;  %v8912_v43 = vcombine.high %v437_v38, %v441_v39 }
 0x104   :  { %3461 = vmatpush2.bf16.msra.mxu0 %v8711_v50  ;;  %v9040_v5 = vcombine.high %v565_v40, %v569_v41  ;;  %v429_v47 = vld [vmem:[#allocation5 + $0x888] sm:$0xff] }
 0x105   :  { %3462 = vmatprep.subr.bf16.mxu0 %v8704_v52  ;;  %v433_v48 = vld [vmem:[#allocation5 + $0x8a8] sm:$0xff]  ;;  %v9039_v52 = vcombine.low %v565_v40, %v569_v41 }
 0x106   :  { %3502 = vmatpush2.bf16.msra.mxu1 %v8839_v51  ;;  %v557_v49 = vld [vmem:[#allocation5 + $0xc88] sm:$0xff]  ;;  %v8911_v51 = vcombine.low %v437_v38, %v441_v39 }
 0x107   :  { %3503 = vmatprep.subr.bf16.mxu1 %v8832_v54  ;;  %v561_v50 = vld [vmem:[#allocation5 + $0xca8] sm:$0xff]  ;;  %v8904_v54 = vcombine.high %v429_v47, %v433_v48 }
 0x108   :  { %3463 = vmatpush2.bf16.msra.mxu0 %v8703_v61  ;;  %v9032_v55 = vcombine.high %v557_v49, %v561_v50  ;;  %v421_v56 = vld [vmem:[#allocation5 + $0x848] sm:$0xff] }
 0x109   :  { %3464 = vmatprep.subr.bf16.mxu0 %v8696_v0  ;;  %v425_v59 = vld [vmem:[#allocation5 + $0x868] sm:$0xff]  ;;  %v9031_v0 = vcombine.low %v557_v49, %v561_v50 }
 0x10a   :  { %3504 = vmatpush2.bf16.msra.mxu1 %v8831_v62  ;;  %v549_v60 = vld [vmem:[#allocation5 + $0xc48] sm:$0xff]  ;;  %v8903_v62 = vcombine.low %v429_v47, %v433_v48 }
 0x10b   :  { %3505 = vmatprep.subr.bf16.mxu1 %v8824_v1  ;;  %v553_v61 = vld [vmem:[#allocation5 + $0xc68] sm:$0xff]  ;;  %v8896_v1 = vcombine.high %v421_v56, %v425_v59 }
 0x10c   :  { %3465 = vmatpush2.bf16.msra.mxu0 %v8695_v4  ;;  %v9024_v2 = vcombine.high %v549_v60, %v553_v61  ;;  %v413_v3 = vld [vmem:[#allocation5 + $0x808] sm:$0xff] }
 0x10d   :  { %3516 = vmatprep.subr.bf16.mxu0 %v8944_v7  ;;  %v417_v22 = vld [vmem:[#allocation5 + $0x828] sm:$0xff]  ;;  %v9023_v7 = vcombine.low %v549_v60, %v553_v61 }
 0x10e   :  { %3506 = vmatpush2.bf16.msra.mxu1 %v8823_v6  ;;  %v541_v25 = vld [vmem:[#allocation5 + $0xc08] sm:$0xff]  ;;  %v8895_v6 = vcombine.low %v421_v56, %v425_v59 }
 0x10f   :  { %3557 = vmatprep.subr.bf16.mxu1 %v9072_v8  ;;  %3467 = vmatmul.mubr.bf16.vlgmr.msra.gmra.mxu0 %v10151_v33  ;;  %v545_v4 = vld [vmem:[#allocation5 + $0xc28] sm:$0xff]  ;;  %v8888_v8 = vcombine.high %v413_v3, %v417_v22 }
 0x110   :  { %3517 = vmatpush1.bf16.msra.mxu0 %v8943_v14  ;;  %3548 = vmatprep.mubr.bf16.mxu0 %v10159_v45  ;;  %v9016_v9 = vcombine.high %v541_v25, %v545_v4  ;;  %v533_v10 = vld [vmem:[#allocation5 + $0xbc8] sm:$0xff] }
 0x111   :  { %3508 = vmatmul.mubr.bf16.vlgmr.msra.gmra.mxu1 %v10157_v36  ;;  %3518 = vmatprep.subr.bf16.mxu0 %v8936_v17  ;;  %v537_v12 = vld [vmem:[#allocation5 + $0xbe8] sm:$0xff]  ;;  %v9015_v17 = vcombine.low %v541_v25, %v545_v4 }
 0x112   :  { %3558 = vmatpush1.bf16.msra.mxu1 %v9071_v15  ;;  %3589 = vmatprep.mubr.bf16.mxu1 %v10162_v46  ;;  %v661_v13 = vld [vmem:[#allocation5 + $0xfc8] sm:$0xff]  ;;  %v8887_v15 = vcombine.low %v413_v3, %v417_v22 }
 0x113   :  { %3559 = vmatprep.subr.bf16.mxu1 %v9064_v18  ;;  %v665_v14 = vld [vmem:[#allocation5 + $0xfe8] sm:$0xff]  ;;  %v9008_v18 = vcombine.high %v533_v10, %v537_v12 }
 0x114   :  { %3519 = vmatpush1.bf16.msra.mxu0 %v8935_v24  ;;  %v9136_v19 = vcombine.high %v661_v13, %v665_v14  ;;  %v525_v20 = vld [vmem:[#allocation5 + $0xb88] sm:$0xff] }
 0x115   :  { %3520 = vmatprep.subr.bf16.mxu0 %v8928_v27  ;;  %v529_v21 = vld [vmem:[#allocation5 + $0xba8] sm:$0xff]  ;;  %v9135_v27 = vcombine.low %v661_v13, %v665_v14 }
 0x116   :  { %3560 = vmatpush1.bf16.msra.mxu1 %v9063_v26  ;;  %v653_v23 = vld [vmem:[#allocation5 + $0xf88] sm:$0xff]  ;;  %v9007_v26 = vcombine.low %v533_v10, %v537_v12 }
 0x117   :  { %3561 = vmatprep.subr.bf16.mxu1 %v9056_v28  ;;  %v657_v24 = vld [vmem:[#allocation5 + $0xfa8] sm:$0xff]  ;;  %v9000_v28 = vcombine.high %v525_v20, %v529_v21 }
 0x118   :  { %3521 = vmatpush1.bf16.msra.mxu0 %v8927_v34  ;;  %v9128_v29 = vcombine.high %v653_v23, %v657_v24  ;;  %v517_v30 = vld [vmem:[#allocation5 + $0xb48] sm:$0xff] }
 0x119   :  { %3522 = vmatprep.subr.bf16.mxu0 %v8920_v35  ;;  %v521_v31 = vld [vmem:[#allocation5 + $0xb68] sm:$0xff]  ;;  %v9127_v35 = vcombine.low %v653_v23, %v657_v24  ;;  %v218_v23 = vld [vmem:[#allocation5 + $0x1f0] sm:$0xff] }
 0x11a   :  { %3562 = vmatpush1.bf16.msra.mxu1 %v9055_v53  ;;  %v645_v32 = vld [vmem:[#allocation5 + $0xf48] sm:$0xff]  ;;  %v8999_v53 = vcombine.low %v525_v20, %v529_v21  ;;  %v214_v21 = vld [vmem:[#allocation5 + $0x1d0] sm:$0xff] }
 0x11b   :  { %3563 = vmatprep.subr.bf16.mxu1 %v9048_v37  ;;  %v649_v34 = vld [vmem:[#allocation5 + $0xf68] sm:$0xff]  ;;  %v8992_v37 = vcombine.high %v517_v30, %v521_v31  ;;  %v342_v24 = vld [vmem:[#allocation5 + $0x5d0] sm:$0xff] }
 0x11c   :  { %3523 = vmatpush1.bf16.msra.mxu0 %v8919_v42  ;;  %v9120_v38 = vcombine.high %v645_v32, %v649_v34  ;;  %v509_v39 = vld [vmem:[#allocation5 + $0xb08] sm:$0xff] }
 0x11d   :  { %3524 = vmatprep.subr.bf16.mxu0 %v8912_v43  ;;  %v513_v40 = vld [vmem:[#allocation5 + $0xb28] sm:$0xff]  ;;  %v9119_v43 = vcombine.low %v645_v32, %v649_v34  ;;  %v676_v34 = vsub.s32 1, %v10120_v44 }
 0x11e   :  { %3564 = vmatpush1.bf16.msra.mxu1 %v9047_v63  ;;  %v637_v41 = vld [vmem:[#allocation5 + $0xf08] sm:$0xff]  ;;  %v8991_v63 = vcombine.low %v517_v30, %v521_v31  ;;  %v10184_v30 = vld [vmem:[#allocation7] sm:$0xff]  ;;  %v8690_v31 = vcombine.high %v214_v21, %v218_v23 }
 0x11f   :  { %3565 = vmatprep.subr.bf16.mxu1 %v9040_v5  ;;  %v641_v42 = vld [vmem:[#allocation5 + $0xf28] sm:$0xff]  ;;  %v8984_v5 = vcombine.high %v509_v39, %v513_v40 }
 0x120   :  { %3525 = vmatpush1.bf16.msra.mxu0 %v8911_v51  ;;  %v9112_v47 = vcombine.high %v637_v41, %v641_v42  ;;  %v501_v48 = vld [vmem:[#allocation5 + $0xac8] sm:$0xff] }
 0x121   :  { %3526 = vmatprep.subr.bf16.mxu0 %v8904_v54  ;;  %v505_v49 = vld [vmem:[#allocation5 + $0xae8] sm:$0xff]  ;;  %v9111_v54 = vcombine.low %v637_v41, %v641_v42 }
 0x122   :  { %3566 = vmatpush1.bf16.msra.mxu1 %v9039_v52  ;;  %v629_v50 = vld [vmem:[#allocation5 + $0xec8] sm:$0xff]  ;;  %v8983_v52 = vcombine.low %v509_v39, %v513_v40  ;;  %v8689_v40 = vcombine.low %v214_v21, %v218_v23 }
 0x123   :  { %3567 = vmatprep.subr.bf16.mxu1 %v9032_v55  ;;  %v633_v51 = vld [vmem:[#allocation5 + $0xee8] sm:$0xff]  ;;  %v8976_v55 = vcombine.high %v501_v48, %v505_v49 }
 0x124   :  { %3527 = vmatpush1.bf16.msra.mxu0 %v8903_v62  ;;  %v9104_v56 = vcombine.high %v629_v50, %v633_v51  ;;  %v493_v59 = vld [vmem:[#allocation5 + $0xa88] sm:$0xff] }
 0x125   :  { %3528 = vmatprep.subr.bf16.mxu0 %v8896_v1  ;;  %v497_v60 = vld [vmem:[#allocation5 + $0xaa8] sm:$0xff]  ;;  %v9103_v1 = vcombine.low %v629_v50, %v633_v51  ;;  %v330_v50 = vld [vmem:[#allocation5 + $0x570] sm:$0xff] }
 0x126   :  { %3568 = vmatpush1.bf16.msra.mxu1 %v9031_v0  ;;  %v621_v61 = vld [vmem:[#allocation5 + $0xe88] sm:$0xff]  ;;  %v8975_v0 = vcombine.low %v501_v48, %v505_v49  ;;  %v326_v49 = vld [vmem:[#allocation5 + $0x550] sm:$0xff] }
 0x127   :  { %3569 = vmatprep.subr.bf16.mxu1 %v9024_v2  ;;  %v625_v62 = vld [vmem:[#allocation5 + $0xea8] sm:$0xff]  ;;  %v8968_v2 = vcombine.high %v493_v59, %v497_v60 }
 0x128   :  { %3529 = vmatpush1.bf16.msra.mxu0 %v8895_v6  ;;  %v9096_v3 = vcombine.high %v621_v61, %v625_v62  ;;  %v485_v22 = vld [vmem:[#allocation5 + $0xa48] sm:$0xff] }
 0x129   :  { %3530 = vmatprep.subr.bf16.mxu0 %v8888_v8  ;;  %v489_v25 = vld [vmem:[#allocation5 + $0xa68] sm:$0xff]  ;;  %v9095_v8 = vcombine.low %v621_v61, %v625_v62 }
 0x12a   :  { %3570 = vmatpush1.bf16.msra.mxu1 %v9023_v7  ;;  %v613_v4 = vld [vmem:[#allocation5 + $0xe48] sm:$0xff]  ;;  %v8967_v7 = vcombine.low %v493_v59, %v497_v60 }
 0x12b   :  { %3571 = vmatprep.subr.bf16.mxu1 %v9016_v9  ;;  %v617_v6 = vld [vmem:[#allocation5 + $0xe68] sm:$0xff]  ;;  %v8960_v9 = vcombine.high %v485_v22, %v489_v25 }
 0x12c   :  { %3531 = vmatpush1.bf16.msra.mxu0 %v8887_v15  ;;  %v9088_v10 = vcombine.high %v613_v4, %v617_v6  ;;  %v477_v12 = vld [vmem:[#allocation5 + $0xa08] sm:$0xff] }
 0x12d   :  { %3532 = vmatprep.subr.bf16.mxu0 %v9008_v18  ;;  %v481_v13 = vld [vmem:[#allocation5 + $0xa28] sm:$0xff]  ;;  %v9087_v18 = vcombine.low %v613_v4, %v617_v6 }
 0x12e   :  { %3572 = vmatpush1.bf16.msra.mxu1 %v9015_v17  ;;  %v605_v14 = vld [vmem:[#allocation5 + $0xe08] sm:$0xff]  ;;  %v8959_v17 = vcombine.low %v485_v22, %v489_v25  ;;  %v318_v22 = vld [vmem:[#allocation5 + $0x510] sm:$0xff] }
 0x12f   :  { %3573 = vmatprep.subr.bf16.mxu1 %v9136_v19  ;;  %v609_v15 = vld [vmem:[#allocation5 + $0xe28] sm:$0xff]  ;;  %v8952_v19 = vcombine.high %v477_v12, %v481_v13  ;;  %v322_v25 = vld [vmem:[#allocation5 + $0x530] sm:$0xff] }
 0x130   :  { %3533 = vmatpush2.bf16.msra.mxu0 %v9007_v26  ;;  %v9080_v20 = vcombine.high %v605_v14, %v609_v15  ;;  %v346_v26 = vld [vmem:[#allocation5 + $0x5f0] sm:$0xff] }
 0x131   :  { %3534 = vmatprep.subr.bf16.mxu0 %v9000_v28  ;;  %v672_v28 = vsub.s32 0, %v10120_v44  ;;  %v8818_v32 = vcombine.high %v342_v24, %v346_v26  ;;  %v8817_v41 = vcombine.low %v342_v24, %v346_v26  ;;  %v174_v24 = vld [vmem:[#allocation5 + $0x90] sm:$0xff] }
 0x132   :  { %3574 = vmatpush2.bf16.msra.mxu1 %v9135_v27  ;;  %v8951_v27 = vcombine.low %v477_v12, %v481_v13  ;;  %v8794_v13 = vcombine.high %v318_v22, %v322_v25  ;;  %v178_v26 = vld [vmem:[#allocation5 + $0xb0] sm:$0xff] }
 0x133   :  { %3575 = vmatprep.subr.bf16.mxu1 %v9128_v29  ;;  %v9079_v29 = vcombine.low %v605_v14, %v609_v15  ;;  %v673_v39 = vrot.slane %v10184_v30, %v672_v28  ;;  %v182_v14 = vld [vmem:[#allocation5 + $0xd0] sm:$0xff] }
 0x134   :  { %3535 = vmatpush2.bf16.msra.mxu0 %v8999_v53  ;;  %v206_v53 = vld [vmem:[#allocation5 + $0x190] sm:$0xff] }
 0x135   :  { %3536 = vmatprep.subr.bf16.mxu0 %v8992_v37  ;;  %v334_v37 = vld [vmem:[#allocation5 + $0x590] sm:$0xff] }
 0x136   :  { %3576 = vmatpush2.bf16.msra.mxu1 %v9127_v35  ;;  %v210_v35 = vld [vmem:[#allocation5 + $0x1b0] sm:$0xff] }
 0x137   :  { %3577 = vmatprep.subr.bf16.mxu1 %v9120_v38  ;;  %v338_v38 = vld [vmem:[#allocation5 + $0x5b0] sm:$0xff]  ;;  %v8682_v42 = vcombine.high %v206_v53, %v210_v35 }
 0x138   :  { %3537 = vmatpush2.bf16.msra.mxu0 %v8991_v63  ;;  %v677_v63 = vrot.slane %v10184_v30, %v676_v34  ;;  %v186_v15 = vld [vmem:[#allocation5 + $0xf0] sm:$0xff] }
 0x139   :  { %3538 = vmatprep.subr.bf16.mxu0 %v8984_v5  ;;  %v198_v5 = vld [vmem:[#allocation5 + $0x150] sm:$0xff]  ;;  %v8658_v21 = vcombine.high %v182_v14, %v186_v15 }
 0x13a   :  { %3578 = vmatpush2.bf16.msra.mxu1 %v9119_v43  ;;  %v8810_v43 = vcombine.high %v334_v37, %v338_v38 }
 0x13b   :  { %3579 = vmatprep.subr.bf16.mxu1 %v9112_v47  ;;  %v202_v47 = vld [vmem:[#allocation5 + $0x170] sm:$0xff] }
 0x13c   :  { %3539 = vmatpush2.bf16.msra.mxu0 %v8983_v52  ;;  %v8674_v59 = vcombine.high %v198_v5, %v202_v47 }
 0x13d   :  { %3540 = vmatprep.subr.bf16.mxu0 %v8976_v55 }
 0x13e   :  { %3580 = vmatpush2.bf16.msra.mxu1 %v9111_v54  ;;  %v8681_v54 = vcombine.low %v206_v53, %v210_v35  ;;  %v8650_v53 = vcombine.high %v174_v24, %v178_v26 }
 0x13f   :  { %3581 = vmatprep.subr.bf16.mxu1 %v9104_v56  ;;  %v8809_v56 = vcombine.low %v334_v37, %v338_v38  ;;  %v166_v37 = vld [vmem:[#allocation5 + $0x50] sm:$0xff] }
 0x140   :  { %3541 = vmatpush2.bf16.msra.mxu0 %v8975_v0  ;;  %v8802_v0 = vcombine.high %v326_v49, %v330_v50  ;;  %v170_v38 = vld [vmem:[#allocation5 + $0x70] sm:$0xff] }
 0x141   :  { %3542 = vmatprep.subr.bf16.mxu0 %v8968_v2  ;;  %v194_v2 = vld [vmem:[#allocation5 + $0x130] sm:$0xff] }
 0x142   :  { %3582 = vmatpush2.bf16.msra.mxu1 %v9103_v1  ;;  %v190_v1 = vld [vmem:[#allocation5 + $0x110] sm:$0xff] }
 0x143   :  { %3583 = vmatprep.subr.bf16.mxu1 %v9096_v3 }
 0x144   :  { %3543 = vmatpush2.bf16.msra.mxu0 %v8967_v7  ;;  %v8673_v7 = vcombine.low %v198_v5, %v202_v47  ;;  %v158_v5 = vld [vmem:[#allocation5 + $0x10] sm:$0xff] }
 0x145   :  { %3544 = vmatprep.subr.bf16.mxu0 %v8960_v9  ;;  %v8801_v9 = vcombine.low %v326_v49, %v330_v50  ;;  %v162_v47 = vld [vmem:[#allocation5 + $0x30] sm:$0xff]  ;;  %v8641_v50 = vcombine.low %v166_v37, %v170_v38 }
 0x146   :  { %3584 = vmatpush2.bf16.msra.mxu1 %v9095_v8  ;;  %v290_v49 = vld [vmem:[#allocation5 + $0x430] sm:$0xff] }
 0x147   :  { %3585 = vmatprep.subr.bf16.mxu1 %v9088_v10  ;;  %v8666_v10 = vcombine.high %v190_v1, %v194_v2 }
 0x148   :  { %3545 = vmatpush2.bf16.msra.mxu0 %v8959_v17  ;;  %v310_v17 = vld [vmem:[#allocation5 + $0x4d0] sm:$0xff] }
 0x149   :  { %3546 = vmatprep.subr.bf16.mxu0 %v8952_v19  ;;  %v8665_v19 = vcombine.low %v190_v1, %v194_v2 }
 0x14a   :  { %3586 = vmatpush2.bf16.msra.mxu1 %v9087_v18  ;;  %v314_v18 = vld [vmem:[#allocation5 + $0x4f0] sm:$0xff] }
 0x14b   :  { %3587 = vmatprep.subr.bf16.mxu1 %v9080_v20  ;;  %v8793_v20 = vcombine.low %v318_v22, %v322_v25  ;;  %v8786_v23 = vcombine.high %v310_v17, %v314_v18  ;;  %v274_v22 = vld [vmem:[#allocation5 + $0x3b0] sm:$0xff] }
 0x14c   :  { %3547 = vmatpush2.bf16.msra.mxu0 %v8951_v27  ;;  %v302_v27 = vld [vmem:[#allocation5 + $0x490] sm:$0xff] }
 0x14d   :  { %3598 = vmatprep.subr.bf16.mxu0 %v8690_v31  ;;  %v8657_v31 = vcombine.low %v182_v14, %v186_v15  ;;  %v398_v25 = vld [vmem:[#allocation5 + $0x790] sm:$0xff] }
 0x14e   :  { %3588 = vmatpush2.bf16.msra.mxu1 %v9079_v29  ;;  %v306_v29 = vld [vmem:[#allocation5 + $0x4b0] sm:$0xff] }
 0x14f   :  { %3639 = vmatprep.subr.bf16.mxu1 %v8818_v32  ;;  %v3304_v48 = vpop.f32.mrf.mxu0  ;;  %3549 = vmatmul.mubr.bf16.vlgmr.msra.gmra.mxu0 %v10169_v57  ;;  %v8785_v32 = vcombine.low %v310_v17, %v314_v18  ;;  %v8778_v35 = vcombine.high %v302_v27, %v306_v29  ;;  %v390_v14 = vld [vmem:[#allocation5 + $0x750] sm:$0xff] }
 0x150   :  { %v3305_v51 = vadd.f32 %v3304_v48, %v673_v39  ;;  %3599 = vmatpush1.bf16.msra.mxu0 %v8689_v40  ;;  %3630 = vmatprep.mubr.bf16.mxu0 %v10133_v11  ;;  %v294_v39 = vld [vmem:[#allocation5 + $0x450] sm:$0xff] }
 0x151   :  { %v3345_v52 = vpop.f32.mrf.mxu1  ;;  %3590 = vmatmul.mubr.bf16.vlgmr.msra.gmra.mxu1 %v10173_v58  ;;  %v3306_v55 = vpop.f32.mrf.mxu0  ;;  %3600 = vmatprep.subr.bf16.mxu0 %v8682_v42  ;;  %v298_v40 = vld [vmem:[#allocation5 + $0x470] sm:$0xff]  ;;  %v8777_v42 = vcombine.low %v302_v27, %v306_v29 }
 0x152   :  { %3640 = vmatpush1.bf16.msra.mxu1 %v8817_v41  ;;  %v10195_v60 = vadd.f32 %v3345_v52, %v3305_v51  ;;  %v3307_v61 = vadd.f32 %v3306_v55, %v677_v63  ;;  %3671 = vmatprep.mubr.bf16.mxu1 %v10138_v16  ;;  %v8649_v41 = vcombine.low %v174_v24, %v178_v26  ;;  %v286_v48 = vld [vmem:[#allocation5 + $0x410] sm:$0xff] }
 0x153   :  { %v3347_v62 = vpop.f32.mrf.mxu1  ;;  %3641 = vmatprep.subr.bf16.mxu1 %v8810_v43  ;;  %v3308_v3 = vpop.f32.mrf.mxu0  ;;  %v8642_v63 = vcombine.high %v166_v37, %v170_v38  ;;  %v8770_v43 = vcombine.high %v294_v39, %v298_v40  ;;  %v8769_v51 = vcombine.low %v294_v39, %v298_v40  ;;  %v8634_v52 = vcombine.high %v158_v5, %v162_v47  ;;  %v278_v55 = vld [vmem:[#allocation5 + $0x3d0] sm:$0xff] }
 0x154   :  { %v10199_v4 = vadd.f32 %v3347_v62, %v3307_v61  ;;  %3601 = vmatpush1.bf16.msra.mxu0 %v8681_v54  ;;  %v8762_v54 = vcombine.high %v286_v48, %v290_v49  ;;  %v410_v61 = vld [vmem:[#allocation5 + $0x7f0] sm:$0xff]  ;;  %v8633_v62 = vcombine.low %v158_v5, %v162_v47 }
 0x155   :  { %v3349_v6 = vpop.f32.mrf.mxu1  ;;  %v3309_v8 = vpop.f32.mrf.mxu0  ;;  %3602 = vmatprep.subr.bf16.mxu0 %v8674_v59  ;;  %v406_v59 = vld [vmem:[#allocation5 + $0x7d0] sm:$0xff] }
 0x156   :  { %3642 = vmatpush1.bf16.msra.mxu1 %v8809_v56  ;;  %v282_v56 = vld [vmem:[#allocation5 + $0x3f0] sm:$0xff]  ;;  %v8882_v2 = vcombine.high %v406_v59, %v410_v61  ;;  %v8881_v8 = vcombine.low %v406_v59, %v410_v61 }
 0x157   :  { %v3350_v12 = vpop.f32.mrf.mxu1  ;;  %3643 = vmatprep.subr.bf16.mxu1 %v8802_v0  ;;  %v8761_v0 = vcombine.low %v286_v48, %v290_v49  ;;  %v8754_v1 = vcombine.high %v278_v55, %v282_v56  ;;  %v270_v3 = vld [vmem:[#allocation5 + $0x390] sm:$0xff] }
 0x158   :  { %3603 = vmatpush1.bf16.msra.mxu0 %v8673_v7  ;;  %v402_v6 = vld [vmem:[#allocation5 + $0x7b0] sm:$0xff]  ;;  %v8753_v7 = vcombine.low %v278_v55, %v282_v56  ;;  %v8745_v17 = vcombine.low %v270_v3, %v274_v22 }
 0x159   :  { %3604 = vmatprep.subr.bf16.mxu0 %v8666_v10  ;;  %v8874_v10 = vcombine.high %v398_v25, %v402_v6  ;;  %v262_v12 = vld [vmem:[#allocation5 + $0x350] sm:$0xff]  ;;  %v8873_v18 = vcombine.low %v398_v25, %v402_v6 }
 0x15a   :  { %3644 = vmatpush1.bf16.msra.mxu1 %v8801_v9  ;;  %v8746_v9 = vcombine.high %v270_v3, %v274_v22  ;;  %v394_v15 = vld [vmem:[#allocation5 + $0x770] sm:$0xff] }
 0x15b   :  { %3645 = vmatprep.subr.bf16.mxu1 %v8794_v13  ;;  %v266_v13 = vld [vmem:[#allocation5 + $0x370] sm:$0xff]  ;;  %v8865_v29 = vcombine.low %v390_v14, %v394_v15 }
 0x15c   :  { %3605 = vmatpush1.bf16.msra.mxu0 %v8665_v19  ;;  %v8738_v19 = vcombine.high %v262_v12, %v266_v13  ;;  %v382_v24 = vld [vmem:[#allocation5 + $0x710] sm:$0xff]  ;;  %v8737_v27 = vcombine.low %v262_v12, %v266_v13 }
 0x15d   :  { %3606 = vmatprep.subr.bf16.mxu0 %v8658_v21  ;;  %v254_v21 = vld [vmem:[#allocation5 + $0x310] sm:$0xff] }
 0x15e   :  { %3646 = vmatpush1.bf16.msra.mxu1 %v8793_v20  ;;  %v8866_v20 = vcombine.high %v390_v14, %v394_v15  ;;  %v386_v26 = vld [vmem:[#allocation5 + $0x730] sm:$0xff] }
 0x15f   :  { %3647 = vmatprep.subr.bf16.mxu1 %v8786_v23  ;;  %v258_v23 = vld [vmem:[#allocation5 + $0x330] sm:$0xff]  ;;  %v8857_v40 = vcombine.low %v382_v24, %v386_v26 }
 0x160   :  { %3607 = vmatpush1.bf16.msra.mxu0 %v8657_v31  ;;  %v8730_v31 = vcombine.high %v254_v21, %v258_v23  ;;  %v374_v37 = vld [vmem:[#allocation5 + $0x6d0] sm:$0xff]  ;;  %v8729_v39 = vcombine.low %v254_v21, %v258_v23 }
 0x161   :  { %3608 = vmatprep.subr.bf16.mxu0 %v8650_v53  ;;  %v246_v53 = vld [vmem:[#allocation5 + $0x2d0] sm:$0xff] }
 0x162   :  { %3648 = vmatpush1.bf16.msra.mxu1 %v8785_v32  ;;  %v8858_v32 = vcombine.high %v382_v24, %v386_v26  ;;  %v378_v38 = vld [vmem:[#allocation5 + $0x6f0] sm:$0xff] }
 0x163   :  { %3649 = vmatprep.subr.bf16.mxu1 %v8778_v35  ;;  %v250_v35 = vld [vmem:[#allocation5 + $0x2f0] sm:$0xff]  ;;  %v8849_v49 = vcombine.low %v374_v37, %v378_v38 }
 0x164   :  { %3609 = vmatpush1.bf16.msra.mxu0 %v8649_v41  ;;  %v8722_v41 = vcombine.high %v246_v53, %v250_v35  ;;  %v366_v5 = vld [vmem:[#allocation5 + $0x690] sm:$0xff]  ;;  %v8721_v48 = vcombine.low %v246_v53, %v250_v35 }
 0x165   :  { %3610 = vmatprep.subr.bf16.mxu0 %v8642_v63  ;;  %v238_v63 = vld [vmem:[#allocation5 + $0x290] sm:$0xff] }
 0x166   :  { %3650 = vmatpush1.bf16.msra.mxu1 %v8777_v42  ;;  %v8850_v42 = vcombine.high %v374_v37, %v378_v38  ;;  %v370_v47 = vld [vmem:[#allocation5 + $0x6b0] sm:$0xff] }
 0x167   :  { %3651 = vmatprep.subr.bf16.mxu1 %v8770_v43  ;;  %v242_v43 = vld [vmem:[#allocation5 + $0x2b0] sm:$0xff]  ;;  %v8841_v61 = vcombine.low %v366_v5, %v370_v47 }
 0x168   :  { %3611 = vmatpush1.bf16.msra.mxu0 %v8641_v50  ;;  %v8714_v50 = vcombine.high %v238_v63, %v242_v43  ;;  %v358_v55 = vld [vmem:[#allocation5 + $0x650] sm:$0xff]  ;;  %v8713_v59 = vcombine.low %v238_v63, %v242_v43 }
 0x169   :  { %3612 = vmatprep.subr.bf16.mxu0 %v8634_v52  ;;  %v230_v52 = vld [vmem:[#allocation5 + $0x250] sm:$0xff] }
 0x16a   :  { %3652 = vmatpush1.bf16.msra.mxu1 %v8769_v51  ;;  %v8842_v51 = vcombine.high %v366_v5, %v370_v47  ;;  %v362_v56 = vld [vmem:[#allocation5 + $0x670] sm:$0xff] }
 0x16b   :  { %3653 = vmatprep.subr.bf16.mxu1 %v8762_v54  ;;  %v234_v54 = vld [vmem:[#allocation5 + $0x270] sm:$0xff]  ;;  %v8833_v6 = vcombine.low %v358_v55, %v362_v56 }
 0x16c   :  { %3613 = vmatpush1.bf16.msra.mxu0 %v8633_v62  ;;  %v8706_v62 = vcombine.high %v230_v52, %v234_v54  ;;  %v350_v3 = vld [vmem:[#allocation5 + $0x610] sm:$0xff]  ;;  %v8705_v25 = vcombine.low %v230_v52, %v234_v54 }
 0x16d   :  { %3614 = vmatprep.subr.bf16.mxu0 %v8754_v1  ;;  %v222_v1 = vld [vmem:[#allocation5 + $0x210] sm:$0xff] }
 0x16e   :  { %3654 = vmatpush1.bf16.msra.mxu1 %v8761_v0  ;;  %v8834_v0 = vcombine.high %v358_v55, %v362_v56  ;;  %v354_v22 = vld [vmem:[#allocation5 + $0x630] sm:$0xff] }
 0x16f   :  { %3655 = vmatprep.subr.bf16.mxu1 %v8882_v2  ;;  %v226_v2 = vld [vmem:[#allocation5 + $0x230] sm:$0xff]  ;;  %v8825_v15 = vcombine.low %v350_v3, %v354_v22 }
 0x170   :  { %3615 = vmatpush2.bf16.msra.mxu0 %v8753_v7  ;;  %v8698_v7 = vcombine.high %v222_v1, %v226_v2  ;;  %v598_v12 = vld [vmem:[#allocation5 + $0xdd0] sm:$0xff]  ;;  %v8697_v14 = vcombine.low %v222_v1, %v226_v2 }
 0x171   :  { %3616 = vmatprep.subr.bf16.mxu0 %v8746_v9  ;;  %v470_v9 = vld [vmem:[#allocation5 + $0x9d0] sm:$0xff] }
 0x172   :  { %3656 = vmatpush2.bf16.msra.mxu1 %v8881_v8  ;;  %v8826_v8 = vcombine.high %v350_v3, %v354_v22  ;;  %v602_v13 = vld [vmem:[#allocation5 + $0xdf0] sm:$0xff] }
 0x173   :  { %3657 = vmatprep.subr.bf16.mxu1 %v8874_v10  ;;  %v474_v10 = vld [vmem:[#allocation5 + $0x9f0] sm:$0xff]  ;;  %v9073_v26 = vcombine.low %v598_v12, %v602_v13 }
 0x174   :  { %3617 = vmatpush2.bf16.msra.mxu0 %v8745_v17  ;;  %v8946_v17 = vcombine.high %v470_v9, %v474_v10  ;;  %v590_v21 = vld [vmem:[#allocation5 + $0xd90] sm:$0xff]  ;;  %v8945_v24 = vcombine.low %v470_v9, %v474_v10 }
 0x175   :  { %3618 = vmatprep.subr.bf16.mxu0 %v8738_v19  ;;  %v462_v19 = vld [vmem:[#allocation5 + $0x990] sm:$0xff] }
 0x176   :  { %3658 = vmatpush2.bf16.msra.mxu1 %v8873_v18  ;;  %v9074_v18 = vcombine.high %v598_v12, %v602_v13  ;;  %v594_v23 = vld [vmem:[#allocation5 + $0xdb0] sm:$0xff] }
 0x177   :  { %3659 = vmatprep.subr.bf16.mxu1 %v8866_v20  ;;  %v466_v20 = vld [vmem:[#allocation5 + $0x9b0] sm:$0xff] }
 0x178   :  { %3619 = vmatpush2.bf16.msra.mxu0 %v8737_v27  ;;  %v8938_v27 = vcombine.high %v462_v19, %v466_v20  ;;  %v582_v35 = vld [vmem:[#allocation5 + $0xd50] sm:$0xff] }
 0x179   :  { %3620 = vmatprep.subr.bf16.mxu0 %v8730_v31  ;;  %v454_v31 = vld [vmem:[#allocation5 + $0x950] sm:$0xff] }
 0x17a   :  { %3660 = vmatpush2.bf16.msra.mxu1 %v8865_v29  ;;  %v9066_v29 = vcombine.high %v590_v21, %v594_v23  ;;  %v586_v37 = vld [vmem:[#allocation5 + $0xd70] sm:$0xff] }
 0x17b   :  { %3661 = vmatprep.subr.bf16.mxu1 %v8858_v32  ;;  %v458_v32 = vld [vmem:[#allocation5 + $0x970] sm:$0xff] }
 0x17c   :  { %3621 = vmatpush2.bf16.msra.mxu0 %v8729_v39  ;;  %v8930_v63 = vcombine.high %v454_v31, %v458_v32  ;;  %v578_v52 = vld [vmem:[#allocation5 + $0xd30] sm:$0xff]  ;;  %v8929_v56 = vcombine.low %v454_v31, %v458_v32 }
 0x17d   :  { %3622 = vmatprep.subr.bf16.mxu0 %v8722_v41  ;;  %v438_v1 = vld [vmem:[#allocation5 + $0x8d0] sm:$0xff] }
 0x17e   :  { %3662 = vmatpush2.bf16.msra.mxu1 %v8857_v40  ;;  %v8937_v40 = vcombine.low %v462_v19, %v466_v20  ;;  %v442_v2 = vld [vmem:[#allocation5 + $0x8f0] sm:$0xff] }
 0x17f   :  { %3663 = vmatprep.subr.bf16.mxu1 %v8850_v42  ;;  %v9065_v42 = vcombine.low %v590_v21, %v594_v23  ;;  %v566_v3 = vld [vmem:[#allocation5 + $0xcd0] sm:$0xff] }
 0x180   :  { %3623 = vmatpush2.bf16.msra.mxu0 %v8721_v48  ;;  %v9058_v48 = vcombine.high %v582_v35, %v586_v37  ;;  %v570_v22 = vld [vmem:[#allocation5 + $0xcf0] sm:$0xff] }
 0x181   :  { %3624 = vmatprep.subr.bf16.mxu0 %v8714_v50  ;;  %v450_v50 = vld [vmem:[#allocation5 + $0x930] sm:$0xff] }
 0x182   :  { %3664 = vmatpush2.bf16.msra.mxu1 %v8849_v49  ;;  %v446_v49 = vld [vmem:[#allocation5 + $0x910] sm:$0xff] }
 0x183   :  { %3665 = vmatprep.subr.bf16.mxu1 %v8842_v51  ;;  %v574_v51 = vld [vmem:[#allocation5 + $0xd10] sm:$0xff] }
 0x184   :  { %3625 = vmatpush2.bf16.msra.mxu0 %v8713_v59  ;;  %v430_v9 = vld [vmem:[#allocation5 + $0x890] sm:$0xff] }
 0x185   :  { %3626 = vmatprep.subr.bf16.mxu0 %v8706_v62  ;;  %v434_v10 = vld [vmem:[#allocation5 + $0x8b0] sm:$0xff] }
 0x186   :  { %3666 = vmatpush2.bf16.msra.mxu1 %v8841_v61  ;;  %v8922_v61 = vcombine.high %v446_v49, %v450_v50  ;;  %v558_v12 = vld [vmem:[#allocation5 + $0xc90] sm:$0xff] }
 0x187   :  { %3667 = vmatprep.subr.bf16.mxu1 %v8834_v0  ;;  %v9050_v0 = vcombine.high %v574_v51, %v578_v52  ;;  %v562_v13 = vld [vmem:[#allocation5 + $0xcb0] sm:$0xff] }
 0x188   :  { %3627 = vmatpush2.bf16.msra.mxu0 %v8705_v25  ;;  %v8921_v25 = vcombine.low %v446_v49, %v450_v50  ;;  %v422_v19 = vld [vmem:[#allocation5 + $0x850] sm:$0xff] }
 0x189   :  { %3628 = vmatprep.subr.bf16.mxu0 %v8698_v7  ;;  %v8914_v7 = vcombine.high %v438_v1, %v442_v2  ;;  %v426_v20 = vld [vmem:[#allocation5 + $0x870] sm:$0xff] }
 0x18a   :  { %3668 = vmatpush2.bf16.msra.mxu1 %v8833_v6  ;;  %v9049_v6 = vcombine.low %v574_v51, %v578_v52  ;;  %v550_v21 = vld [vmem:[#allocation5 + $0xc50] sm:$0xff] }
 0x18b   :  { %3669 = vmatprep.subr.bf16.mxu1 %v8826_v8  ;;  %v9042_v8 = vcombine.high %v566_v3, %v570_v22  ;;  %v554_v23 = vld [vmem:[#allocation5 + $0xc70] sm:$0xff] }
 0x18c   :  { %3629 = vmatpush2.bf16.msra.mxu0 %v8697_v14  ;;  %v8913_v14 = vcombine.low %v438_v1, %v442_v2  ;;  %v414_v31 = vld [vmem:[#allocation5 + $0x810] sm:$0xff] }
 0x18d   :  { %3680 = vmatprep.subr.bf16.mxu0 %v8946_v17  ;;  %v8906_v17 = vcombine.high %v430_v9, %v434_v10  ;;  %v418_v32 = vld [vmem:[#allocation5 + $0x830] sm:$0xff] }
 0x18e   :  { %3670 = vmatpush2.bf16.msra.mxu1 %v8825_v15  ;;  %v9041_v15 = vcombine.low %v566_v3, %v570_v22  ;;  %v530_v51 = vld [vmem:[#allocation5 + $0xbb0] sm:$0xff] }
 0x18f   :  { %3721 = vmatprep.subr.bf16.mxu1 %v9074_v18  ;;  %v3386_v53 = vpop.f32.mrf.mxu0  ;;  %3631 = vmatmul.mubr.bf16.vlgmr.msra.gmra.mxu0 %v10151_v33  ;;  %v9034_v18 = vcombine.high %v558_v12, %v562_v13  ;;  %v654_v52 = vld [vmem:[#allocation5 + $0xf90] sm:$0xff] }
 0x190   :  { %v3387_v38 = vadd.f32 %v3386_v53, %v10195_v60  ;;  %3681 = vmatpush1.bf16.msra.mxu0 %v8945_v24  ;;  %3712 = vmatprep.mubr.bf16.mxu0 %v10159_v45  ;;  %v8905_v24 = vcombine.low %v430_v9, %v434_v10  ;;  %v542_v53 = vld [vmem:[#allocation5 + $0xc10] sm:$0xff] }
 0x191   :  { %v3427_v39 = vpop.f32.mrf.mxu1  ;;  %3672 = vmatmul.mubr.bf16.vlgmr.msra.gmra.mxu1 %v10157_v36  ;;  %v3388_v41 = vpop.f32.mrf.mxu0  ;;  %3682 = vmatprep.subr.bf16.mxu0 %v8938_v27  ;;  %v8898_v27 = vcombine.high %v422_v19, %v426_v20  ;;  %v646_v1 = vld [vmem:[#allocation5 + $0xf50] sm:$0xff] }
 0x192   :  { %3722 = vmatpush1.bf16.msra.mxu1 %v9073_v26  ;;  %v10204_v43 = vadd.f32 %v3427_v39, %v3387_v38  ;;  %v3389_v5 = vadd.f32 %v3388_v41, %v10199_v4  ;;  %3753 = vmatprep.mubr.bf16.mxu1 %v10162_v46  ;;  %v9057_v4 = vcombine.low %v582_v35, %v586_v37  ;;  %v546_v35 = vld [vmem:[#allocation5 + $0xc30] sm:$0xff] }
 0x193   :  { %v3429_v47 = vpop.f32.mrf.mxu1  ;;  %3723 = vmatprep.subr.bf16.mxu1 %v9066_v29  ;;  %v3390_v60 = vpop.f32.mrf.mxu0  ;;  %v9033_v26 = vcombine.low %v558_v12, %v562_v13  ;;  %v9026_v29 = vcombine.high %v550_v21, %v554_v23  ;;  %v8897_v37 = vcombine.low %v422_v19, %v426_v20  ;;  %v9025_v38 = vcombine.low %v550_v21, %v554_v23  ;;  %v534_v41 = vld [vmem:[#allocation5 + $0xbd0] sm:$0xff] }
 0x194   :  { %v10209_v54 = vadd.f32 %v3429_v47, %v3389_v5  ;;  %3683 = vmatpush1.bf16.msra.mxu0 %v8937_v40  ;;  %v8890_v39 = vcombine.high %v414_v31, %v418_v32  ;;  %v9018_v40 = vcombine.high %v542_v53, %v546_v35  ;;  %v666_v5 = vld [vmem:[#allocation5 + $0xff0] sm:$0xff]  ;;  %v8889_v47 = vcombine.low %v414_v31, %v418_v32 }
 0x195   :  { %v3431_v55 = vpop.f32.mrf.mxu1  ;;  %v3391_v59 = vpop.f32.mrf.mxu0  ;;  %3684 = vmatprep.subr.bf16.mxu0 %v8930_v63  ;;  %v662_v63 = vld [vmem:[#allocation5 + $0xfd0] sm:$0xff]  ;;  %vm3926_vm2 = vcmp.gt.f32.partialorder %v10204_v43, 0.0 }
 0x196   :  { %3724 = vmatpush1.bf16.msra.mxu1 %v9065_v42  ;;  %v538_v42 = vld [vmem:[#allocation5 + $0xbf0] sm:$0xff]  ;;  %v9138_v50 = vcombine.high %v662_v63, %v666_v5  ;;  %v9137_v59 = vcombine.low %v662_v63, %v666_v5  ;;  %vm3927_vm0 = vcmp.gt.f32.partialorder %v10209_v54, 0.0 }
 0x197   :  { %v3432_v62 = vpop.f32.mrf.mxu1  ;;  %3725 = vmatprep.subr.bf16.mxu1 %v9058_v48  ;;  %v9017_v48 = vcombine.low %v542_v53, %v546_v35  ;;  %v9010_v49 = vcombine.high %v534_v41, %v538_v42  ;;  %v526_v60 = vld [vmem:[#allocation5 + $0xb90] sm:$0xff] }
 0x198   :  { %3685 = vmatpush1.bf16.msra.mxu0 %v8929_v56  ;;  %v658_v55 = vld [vmem:[#allocation5 + $0xfb0] sm:$0xff]  ;;  %v9009_v56 = vcombine.low %v534_v41, %v538_v42  ;;  %v9001_v3 = vcombine.low %v526_v60, %v530_v51 }
 0x199   :  { %3686 = vmatprep.subr.bf16.mxu0 %v8922_v61  ;;  %v9130_v61 = vcombine.high %v654_v52, %v658_v55  ;;  %v518_v62 = vld [vmem:[#allocation5 + $0xb50] sm:$0xff]  ;;  %v9129_v22 = vcombine.low %v654_v52, %v658_v55 }
 0x19a   :  { %3726 = vmatpush1.bf16.msra.mxu1 %v9057_v4  ;;  %v9002_v4 = vcombine.high %v526_v60, %v530_v51  ;;  %v650_v2 = vld [vmem:[#allocation5 + $0xf70] sm:$0xff] }
 0x19b   :  { %3727 = vmatprep.subr.bf16.mxu1 %v9050_v0  ;;  %v522_v0 = vld [vmem:[#allocation5 + $0xb70] sm:$0xff]  ;;  %v9121_v13 = vcombine.low %v646_v1, %v650_v2 }
 0x19c   :  { %3687 = vmatpush1.bf16.msra.mxu0 %v8921_v25  ;;  %v8994_v25 = vcombine.high %v518_v62, %v522_v0  ;;  %v638_v9 = vld [vmem:[#allocation5 + $0xf10] sm:$0xff]  ;;  %v8993_v12 = vcombine.low %v518_v62, %v522_v0  ;;  %v343_v62 = vld [vmem:[#allocation5 + $0x5d8] sm:$0xff] }
 0x19d   :  { %3688 = vmatprep.subr.bf16.mxu0 %v8914_v7  ;;  %v510_v7 = vld [vmem:[#allocation5 + $0xb10] sm:$0xff]  ;;  %v347_v0 = vld [vmem:[#allocation5 + $0x5f8] sm:$0xff] }
 0x19e   :  { %3728 = vmatpush1.bf16.msra.mxu1 %v9049_v6  ;;  %v9122_v6 = vcombine.high %v646_v1, %v650_v2  ;;  %v642_v10 = vld [vmem:[#allocation5 + $0xf30] sm:$0xff]  ;;  %v680_v2 = vsub.s32 2, %v10120_v44 }
 0x19f   :  { %3729 = vmatprep.subr.bf16.mxu1 %v9042_v8  ;;  %v514_v8 = vld [vmem:[#allocation5 + $0xb30] sm:$0xff]  ;;  %v9113_v23 = vcombine.low %v638_v9, %v642_v10 }
 0x1a0   :  { %3689 = vmatpush1.bf16.msra.mxu0 %v8913_v14  ;;  %v8986_v14 = vcombine.high %v510_v7, %v514_v8  ;;  %v630_v19 = vld [vmem:[#allocation5 + $0xed0] sm:$0xff]  ;;  %v8985_v21 = vcombine.low %v510_v7, %v514_v8  ;;  %v207_v7 = vld [vmem:[#allocation5 + $0x198] sm:$0xff] }
 0x1a1   :  { %3690 = vmatprep.subr.bf16.mxu0 %v8906_v17  ;;  %v502_v17 = vld [vmem:[#allocation5 + $0xad0] sm:$0xff]  ;;  %v211_v8 = vld [vmem:[#allocation5 + $0x1b8] sm:$0xff] }
 0x1a2   :  { %3730 = vmatpush1.bf16.msra.mxu1 %v9041_v15  ;;  %v9114_v15 = vcombine.high %v638_v9, %v642_v10  ;;  %v634_v20 = vld [vmem:[#allocation5 + $0xef0] sm:$0xff]  ;;  %v335_v9 = vld [vmem:[#allocation5 + $0x598] sm:$0xff] }
 0x1a3   :  { %3731 = vmatprep.subr.bf16.mxu1 %v9034_v18  ;;  %v506_v18 = vld [vmem:[#allocation5 + $0xaf0] sm:$0xff]  ;;  %v9105_v35 = vcombine.low %v630_v19, %v634_v20  ;;  %v339_v10 = vld [vmem:[#allocation5 + $0x5b8] sm:$0xff] }
 0x1a4   :  { %3691 = vmatpush1.bf16.msra.mxu0 %v8905_v24  ;;  %v8978_v24 = vcombine.high %v502_v17, %v506_v18  ;;  %v622_v31 = vld [vmem:[#allocation5 + $0xe90] sm:$0xff]  ;;  %v8977_v53 = vcombine.low %v502_v17, %v506_v18  ;;  %v8812_v18 = vcombine.high %v335_v9, %v339_v10 }
 0x1a5   :  { %3692 = vmatprep.subr.bf16.mxu0 %v8898_v27  ;;  %v494_v27 = vld [vmem:[#allocation5 + $0xa90] sm:$0xff] }
 0x1a6   :  { %3732 = vmatpush1.bf16.msra.mxu1 %v9033_v26  ;;  %v9106_v26 = vcombine.high %v630_v19, %v634_v20  ;;  %v626_v32 = vld [vmem:[#allocation5 + $0xeb0] sm:$0xff]  ;;  %v199_v19 = vld [vmem:[#allocation5 + $0x158] sm:$0xff] }
 0x1a7   :  { %3733 = vmatprep.subr.bf16.mxu1 %v9026_v29  ;;  %v498_v29 = vld [vmem:[#allocation5 + $0xab0] sm:$0xff]  ;;  %v9097_v5 = vcombine.low %v622_v31, %v626_v32  ;;  %v203_v20 = vld [vmem:[#allocation5 + $0x178] sm:$0xff] }
 0x1a8   :  { %3693 = vmatpush1.bf16.msra.mxu0 %v8897_v37  ;;  %v8970_v37 = vcombine.high %v494_v27, %v498_v29  ;;  %v614_v41 = vld [vmem:[#allocation5 + $0xe50] sm:$0xff]  ;;  %v8969_v63 = vcombine.low %v494_v27, %v498_v29  ;;  %v8683_v29 = vcombine.low %v207_v7, %v211_v8 }
 0x1a9   :  { %3694 = vmatprep.subr.bf16.mxu0 %v8890_v39  ;;  %v486_v39 = vld [vmem:[#allocation5 + $0xa50] sm:$0xff] }
 0x1aa   :  { %3734 = vmatpush1.bf16.msra.mxu1 %v9025_v38  ;;  %v9098_v38 = vcombine.high %v622_v31, %v626_v32  ;;  %v618_v42 = vld [vmem:[#allocation5 + $0xe70] sm:$0xff]  ;;  %v8811_v32 = vcombine.low %v335_v9, %v339_v10  ;;  %v167_v10 = vld [vmem:[#allocation5 + $0x58] sm:$0xff] }
 0x1ab   :  { %3735 = vmatprep.subr.bf16.mxu1 %v9018_v40  ;;  %v490_v40 = vld [vmem:[#allocation5 + $0xa70] sm:$0xff]  ;;  %v9089_v55 = vcombine.low %v614_v41, %v618_v42 }
 0x1ac   :  { %3695 = vmatpush1.bf16.msra.mxu0 %v8889_v47  ;;  %v8962_v47 = vcombine.high %v486_v39, %v490_v40  ;;  %v606_v60 = vld [vmem:[#allocation5 + $0xe10] sm:$0xff]  ;;  %v8961_v52 = vcombine.low %v486_v39, %v490_v40  ;;  %v191_v39 = vld [vmem:[#allocation5 + $0x118] sm:$0xff] }
 0x1ad   :  { %3696 = vmatprep.subr.bf16.mxu0 %v9010_v49  ;;  %v478_v49 = vld [vmem:[#allocation5 + $0xa10] sm:$0xff]  ;;  %v195_v40 = vld [vmem:[#allocation5 + $0x138] sm:$0xff] }
 0x1ae   :  { %3736 = vmatpush1.bf16.msra.mxu1 %v9017_v48  ;;  %v9090_v48 = vcombine.high %v614_v41, %v618_v42  ;;  %v610_v51 = vld [vmem:[#allocation5 + $0xe30] sm:$0xff]  ;;  %v319_v42 = vld [vmem:[#allocation5 + $0x518] sm:$0xff] }
 0x1af   :  { %3737 = vmatprep.subr.bf16.mxu1 %v9138_v50  ;;  %v482_v50 = vld [vmem:[#allocation5 + $0xa30] sm:$0xff] }
 0x1b0   :  { %3697 = vmatpush2.bf16.msra.mxu0 %v9009_v56  ;;  %v8954_v56 = vcombine.high %v478_v49, %v482_v50  ;;  %v8953_v1 = vcombine.low %v478_v49, %v482_v50 }
 0x1b1   :  { %3698 = vmatprep.subr.bf16.mxu0 %v9002_v4  ;;  %v215_v4 = vld [vmem:[#allocation5 + $0x1d8] sm:$0xff] }
 0x1b2   :  { %3738 = vmatpush2.bf16.msra.mxu1 %v9137_v59  ;;  %v9082_v59 = vcombine.high %v606_v60, %v610_v51 }
 0x1b3   :  { %3739 = vmatprep.subr.bf16.mxu1 %v9130_v61  ;;  %v219_v61 = vld [vmem:[#allocation5 + $0x1f8] sm:$0xff] }
 0x1b4   :  { %3699 = vmatpush2.bf16.msra.mxu0 %v9001_v3  ;;  %v9081_v3 = vcombine.low %v606_v60, %v610_v51  ;;  %v8668_v60 = vcombine.high %v191_v39, %v195_v40 }
 0x1b5   :  { %3700 = vmatprep.subr.bf16.mxu0 %v8994_v25  ;;  %v8820_v25 = vcombine.high %v343_v62, %v347_v0 }
 0x1b6   :  { %3740 = vmatpush2.bf16.msra.mxu1 %v9129_v22  ;;  %v8692_v22 = vcombine.high %v215_v4, %v219_v61 }
 0x1b7   :  { %3741 = vmatprep.subr.bf16.mxu1 %v9122_v6  ;;  %v684_v6 = vsub.s32 3, %v10120_v44 }
 0x1b8   :  { %3701 = vmatpush2.bf16.msra.mxu0 %v8993_v12  ;;  %v681_v12 = vrot.slane %v10184_v30, %v680_v2 }
 0x1b9   :  { %3702 = vmatprep.subr.bf16.mxu0 %v8986_v14  ;;  %v8819_v14 = vcombine.low %v343_v62, %v347_v0  ;;  %v685_v17 = vrot.slane %v10184_v30, %v684_v6  ;;  %v175_v0 = vld [vmem:[#allocation5 + $0x98] sm:$0xff] }
 0x1ba   :  { %3742 = vmatpush2.bf16.msra.mxu1 %v9121_v13  ;;  %v8691_v13 = vcombine.low %v215_v4, %v219_v61  ;;  %v8667_v4 = vcombine.low %v191_v39, %v195_v40 }
 0x1bb   :  { %3743 = vmatprep.subr.bf16.mxu1 %v9114_v15  ;;  %v8684_v15 = vcombine.high %v207_v7, %v211_v8 }
 0x1bc   :  { %3703 = vmatpush2.bf16.msra.mxu0 %v8985_v21 }
 0x1bd   :  { %3704 = vmatprep.subr.bf16.mxu0 %v8978_v24  ;;  %v331_v24 = vld [vmem:[#allocation5 + $0x578] sm:$0xff] }
 0x1be   :  { %3744 = vmatpush2.bf16.msra.mxu1 %v9113_v23  ;;  %v327_v23 = vld [vmem:[#allocation5 + $0x558] sm:$0xff] }
 0x1bf   :  { %3745 = vmatprep.subr.bf16.mxu1 %v9106_v26  ;;  %v8803_v50 = vcombine.low %v327_v23, %v331_v24 }
 0x1c0   :  { %3705 = vmatpush2.bf16.msra.mxu0 %v8977_v53  ;;  %v8676_v53 = vcombine.high %v199_v19, %v203_v20 }
 0x1c1   :  { %3706 = vmatprep.subr.bf16.mxu0 %v8970_v37 }
 0x1c2   :  { %3746 = vmatpush2.bf16.msra.mxu1 %v9105_v35 }
 0x1c3   :  { %3747 = vmatprep.subr.bf16.mxu1 %v9098_v38  ;;  %v8804_v38 = vcombine.high %v327_v23, %v331_v24  ;;  %v287_v23 = vld [vmem:[#allocation5 + $0x418] sm:$0xff] }
 0x1c4   :  { %3707 = vmatpush2.bf16.msra.mxu0 %v8969_v63  ;;  %v323_v63 = vld [vmem:[#allocation5 + $0x538] sm:$0xff] }
 0x1c5   :  { %3708 = vmatprep.subr.bf16.mxu0 %v8962_v47  ;;  %v291_v24 = vld [vmem:[#allocation5 + $0x438] sm:$0xff] }
 0x1c6   :  { %3748 = vmatpush2.bf16.msra.mxu1 %v9097_v5  ;;  %v8763_v39 = vcombine.low %v287_v23, %v291_v24 }
 0x1c7   :  { %3749 = vmatprep.subr.bf16.mxu1 %v9090_v48  ;;  %v8675_v48 = vcombine.low %v199_v19, %v203_v20  ;;  %v159_v20 = vld [vmem:[#allocation5 + $0x18] sm:$0xff] }
 0x1c8   :  { %3709 = vmatpush2.bf16.msra.mxu0 %v8961_v52  ;;  %v8796_v52 = vcombine.high %v319_v42, %v323_v63 }
 0x1c9   :  { %3710 = vmatprep.subr.bf16.mxu0 %v8954_v56  ;;  %v311_v56 = vld [vmem:[#allocation5 + $0x4d8] sm:$0xff] }
 0x1ca   :  { %3750 = vmatpush2.bf16.msra.mxu1 %v9089_v55  ;;  %v183_v55 = vld [vmem:[#allocation5 + $0xd8] sm:$0xff] }
 0x1cb   :  { %3751 = vmatprep.subr.bf16.mxu1 %v9082_v59  ;;  %v315_v59 = vld [vmem:[#allocation5 + $0x4f8] sm:$0xff] }
 0x1cc   :  { %3711 = vmatpush2.bf16.msra.mxu0 %v8953_v1  ;;  %v8788_v62 = vcombine.high %v311_v56, %v315_v59  ;;  %v179_v1 = vld [vmem:[#allocation5 + $0xb8] sm:$0xff]  ;;  %v8787_v7 = vcombine.low %v311_v56, %v315_v59 }
 0x1cd   :  { %3762 = vmatprep.subr.bf16.mxu0 %v8692_v22  ;;  %v307_v22 = vld [vmem:[#allocation5 + $0x4b8] sm:$0xff]  ;;  %v8652_v8 = vcombine.high %v175_v0, %v179_v1 }
 0x1ce   :  { %3752 = vmatpush2.bf16.msra.mxu1 %v9081_v3  ;;  %v303_v3 = vld [vmem:[#allocation5 + $0x498] sm:$0xff] }
 0x1cf   :  { %3803 = vmatprep.subr.bf16.mxu1 %v8820_v25  ;;  %v3468_v21 = vpop.f32.mrf.mxu0  ;;  %3713 = vmatmul.mubr.bf16.vlgmr.msra.gmra.mxu0 %v10169_v57  ;;  %v8780_v9 = vcombine.high %v303_v3, %v307_v22  ;;  %v395_v56 = vld [vmem:[#allocation5 + $0x778] sm:$0xff] }
 0x1d0   :  { %v3469_v26 = vadd.f32 %v3468_v21, %v681_v12  ;;  %3763 = vmatpush1.bf16.msra.mxu0 %v8691_v13  ;;  %3794 = vmatprep.mubr.bf16.mxu0 %v10133_v11  ;;  %v187_v11 = vld [vmem:[#allocation5 + $0xf8] sm:$0xff] }
 0x1d1   :  { %v3509_v27 = vpop.f32.mrf.mxu1  ;;  %3754 = vmatmul.mubr.bf16.vlgmr.msra.gmra.mxu1 %v10173_v58  ;;  %v3470_v31 = vpop.f32.mrf.mxu0  ;;  %3764 = vmatprep.subr.bf16.mxu0 %v8684_v15  ;;  %v8660_v61 = vcombine.high %v183_v55, %v187_v11  ;;  %v8659_v25 = vcombine.low %v183_v55, %v187_v11  ;;  %v171_v12 = vld [vmem:[#allocation5 + $0x78] sm:$0xff]  ;;  %v8651_v15 = vcombine.low %v175_v0, %v179_v1 }
 0x1d2   :  { %3804 = vmatpush1.bf16.msra.mxu1 %v8819_v14  ;;  %v10221_v30 = vadd.f32 %v3509_v27, %v3469_v26  ;;  %v3471_v35 = vadd.f32 %v3470_v31, %v685_v17  ;;  %3835 = vmatprep.mubr.bf16.mxu1 %v10138_v16  ;;  %v8795_v16 = vcombine.low %v319_v42, %v323_v63  ;;  %v295_v13 = vld [vmem:[#allocation5 + $0x458] sm:$0xff] }
 0x1d3   :  { %v3511_v37 = vpop.f32.mrf.mxu1  ;;  %3805 = vmatprep.subr.bf16.mxu1 %v8812_v18  ;;  %v3472_v41 = vpop.f32.mrf.mxu0  ;;  %v299_v14 = vld [vmem:[#allocation5 + $0x478] sm:$0xff]  ;;  %v8779_v17 = vcombine.low %v303_v3, %v307_v22  ;;  %v8644_v18 = vcombine.high %v167_v10, %v171_v12  ;;  %v8643_v26 = vcombine.low %v167_v10, %v171_v12  ;;  %v8764_v31 = vcombine.high %v287_v23, %v291_v24 }
 0x1d4   :  { %v10225_v5 = vadd.f32 %v3511_v37, %v3471_v35  ;;  %3765 = vmatpush1.bf16.msra.mxu0 %v8683_v29  ;;  %v8772_v19 = vcombine.high %v295_v13, %v299_v14  ;;  %v163_v21 = vld [vmem:[#allocation5 + $0x38] sm:$0xff]  ;;  %v8771_v27 = vcombine.low %v295_v13, %v299_v14 }
 0x1d5   :  { %v3513_v47 = vpop.f32.mrf.mxu1  ;;  %v3473_v49 = vpop.f32.mrf.mxu0  ;;  %3766 = vmatprep.subr.bf16.mxu0 %v8676_v53  ;;  %v8636_v29 = vcombine.high %v159_v20, %v163_v21  ;;  %v283_v53 = vld [vmem:[#allocation5 + $0x3f8] sm:$0xff] }
 0x1d6   :  { %3806 = vmatpush1.bf16.msra.mxu1 %v8811_v32  ;;  %v279_v32 = vld [vmem:[#allocation5 + $0x3d8] sm:$0xff] }
 0x1d7   :  { %v3514_v51 = vpop.f32.mrf.mxu1  ;;  %3807 = vmatprep.subr.bf16.mxu1 %v8804_v38  ;;  %v407_v35 = vld [vmem:[#allocation5 + $0x7d8] sm:$0xff]  ;;  %v8635_v38 = vcombine.low %v159_v20, %v163_v21  ;;  %v8756_v40 = vcombine.high %v279_v32, %v283_v53  ;;  %v8755_v49 = vcombine.low %v279_v32, %v283_v53 }
 0x1d8   :  { %3767 = vmatpush1.bf16.msra.mxu0 %v8675_v48  ;;  %v411_v37 = vld [vmem:[#allocation5 + $0x7f8] sm:$0xff] }
 0x1d9   :  { %3768 = vmatprep.subr.bf16.mxu0 %v8668_v60  ;;  %v8884_v41 = vcombine.high %v407_v35, %v411_v37  ;;  %v271_v42 = vld [vmem:[#allocation5 + $0x398] sm:$0xff] }
 0x1da   :  { %3808 = vmatpush1.bf16.msra.mxu1 %v8803_v50  ;;  %v275_v63 = vld [vmem:[#allocation5 + $0x3b8] sm:$0xff]  ;;  %v8883_v50 = vcombine.low %v407_v35, %v411_v37 }
 0x1db   :  { %3809 = vmatprep.subr.bf16.mxu1 %v8796_v52  ;;  %v399_v47 = vld [vmem:[#allocation5 + $0x798] sm:$0xff]  ;;  %v8748_v60 = vcombine.high %v271_v42, %v275_v63  ;;  %v8747_v59 = vcombine.low %v271_v42, %v275_v63 }
 0x1dc   :  { %3769 = vmatpush1.bf16.msra.mxu0 %v8667_v4  ;;  %v403_v48 = vld [vmem:[#allocation5 + $0x7b8] sm:$0xff] }
 0x1dd   :  { %3770 = vmatprep.subr.bf16.mxu0 %v8660_v61  ;;  %v8876_v51 = vcombine.high %v399_v47, %v403_v48  ;;  %v263_v52 = vld [vmem:[#allocation5 + $0x358] sm:$0xff]  ;;  %v8875_v4 = vcombine.low %v399_v47, %v403_v48 }
 0x1de   :  { %3810 = vmatpush1.bf16.msra.mxu1 %v8795_v16  ;;  %v267_v55 = vld [vmem:[#allocation5 + $0x378] sm:$0xff] }
 0x1df   :  { %3811 = vmatprep.subr.bf16.mxu1 %v8788_v62  ;;  %v391_v11 = vld [vmem:[#allocation5 + $0x758] sm:$0xff]  ;;  %v8740_v16 = vcombine.high %v263_v52, %v267_v55  ;;  %v8739_v22 = vcombine.low %v263_v52, %v267_v55 }
 0x1e0   :  { %3771 = vmatpush1.bf16.msra.mxu0 %v8659_v25  ;;  %v8868_v61 = vcombine.high %v391_v11, %v395_v56  ;;  %v255_v62 = vld [vmem:[#allocation5 + $0x318] sm:$0xff]  ;;  %v8867_v25 = vcombine.low %v391_v11, %v395_v56 }
 0x1e1   :  { %3772 = vmatprep.subr.bf16.mxu0 %v8652_v8  ;;  %v259_v0 = vld [vmem:[#allocation5 + $0x338] sm:$0xff] }
 0x1e2   :  { %3812 = vmatpush1.bf16.msra.mxu1 %v8787_v7  ;;  %v383_v1 = vld [vmem:[#allocation5 + $0x718] sm:$0xff]  ;;  %v8732_v7 = vcombine.high %v255_v62, %v259_v0  ;;  %v8731_v14 = vcombine.low %v255_v62, %v259_v0 }
 0x1e3   :  { %3813 = vmatprep.subr.bf16.mxu1 %v8780_v9  ;;  %v387_v3 = vld [vmem:[#allocation5 + $0x738] sm:$0xff] }
 0x1e4   :  { %3773 = vmatpush1.bf16.msra.mxu0 %v8651_v15  ;;  %v8860_v8 = vcombine.high %v383_v1, %v387_v3  ;;  %v247_v9 = vld [vmem:[#allocation5 + $0x2d8] sm:$0xff]  ;;  %v8859_v15 = vcombine.low %v383_v1, %v387_v3 }
 0x1e5   :  { %3774 = vmatprep.subr.bf16.mxu0 %v8644_v18  ;;  %v251_v10 = vld [vmem:[#allocation5 + $0x2f8] sm:$0xff] }
 0x1e6   :  { %3814 = vmatpush1.bf16.msra.mxu1 %v8779_v17  ;;  %v375_v12 = vld [vmem:[#allocation5 + $0x6d8] sm:$0xff]  ;;  %v8724_v17 = vcombine.high %v247_v9, %v251_v10  ;;  %v8723_v24 = vcombine.low %v247_v9, %v251_v10 }
 0x1e7   :  { %3815 = vmatprep.subr.bf16.mxu1 %v8772_v19  ;;  %v379_v13 = vld [vmem:[#allocation5 + $0x6f8] sm:$0xff] }
 0x1e8   :  { %3775 = vmatpush1.bf16.msra.mxu0 %v8643_v26  ;;  %v8852_v18 = vcombine.high %v375_v12, %v379_v13  ;;  %v239_v19 = vld [vmem:[#allocation5 + $0x298] sm:$0xff]  ;;  %v8851_v26 = vcombine.low %v375_v12, %v379_v13 }
 0x1e9   :  { %3776 = vmatprep.subr.bf16.mxu0 %v8636_v29  ;;  %v243_v20 = vld [vmem:[#allocation5 + $0x2b8] sm:$0xff] }
 0x1ea   :  { %3816 = vmatpush1.bf16.msra.mxu1 %v8771_v27  ;;  %v367_v21 = vld [vmem:[#allocation5 + $0x698] sm:$0xff]  ;;  %v8716_v27 = vcombine.high %v239_v19, %v243_v20  ;;  %v8715_v37 = vcombine.low %v239_v19, %v243_v20 }
 0x1eb   :  { %3817 = vmatprep.subr.bf16.mxu1 %v8764_v31  ;;  %v371_v23 = vld [vmem:[#allocation5 + $0x6b8] sm:$0xff] }
 0x1ec   :  { %3777 = vmatpush1.bf16.msra.mxu0 %v8635_v38  ;;  %v8844_v29 = vcombine.high %v367_v21, %v371_v23  ;;  %v231_v31 = vld [vmem:[#allocation5 + $0x258] sm:$0xff]  ;;  %v8843_v38 = vcombine.low %v367_v21, %v371_v23 }
 0x1ed   :  { %3778 = vmatprep.subr.bf16.mxu0 %v8756_v40  ;;  %v235_v32 = vld [vmem:[#allocation5 + $0x278] sm:$0xff] }
 0x1ee   :  { %3818 = vmatpush1.bf16.msra.mxu1 %v8763_v39  ;;  %v359_v53 = vld [vmem:[#allocation5 + $0x658] sm:$0xff]  ;;  %v8708_v39 = vcombine.high %v231_v31, %v235_v32  ;;  %v8707_v48 = vcombine.low %v231_v31, %v235_v32 }
 0x1ef   :  { %3819 = vmatprep.subr.bf16.mxu1 %v8884_v41  ;;  %v363_v35 = vld [vmem:[#allocation5 + $0x678] sm:$0xff] }
 0x1f0   :  { %3779 = vmatpush2.bf16.msra.mxu0 %v8755_v49  ;;  %v8836_v40 = vcombine.high %v359_v53, %v363_v35  ;;  %v223_v41 = vld [vmem:[#allocation5 + $0x218] sm:$0xff]  ;;  %v8835_v49 = vcombine.low %v359_v53, %v363_v35 }
 0x1f1   :  { %3780 = vmatprep.subr.bf16.mxu0 %v8748_v60  ;;  %v227_v42 = vld [vmem:[#allocation5 + $0x238] sm:$0xff] }
 0x1f2   :  { %3820 = vmatpush2.bf16.msra.mxu1 %v8883_v50  ;;  %v351_v63 = vld [vmem:[#allocation5 + $0x618] sm:$0xff]  ;;  %v8700_v50 = vcombine.high %v223_v41, %v227_v42  ;;  %v8699_v56 = vcombine.low %v223_v41, %v227_v42 }
 0x1f3   :  { %3821 = vmatprep.subr.bf16.mxu1 %v8876_v51  ;;  %v355_v47 = vld [vmem:[#allocation5 + $0x638] sm:$0xff] }
 0x1f4   :  { %3781 = vmatpush2.bf16.msra.mxu0 %v8747_v59  ;;  %v8828_v60 = vcombine.high %v351_v63, %v355_v47  ;;  %v471_v51 = vld [vmem:[#allocation5 + $0x9d8] sm:$0xff]  ;;  %v8827_v59 = vcombine.low %v351_v63, %v355_v47 }
 0x1f5   :  { %3782 = vmatprep.subr.bf16.mxu0 %v8740_v16  ;;  %v475_v52 = vld [vmem:[#allocation5 + $0x9f8] sm:$0xff] }
 0x1f6   :  { %3822 = vmatpush2.bf16.msra.mxu1 %v8875_v4  ;;  %v599_v55 = vld [vmem:[#allocation5 + $0xdd8] sm:$0xff]  ;;  %v8948_v4 = vcombine.high %v471_v51, %v475_v52  ;;  %v8947_v3 = vcombine.low %v471_v51, %v475_v52 }
 0x1f7   :  { %3823 = vmatprep.subr.bf16.mxu1 %v8868_v61  ;;  %v603_v11 = vld [vmem:[#allocation5 + $0xdf8] sm:$0xff] }
 0x1f8   :  { %3783 = vmatpush2.bf16.msra.mxu0 %v8739_v22  ;;  %v9076_v16 = vcombine.high %v599_v55, %v603_v11  ;;  %v463_v61 = vld [vmem:[#allocation5 + $0x998] sm:$0xff]  ;;  %v9075_v22 = vcombine.low %v599_v55, %v603_v11 }
 0x1f9   :  { %3784 = vmatprep.subr.bf16.mxu0 %v8732_v7  ;;  %v467_v62 = vld [vmem:[#allocation5 + $0x9b8] sm:$0xff] }
 0x1fa   :  { %3824 = vmatpush2.bf16.msra.mxu1 %v8867_v25  ;;  %v591_v0 = vld [vmem:[#allocation5 + $0xd98] sm:$0xff]  ;;  %v8940_v25 = vcombine.high %v463_v61, %v467_v62 }
 0x1fb   :  { %3825 = vmatprep.subr.bf16.mxu1 %v8860_v8  ;;  %v595_v1 = vld [vmem:[#allocation5 + $0xdb8] sm:$0xff] }
 0x1fc   :  { %3785 = vmatpush2.bf16.msra.mxu0 %v8731_v14  ;;  %v9068_v7 = vcombine.high %v591_v0, %v595_v1  ;;  %v455_v8 = vld [vmem:[#allocation5 + $0x958] sm:$0xff]  ;;  %v9067_v19 = vcombine.low %v591_v0, %v595_v1 }
 0x1fd   :  { %3786 = vmatprep.subr.bf16.mxu0 %v8724_v17  ;;  %v459_v9 = vld [vmem:[#allocation5 + $0x978] sm:$0xff]  ;;  %v8939_v17 = vcombine.low %v463_v61, %v467_v62 }
 0x1fe   :  { %3826 = vmatpush2.bf16.msra.mxu1 %v8859_v15  ;;  %v583_v12 = vld [vmem:[#allocation5 + $0xd58] sm:$0xff]  ;;  %v8932_v20 = vcombine.high %v455_v8, %v459_v9  ;;  %v8931_v31 = vcombine.low %v455_v8, %v459_v9 }
 0x1ff   :  { %3827 = vmatprep.subr.bf16.mxu1 %v8852_v18  ;;  %v587_v13 = vld [vmem:[#allocation5 + $0xd78] sm:$0xff] }
 0x200   :  { %3787 = vmatpush2.bf16.msra.mxu0 %v8723_v24  ;;  %v447_v24 = vld [vmem:[#allocation5 + $0x918] sm:$0xff]  ;;  %v9059_v53 = vcombine.low %v583_v12, %v587_v13 }
 0x201   :  { %3788 = vmatprep.subr.bf16.mxu0 %v8716_v27  ;;  %v579_v27 = vld [vmem:[#allocation5 + $0xd38] sm:$0xff] }
 0x202   :  { %3828 = vmatpush2.bf16.msra.mxu1 %v8851_v26  ;;  %v451_v26 = vld [vmem:[#allocation5 + $0x938] sm:$0xff] }
 0x203   :  { %3829 = vmatprep.subr.bf16.mxu1 %v8844_v29  ;;  %v8924_v35 = vcombine.high %v447_v24, %v451_v26  ;;  %v567_v41 = vld [vmem:[#allocation5 + $0xcd8] sm:$0xff]  ;;  %v8923_v42 = vcombine.low %v447_v24, %v451_v26 }
 0x204   :  { %3789 = vmatpush2.bf16.msra.mxu0 %v8715_v37  ;;  %v527_v26 = vld [vmem:[#allocation5 + $0xb98] sm:$0xff] }
 0x205   :  { %3790 = vmatprep.subr.bf16.mxu0 %v8708_v39  ;;  %v439_v39 = vld [vmem:[#allocation5 + $0x8d8] sm:$0xff] }
 0x206   :  { %3830 = vmatpush2.bf16.msra.mxu1 %v8843_v38 }
 0x207   :  { %3831 = vmatprep.subr.bf16.mxu1 %v8836_v40  ;;  %v443_v40 = vld [vmem:[#allocation5 + $0x8f8] sm:$0xff] }
 0x208   :  { %3791 = vmatpush2.bf16.msra.mxu0 %v8707_v48  ;;  %v8916_v63 = vcombine.high %v439_v39, %v443_v40  ;;  %v431_v48 = vld [vmem:[#allocation5 + $0x898] sm:$0xff]  ;;  %v8915_v51 = vcombine.low %v439_v39, %v443_v40 }
 0x209   :  { %3792 = vmatprep.subr.bf16.mxu0 %v8700_v50  ;;  %v559_v50 = vld [vmem:[#allocation5 + $0xc98] sm:$0xff] }
 0x20a   :  { %3832 = vmatpush2.bf16.msra.mxu1 %v8835_v49  ;;  %v435_v49 = vld [vmem:[#allocation5 + $0x8b8] sm:$0xff] }
 0x20b   :  { %3833 = vmatprep.subr.bf16.mxu1 %v8828_v60  ;;  %v563_v60 = vld [vmem:[#allocation5 + $0xcb8] sm:$0xff]  ;;  %v8908_v55 = vcombine.high %v431_v48, %v435_v49  ;;  %v8907_v61 = vcombine.low %v431_v48, %v435_v49 }
 0x20c   :  { %3793 = vmatpush2.bf16.msra.mxu0 %v8699_v56  ;;  %v9036_v11 = vcombine.high %v559_v50, %v563_v60  ;;  %v423_v56 = vld [vmem:[#allocation5 + $0x858] sm:$0xff]  ;;  %v9035_v62 = vcombine.low %v559_v50, %v563_v60 }
 0x20d   :  { %3844 = vmatprep.subr.bf16.mxu0 %v8948_v4  ;;  %v551_v4 = vld [vmem:[#allocation5 + $0xc58] sm:$0xff] }
 0x20e   :  { %3834 = vmatpush2.bf16.msra.mxu1 %v8827_v59  ;;  %v427_v59 = vld [vmem:[#allocation5 + $0x878] sm:$0xff] }
 0x20f   :  { %3885 = vmatprep.subr.bf16.mxu1 %v9076_v16  ;;  %v3550_v10 = vpop.f32.mrf.mxu0  ;;  %3795 = vmatmul.mubr.bf16.vlgmr.msra.gmra.mxu0 %v10151_v33  ;;  %v9060_v33 = vcombine.high %v583_v12, %v587_v13  ;;  %v555_v16 = vld [vmem:[#allocation5 + $0xc78] sm:$0xff]  ;;  %v8900_v0 = vcombine.high %v423_v56, %v427_v59  ;;  %v8899_v8 = vcombine.low %v423_v56, %v427_v59 }
 0x210   :  { %v3551_v14 = vadd.f32 %v3550_v10, %v10221_v30  ;;  %3845 = vmatpush1.bf16.msra.mxu0 %v8947_v3  ;;  %3876 = vmatprep.mubr.bf16.mxu0 %v10159_v45  ;;  %v571_v45 = vld [vmem:[#allocation5 + $0xcf8] sm:$0xff]  ;;  %v9028_v1 = vcombine.high %v551_v4, %v555_v16  ;;  %v9027_v9 = vcombine.low %v551_v4, %v555_v16 }
 0x211   :  { %v3591_v15 = vpop.f32.mrf.mxu1  ;;  %3836 = vmatmul.mubr.bf16.vlgmr.msra.gmra.mxu1 %v10157_v36  ;;  %v10230_v18 = vpop.f32.mrf.mxu0  ;;  %3846 = vmatprep.subr.bf16.mxu0 %v8940_v25  ;;  %v575_v36 = vld [vmem:[#allocation5 + $0xd18] sm:$0xff]  ;;  %v9044_v47 = vcombine.high %v567_v41, %v571_v45  ;;  %v9043_v52 = vcombine.low %v567_v41, %v571_v45 }
 0x212   :  { %3886 = vmatpush1.bf16.msra.mxu1 %v9075_v22  ;;  %v10232_v21 = vadd.f32 %v3591_v15, %v3551_v14  ;;  %3917 = vmatprep.mubr.bf16.mxu1 %v10162_v46  ;;  %v9052_v38 = vcombine.high %v575_v36, %v579_v27  ;;  %v9051_v46 = vcombine.low %v575_v36, %v579_v27  ;;  %v415_v3 = vld [vmem:[#allocation5 + $0x818] sm:$0xff] }
 0x213   :  { %v10234_v23 = vpop.f32.mrf.mxu1  ;;  %3887 = vmatprep.subr.bf16.mxu1 %v9068_v7  ;;  %v3554_v30 = vpop.f32.mrf.mxu0  ;;  %v419_v22 = vld [vmem:[#allocation5 + $0x838] sm:$0xff] }
 0x214   :  { %3847 = vmatpush1.bf16.msra.mxu0 %v8939_v17  ;;  %v543_v25 = vld [vmem:[#allocation5 + $0xc18] sm:$0xff]  ;;  %v8892_v10 = vcombine.high %v415_v3, %v419_v22  ;;  %vm3928_vm3 = vcmp.gt.f32.partialorder %v10232_v21, 0.0 }
 0x215   :  { %v3595_v29 = vpop.f32.mrf.mxu1  ;;  %v3555_v32 = vpop.f32.mrf.mxu0  ;;  %3848 = vmatprep.subr.bf16.mxu0 %v8932_v20  ;;  %v547_v7 = vld [vmem:[#allocation5 + $0xc38] sm:$0xff] }
 0x216   :  { %3888 = vmatpush1.bf16.msra.mxu1 %v9067_v19  ;;  %v9020_v12 = vcombine.high %v543_v25, %v547_v7  ;;  %v535_v13 = vld [vmem:[#allocation5 + $0xbd8] sm:$0xff]  ;;  %v8891_v19 = vcombine.low %v415_v3, %v419_v22  ;;  %v9019_v20 = vcombine.low %v543_v25, %v547_v7 }
 0x217   :  { %v3596_v37 = vpop.f32.mrf.mxu1  ;;  %3889 = vmatprep.subr.bf16.mxu1 %v9060_v33  ;;  %v539_v14 = vld [vmem:[#allocation5 + $0xbf8] sm:$0xff] }
 0x218   :  { %3849 = vmatpush1.bf16.msra.mxu0 %v8931_v31  ;;  %v663_v15 = vld [vmem:[#allocation5 + $0xfd8] sm:$0xff]  ;;  %v9012_v33 = vcombine.high %v535_v13, %v539_v14  ;;  %v9011_v29 = vcombine.low %v535_v13, %v539_v14 }
 0x219   :  { %3850 = vmatprep.subr.bf16.mxu0 %v8924_v35  ;;  %v667_v17 = vld [vmem:[#allocation5 + $0xff8] sm:$0xff] }
 0x21a   :  { %3890 = vmatpush1.bf16.msra.mxu1 %v9059_v53  ;;  %v9140_v24 = vcombine.high %v663_v15, %v667_v17  ;;  %v531_v30 = vld [vmem:[#allocation5 + $0xbb8] sm:$0xff]  ;;  %v9139_v31 = vcombine.low %v663_v15, %v667_v17  ;;  %v3553_v15 = vadd.f32 %v10230_v18, %v10225_v5  ;;  %v4014_v18 = vld [vmem:[#allocation8 + $0x1c0] sm:$0xff] }
 0x21b   :  { %3891 = vmatprep.subr.bf16.mxu1 %v9052_v38  ;;  %v655_v36 = vld [vmem:[#allocation5 + $0xf98] sm:$0xff]  ;;  %v9004_v32 = vcombine.high %v527_v26, %v531_v30  ;;  %v9003_v40 = vcombine.low %v527_v26, %v531_v30 }
 0x21c   :  { %3851 = vmatpush1.bf16.msra.mxu0 %v8923_v42  ;;  %v659_v27 = vld [vmem:[#allocation5 + $0xfb8] sm:$0xff] }
 0x21d   :  { %3852 = vmatprep.subr.bf16.mxu0 %v8916_v63  ;;  %v9132_v53 = vcombine.high %v655_v36, %v659_v27  ;;  %v519_v35 = vld [vmem:[#allocation5 + $0xb58] sm:$0xff]  ;;  %v9131_v41 = vcombine.low %v655_v36, %v659_v27  ;;  %v3594_v27 = vadd.f32 %v10234_v23, %v3553_v15 }
 0x21e   :  { %3892 = vmatpush1.bf16.msra.mxu1 %v9051_v46  ;;  %v523_v37 = vld [vmem:[#allocation5 + $0xb78] sm:$0xff] }
 0x21f   :  { %3893 = vmatprep.subr.bf16.mxu1 %v9044_v47  ;;  %v647_v38 = vld [vmem:[#allocation5 + $0xf58] sm:$0xff]  ;;  %v8996_v45 = vcombine.high %v519_v35, %v523_v37  ;;  %v8995_v49 = vcombine.low %v519_v35, %v523_v37  ;;  %v4146_v35 = vld [vmem:[#allocation8 + $0x5e0] sm:$0xff]  ;;  %v3935_v37 = vmul.f32 0.2, %v10209_v54  ;;  %vm3929_vm1 = vcmp.gt.f32.partialorder %v3594_v27, 0.0 }
 0x220   :  { %3853 = vmatpush1.bf16.msra.mxu0 %v8915_v51  ;;  %v651_v39 = vld [vmem:[#allocation5 + $0xf78] sm:$0xff] }
 0x221   :  { %3854 = vmatprep.subr.bf16.mxu0 %v8908_v55  ;;  %v9124_v42 = vcombine.high %v647_v38, %v651_v39  ;;  %v511_v46 = vld [vmem:[#allocation5 + $0xb18] sm:$0xff]  ;;  %v9123_v50 = vcombine.low %v647_v38, %v651_v39  ;;  %v688_v39 = vsub.s32 4, %v10120_v44 }
 0x222   :  { %3894 = vmatpush1.bf16.msra.mxu1 %v9043_v52  ;;  %v515_v63 = vld [vmem:[#allocation5 + $0xb38] sm:$0xff] }
 0x223   :  { %3895 = vmatprep.subr.bf16.mxu1 %v9036_v11  ;;  %v639_v47 = vld [vmem:[#allocation5 + $0xf18] sm:$0xff]  ;;  %v8988_v60 = vcombine.high %v511_v46, %v515_v63  ;;  %v8987_v59 = vcombine.low %v511_v46, %v515_v63  ;;  %v4010_v46 = vld [vmem:[#allocation8 + $0x1a0] sm:$0xff]  ;;  %v3943_v63 = vsel %vm3927_vm0, %v10209_v54, %v3935_v37 }
 0x224   :  { %3855 = vmatpush1.bf16.msra.mxu0 %v8907_v61  ;;  %v643_v48 = vld [vmem:[#allocation5 + $0xf38] sm:$0xff]  ;;  %v4102_v37 = vld [vmem:[#allocation8 + $0x480] sm:$0xff] }
 0x225   :  { %3856 = vmatprep.subr.bf16.mxu0 %v8900_v0  ;;  %v9116_v51 = vcombine.high %v639_v47, %v643_v48  ;;  %v503_v52 = vld [vmem:[#allocation5 + $0xad8] sm:$0xff]  ;;  %v9115_v4 = vcombine.low %v639_v47, %v643_v48  ;;  %v10245_v47 = vld [vmem:[#allocation7] sm:$0xff] }
 0x226   :  { %3896 = vmatpush1.bf16.msra.mxu1 %v9035_v62  ;;  %v507_v55 = vld [vmem:[#allocation5 + $0xaf8] sm:$0xff]  ;;  %v689_v48 = vrot.slane %v10245_v47, %v688_v39 }
 0x227   :  { %3897 = vmatprep.subr.bf16.mxu1 %v9028_v1  ;;  %v631_v11 = vld [vmem:[#allocation5 + $0xed8] sm:$0xff]  ;;  %v8980_v16 = vcombine.high %v503_v52, %v507_v55  ;;  %v8979_v22 = vcombine.low %v503_v52, %v507_v55 }
 0x228   :  { %3857 = vmatpush1.bf16.msra.mxu0 %v8899_v8  ;;  %v635_v56 = vld [vmem:[#allocation5 + $0xef8] sm:$0xff] }
 0x229   :  { %3858 = vmatprep.subr.bf16.mxu0 %v8892_v10  ;;  %v9108_v61 = vcombine.high %v631_v11, %v635_v56  ;;  %v495_v62 = vld [vmem:[#allocation5 + $0xa98] sm:$0xff]  ;;  %v9107_v25 = vcombine.low %v631_v11, %v635_v56  ;;  %v3998_v11 = vld [vmem:[#allocation8 + $0x140] sm:$0xff] }
 0x22a   :  { %3898 = vmatpush1.bf16.msra.mxu1 %v9027_v9  ;;  %v499_v0 = vld [vmem:[#allocation5 + $0xab8] sm:$0xff]  ;;  %v4002_v56 = vld [vmem:[#allocation8 + $0x160] sm:$0xff] }
 0x22b   :  { %3899 = vmatprep.subr.bf16.mxu1 %v9020_v12  ;;  %v623_v1 = vld [vmem:[#allocation5 + $0xe98] sm:$0xff]  ;;  %v8972_v7 = vcombine.high %v495_v62, %v499_v0  ;;  %v8971_v14 = vcombine.low %v495_v62, %v499_v0 }
 0x22c   :  { %3859 = vmatpush1.bf16.msra.mxu0 %v8891_v19  ;;  %v627_v3 = vld [vmem:[#allocation5 + $0xeb8] sm:$0xff] }
 0x22d   :  { %3860 = vmatprep.subr.bf16.mxu0 %v9012_v33  ;;  %v9100_v8 = vcombine.high %v623_v1, %v627_v3  ;;  %v487_v9 = vld [vmem:[#allocation5 + $0xa58] sm:$0xff]  ;;  %v9099_v17 = vcombine.low %v623_v1, %v627_v3 }
 0x22e   :  { %3900 = vmatpush1.bf16.msra.mxu1 %v9019_v20  ;;  %v491_v10 = vld [vmem:[#allocation5 + $0xa78] sm:$0xff] }
 0x22f   :  { %3901 = vmatprep.subr.bf16.mxu1 %v9140_v24  ;;  %v615_v12 = vld [vmem:[#allocation5 + $0xe58] sm:$0xff]  ;;  %v8964_v19 = vcombine.high %v487_v9, %v491_v10  ;;  %v8963_v36 = vcombine.low %v487_v9, %v491_v10  ;;  %v3990_v10 = vld [vmem:[#allocation8 + $0x100] sm:$0xff] }
 0x230   :  { %3861 = vmatpush2.bf16.msra.mxu0 %v9011_v29  ;;  %v619_v13 = vld [vmem:[#allocation5 + $0xe78] sm:$0xff] }
 0x231   :  { %3862 = vmatprep.subr.bf16.mxu0 %v9004_v32  ;;  %v9092_v20 = vcombine.high %v615_v12, %v619_v13  ;;  %v479_v33 = vld [vmem:[#allocation5 + $0xa18] sm:$0xff]  ;;  %v9091_v29 = vcombine.low %v615_v12, %v619_v13  ;;  %v4018_v32 = vld [vmem:[#allocation8 + $0x1e0] sm:$0xff] }
 0x232   :  { %3902 = vmatpush2.bf16.msra.mxu1 %v9139_v31  ;;  %v483_v24 = vld [vmem:[#allocation5 + $0xa38] sm:$0xff]  ;;  %v3994_v12 = vld [vmem:[#allocation8 + $0x120] sm:$0xff] }
 0x233   :  { %3903 = vmatprep.subr.bf16.mxu1 %v9132_v53  ;;  %v607_v26 = vld [vmem:[#allocation5 + $0xe18] sm:$0xff]  ;;  %v8956_v31 = vcombine.high %v479_v33, %v483_v24  ;;  %v4142_v53 = vld [vmem:[#allocation8 + $0x5c0] sm:$0xff]  ;;  %v8955_v38 = vcombine.low %v479_v33, %v483_v24  ;;  %v9174_v33 = vcombine.high %v3990_v10, %v3994_v12 }
 0x234   :  { %3863 = vmatpush2.bf16.msra.mxu0 %v9003_v40  ;;  %v611_v30 = vld [vmem:[#allocation5 + $0xe38] sm:$0xff]  ;;  %v3937_v40 = vmul.f32 0.2, %v3594_v27  ;;  %v9325_v52 = vcombine.low %v4142_v53, %v4146_v35  ;;  %v4118_v13 = vld [vmem:[#allocation8 + $0x500] sm:$0xff] }
 0x235   :  { %3864 = vmatprep.subr.bf16.mxu0 %v8996_v45  ;;  %v9084_v5 = vcombine.high %v607_v26, %v611_v30  ;;  %v9083_v23 = vcombine.low %v607_v26, %v611_v30  ;;  %v9326_v45 = vcombine.high %v4142_v53, %v4146_v35  ;;  %v3982_v30 = vld [vmem:[#allocation8 + $0xc0] sm:$0xff] }
 0x236   :  { %3904 = vmatpush2.bf16.msra.mxu1 %v9131_v41  ;;  %v9198_v41 = vcombine.high %v4014_v18, %v4018_v32  ;;  %v3974_v53 = vld [vmem:[#allocation8 + $0x80] sm:$0xff] }
 0x237   :  { %3905 = vmatprep.subr.bf16.mxu1 %v9124_v42  ;;  %v4006_v42 = vld [vmem:[#allocation8 + $0x180] sm:$0xff] }
 0x238   :  { %3865 = vmatpush2.bf16.msra.mxu0 %v8995_v49  ;;  %v9197_v49 = vcombine.low %v4014_v18, %v4018_v32  ;;  %v9190_v55 = vcombine.high %v4006_v42, %v4010_v46  ;;  %v9189_v3 = vcombine.low %v4006_v42, %v4010_v46  ;;  %v3978_v35 = vld [vmem:[#allocation8 + $0xa0] sm:$0xff] }
 0x239   :  { %3866 = vmatprep.subr.bf16.mxu0 %v8988_v60  ;;  %v4138_v60 = vld [vmem:[#allocation8 + $0x5a0] sm:$0xff] }
 0x23a   :  { %3906 = vmatpush2.bf16.msra.mxu1 %v9123_v50  ;;  %v4134_v50 = vld [vmem:[#allocation8 + $0x580] sm:$0xff] }
 0x23b   :  { %3907 = vmatprep.subr.bf16.mxu1 %v9116_v51  ;;  %v3945_v51 = vsel %vm3929_vm1, %v3594_v27, %v3937_v40  ;;  %v4110_v27 = vld [vmem:[#allocation8 + $0x4c0] sm:$0xff]  ;;  %vm8609_vm1 = vcmask 254976  }
 0x23c   :  { %3867 = vmatpush2.bf16.msra.mxu0 %v8987_v59  ;;  %v10250_v59 = vpack.c.bf16 %v3943_v63, %v3943_v63  ;;  %v10253_v62 = vpack.c.bf16 %v3945_v51, %v3945_v51  ;;  %v3966_v42 = vld [vmem:[#allocation8 + $0x40] sm:$0xff] }
 0x23d   :  { %3868 = vmatprep.subr.bf16.mxu0 %v8980_v16  ;;  %v4126_v16 = vld [vmem:[#allocation8 + $0x540] sm:$0xff] }
 0x23e   :  { %3908 = vmatpush2.bf16.msra.mxu1 %v9115_v4  ;;  %v9318_v4 = vcombine.high %v4134_v50, %v4138_v60  ;;  %v3970_v46 = vld [vmem:[#allocation8 + $0x60] sm:$0xff] }
 0x23f   :  { %3909 = vmatprep.subr.bf16.mxu1 %v9108_v61  ;;  %v4130_v61 = vld [vmem:[#allocation8 + $0x560] sm:$0xff] }
 0x240   :  { %3869 = vmatpush2.bf16.msra.mxu0 %v8979_v22  ;;  %v9310_v9 = vcombine.high %v4126_v16, %v4130_v61  ;;  %v4094_v63 = vld [vmem:[#allocation8 + $0x440] sm:$0xff] }
 0x241   :  { %3870 = vmatprep.subr.bf16.mxu0 %v8972_v7  ;;  %v9182_v7 = vcombine.high %v3998_v11, %v4002_v56 }
 0x242   :  { %3910 = vmatpush2.bf16.msra.mxu1 %v9107_v25  ;;  %v9317_v25 = vcombine.low %v4134_v50, %v4138_v60  ;;  %v9150_v60 = vcombine.high %v3966_v42, %v3970_v46 }
 0x243   :  { %3911 = vmatprep.subr.bf16.mxu1 %v9100_v8 }
 0x244   :  { %3871 = vmatpush2.bf16.msra.mxu0 %v8971_v14  ;;  %v4122_v14 = vld [vmem:[#allocation8 + $0x520] sm:$0xff] }
 0x245   :  { %3872 = vmatprep.subr.bf16.mxu0 %v8964_v19  ;;  %v9302_v26 = vcombine.high %v4118_v13, %v4122_v14 }
 0x246   :  { %3912 = vmatpush2.bf16.msra.mxu1 %v9099_v17  ;;  %v9181_v17 = vcombine.low %v3998_v11, %v4002_v56  ;;  %v4086_v11 = vld [vmem:[#allocation8 + $0x400] sm:$0xff] }
 0x247   :  { %3913 = vmatprep.subr.bf16.mxu1 %v9092_v20  ;;  %v9309_v20 = vcombine.low %v4126_v16, %v4130_v61  ;;  %v4090_v56 = vld [vmem:[#allocation8 + $0x420] sm:$0xff] }
 0x248   :  { %3873 = vmatpush2.bf16.msra.mxu0 %v8963_v36  ;;  %v3986_v36 = vld [vmem:[#allocation8 + $0xe0] sm:$0xff]  ;;  %v9270_v61 = vcombine.high %v4086_v11, %v4090_v56 }
 0x249   :  { %3874 = vmatprep.subr.bf16.mxu0 %v8956_v31  ;;  %v9173_v31 = vcombine.low %v3990_v10, %v3994_v12  ;;  %v9166_v18 = vcombine.high %v3982_v30, %v3986_v36  ;;  %v9165_v40 = vcombine.low %v3982_v30, %v3986_v36  ;;  %v4190_v30 = vld [vmem:[#allocation8 + $0x740] sm:$0xff] }
 0x24a   :  { %3914 = vmatpush2.bf16.msra.mxu1 %v9091_v29  ;;  %v4114_v29 = vld [vmem:[#allocation8 + $0x4e0] sm:$0xff] }
 0x24b   :  { %3915 = vmatprep.subr.bf16.mxu1 %v9084_v5  ;;  %v9301_v5 = vcombine.low %v4118_v13, %v4122_v14  ;;  %v9294_v32 = vcombine.high %v4110_v27, %v4114_v29  ;;  %v4074_v13 = vld [vmem:[#allocation8 + $0x3a0] sm:$0xff] }
 0x24c   :  { %3875 = vmatpush2.bf16.msra.mxu0 %v8955_v38  ;;  %v4106_v38 = vld [vmem:[#allocation8 + $0x4a0] sm:$0xff] }
 0x24d   :  { %7072 = vmatprep.subr.bf16.mxu0 %v9198_v41  ;;  %v9158_v41 = vcombine.high %v3974_v53, %v3978_v35  ;;  %v9285_v50 = vcombine.low %v4102_v37, %v4106_v38  ;;  %v4198_v14 = vld [vmem:[#allocation8 + $0x780] sm:$0xff] }
 0x24e   :  { %3916 = vmatpush2.bf16.msra.mxu1 %v9083_v23  ;;  %v9293_v23 = vcombine.low %v4110_v27, %v4114_v29  ;;  %v4194_v36 = vld [vmem:[#allocation8 + $0x760] sm:$0xff] }
 0x24f   :  { %7113 = vmatprep.subr.bf16.mxu1 %v9326_v45  ;;  %v3632_v54 = vpop.f32.mrf.mxu0  ;;  %3877 = vmatmul.mubr.bf16.vlgmr.msra.gmra.mxu0 %v10169_v57  ;;  %v9286_v45 = vcombine.high %v4102_v37, %v4106_v38  ;;  %v9373_v38 = vcombine.low %v4190_v30, %v4194_v36 }
 0x250   :  { %v3633_v0 = vadd.f32 %v3632_v54, %v689_v48  ;;  %7073 = vmatpush1.bf16.msra.mxu0 %v9197_v49  ;;  %7104 = vmatprep.mubr.bf16.mxu0 %v10250_v59  ;;  %v4098_v48 = vld [vmem:[#allocation8 + $0x460] sm:$0xff]  ;;  %v9157_v49 = vcombine.low %v3974_v53, %v3978_v35  ;;  %v9149_v54 = vcombine.low %v3966_v42, %v3970_v46 }
 0x251   :  { %v3673_v1 = vpop.f32.mrf.mxu1  ;;  %3918 = vmatmul.mubr.bf16.vlgmr.msra.gmra.mxu1 %v10173_v58  ;;  %v10257_v22 = vpop.f32.mrf.mxu0  ;;  %7074 = vmatprep.subr.bf16.mxu0 %v9190_v55  ;;  %v9278_v51 = vcombine.high %v4094_v63, %v4098_v48  ;;  %v3962_v55 = vld [vmem:[#allocation8 + $0x20] sm:$0xff] }
 0x252   :  { %7114 = vmatpush1.bf16.msra.mxu1 %v9325_v52  ;;  %v10259_v8 = vadd.f32 %v3673_v1, %v3633_v0  ;;  %7145 = vmatprep.mubr.bf16.mxu1 %v10253_v62  ;;  %v3958_v52 = vld [vmem:[#allocation8] sm:$0xff] }
 0x253   :  { %v10262_v57 = vpop.f32.mrf.mxu1  ;;  %v3636_v58 = vpop.f32.mrf.mxu0  ;;  %7115 = vmatprep.subr.bf16.mxu1 %v9318_v4  ;;  %v9277_v4 = vcombine.low %v4094_v63, %v4098_v48  ;;  %v9142_v16 = vcombine.high %v3958_v52, %v3962_v55  ;;  %v4078_v0 = vld [vmem:[#allocation8 + $0x3c0] sm:$0xff] }
 0x254   :  { %7075 = vmatpush1.bf16.msra.mxu0 %v9189_v3  ;;  %v4082_v1 = vld [vmem:[#allocation8 + $0x3e0] sm:$0xff] }
 0x255   :  { %v3677_v15 = vpop.f32.mrf.mxu1  ;;  %v3637_v19 = vpop.f32.mrf.mxu0  ;;  %7076 = vmatprep.subr.bf16.mxu0 %v9182_v7  ;;  %v4206_v3 = vld [vmem:[#allocation8 + $0x7c0] sm:$0xff]  ;;  %v9141_v7 = vcombine.low %v3958_v52, %v3962_v55  ;;  %v9262_v10 = vcombine.high %v4078_v0, %v4082_v1 }
 0x256   :  { %7116 = vmatpush1.bf16.msra.mxu1 %v9317_v25  ;;  %v4210_v25 = vld [vmem:[#allocation8 + $0x7e0] sm:$0xff] }
 0x257   :  { %v3678_v24 = vpop.f32.mrf.mxu1  ;;  %7117 = vmatprep.subr.bf16.mxu1 %v9310_v9  ;;  %v9269_v9 = vcombine.low %v4086_v11, %v4090_v56  ;;  %v9390_v12 = vcombine.high %v4206_v3, %v4210_v25  ;;  %v4070_v58 = vld [vmem:[#allocation8 + $0x380] sm:$0xff]  ;;  %v9389_v19 = vcombine.low %v4206_v3, %v4210_v25 }
 0x258   :  { %7077 = vmatpush1.bf16.msra.mxu0 %v9181_v17  ;;  %v4202_v15 = vld [vmem:[#allocation8 + $0x7a0] sm:$0xff]  ;;  %v9261_v17 = vcombine.low %v4078_v0, %v4082_v1  ;;  %v9253_v27 = vcombine.low %v4070_v58, %v4074_v13 }
 0x259   :  { %7078 = vmatprep.subr.bf16.mxu0 %v9174_v33  ;;  %v9382_v33 = vcombine.high %v4198_v14, %v4202_v15  ;;  %v4062_v24 = vld [vmem:[#allocation8 + $0x340] sm:$0xff]  ;;  %v9381_v29 = vcombine.low %v4198_v14, %v4202_v15  ;;  %v692_v14 = vsub.s32 5, %v10120_v44 }
 0x25a   :  { %7118 = vmatpush1.bf16.msra.mxu1 %v9309_v20  ;;  %v9254_v20 = vcombine.high %v4070_v58, %v4074_v13  ;;  %v4182_v53 = vld [vmem:[#allocation8 + $0x700] sm:$0xff] }
 0x25b   :  { %7119 = vmatprep.subr.bf16.mxu1 %v9302_v26  ;;  %v4066_v26 = vld [vmem:[#allocation8 + $0x360] sm:$0xff] }
 0x25c   :  { %7079 = vmatpush1.bf16.msra.mxu0 %v9173_v31  ;;  %v9246_v31 = vcombine.high %v4062_v24, %v4066_v26  ;;  %v4186_v35 = vld [vmem:[#allocation8 + $0x720] sm:$0xff]  ;;  %v9245_v37 = vcombine.low %v4062_v24, %v4066_v26 }
 0x25d   :  { %7080 = vmatprep.subr.bf16.mxu0 %v9166_v18  ;;  %v4054_v18 = vld [vmem:[#allocation8 + $0x300] sm:$0xff]  ;;  %v9365_v48 = vcombine.low %v4182_v53, %v4186_v35 }
 0x25e   :  { %7120 = vmatpush1.bf16.msra.mxu1 %v9301_v5  ;;  %v9374_v5 = vcombine.high %v4190_v30, %v4194_v36  ;;  %v4174_v42 = vld [vmem:[#allocation8 + $0x6c0] sm:$0xff]  ;;  %v3936_v30 = vmul.f32 0.2, %v10232_v21 }
 0x25f   :  { %7121 = vmatprep.subr.bf16.mxu1 %v9294_v32  ;;  %v4058_v32 = vld [vmem:[#allocation8 + $0x320] sm:$0xff] }
 0x260   :  { %7081 = vmatpush1.bf16.msra.mxu0 %v9165_v40  ;;  %v9238_v40 = vcombine.high %v4054_v18, %v4058_v32  ;;  %v4178_v46 = vld [vmem:[#allocation8 + $0x6e0] sm:$0xff]  ;;  %v9237_v63 = vcombine.low %v4054_v18, %v4058_v32 }
 0x261   :  { %7082 = vmatprep.subr.bf16.mxu0 %v9158_v41  ;;  %v4046_v41 = vld [vmem:[#allocation8 + $0x2c0] sm:$0xff]  ;;  %v9357_v56 = vcombine.low %v4174_v42, %v4178_v46 }
 0x262   :  { %7122 = vmatpush1.bf16.msra.mxu1 %v9293_v23  ;;  %v9366_v23 = vcombine.high %v4182_v53, %v4186_v35  ;;  %v4166_v52 = vld [vmem:[#allocation8 + $0x680] sm:$0xff] }
 0x263   :  { %7123 = vmatprep.subr.bf16.mxu1 %v9286_v45  ;;  %v4050_v45 = vld [vmem:[#allocation8 + $0x2e0] sm:$0xff] }
 0x264   :  { %7083 = vmatpush1.bf16.msra.mxu0 %v9157_v49  ;;  %v9230_v49 = vcombine.high %v4046_v41, %v4050_v45  ;;  %v4170_v55 = vld [vmem:[#allocation8 + $0x6a0] sm:$0xff]  ;;  %v9229_v11 = vcombine.low %v4046_v41, %v4050_v45 }
 0x265   :  { %7084 = vmatprep.subr.bf16.mxu0 %v9150_v60  ;;  %v4038_v60 = vld [vmem:[#allocation8 + $0x280] sm:$0xff]  ;;  %v9349_v25 = vcombine.low %v4166_v52, %v4170_v55 }
 0x266   :  { %7124 = vmatpush1.bf16.msra.mxu1 %v9285_v50  ;;  %v9358_v50 = vcombine.high %v4174_v42, %v4178_v46  ;;  %v4158_v0 = vld [vmem:[#allocation8 + $0x640] sm:$0xff] }
 0x267   :  { %7125 = vmatprep.subr.bf16.mxu1 %v9278_v51  ;;  %v4042_v51 = vld [vmem:[#allocation8 + $0x2a0] sm:$0xff] }
 0x268   :  { %7085 = vmatpush1.bf16.msra.mxu0 %v9149_v54  ;;  %v9222_v54 = vcombine.high %v4038_v60, %v4042_v51  ;;  %v4162_v1 = vld [vmem:[#allocation8 + $0x660] sm:$0xff]  ;;  %v9221_v3 = vcombine.low %v4038_v60, %v4042_v51 }
 0x269   :  { %7086 = vmatprep.subr.bf16.mxu0 %v9142_v16  ;;  %v4030_v16 = vld [vmem:[#allocation8 + $0x240] sm:$0xff] }
 0x26a   :  { %7126 = vmatpush1.bf16.msra.mxu1 %v9277_v4  ;;  %v9350_v4 = vcombine.high %v4166_v52, %v4170_v55  ;;  %v4150_v58 = vld [vmem:[#allocation8 + $0x600] sm:$0xff] }
 0x26b   :  { %7127 = vmatprep.subr.bf16.mxu1 %v9270_v61  ;;  %v4034_v61 = vld [vmem:[#allocation8 + $0x260] sm:$0xff] }
 0x26c   :  { %7087 = vmatpush1.bf16.msra.mxu0 %v9141_v7  ;;  %v9214_v7 = vcombine.high %v4030_v16, %v4034_v61  ;;  %v4154_v13 = vld [vmem:[#allocation8 + $0x620] sm:$0xff]  ;;  %v9213_v15 = vcombine.low %v4030_v16, %v4034_v61 }
 0x26d   :  { %7088 = vmatprep.subr.bf16.mxu0 %v9262_v10  ;;  %v4022_v10 = vld [vmem:[#allocation8 + $0x200] sm:$0xff] }
 0x26e   :  { %7128 = vmatpush1.bf16.msra.mxu1 %v9269_v9  ;;  %v9342_v9 = vcombine.high %v4158_v0, %v4162_v1  ;;  %v4270_v24 = vld [vmem:[#allocation8 + $0x9c0] sm:$0xff] }
 0x26f   :  { %7129 = vmatprep.subr.bf16.mxu1 %v9390_v12  ;;  %v4026_v12 = vld [vmem:[#allocation8 + $0x220] sm:$0xff] }
 0x270   :  { %7089 = vmatpush2.bf16.msra.mxu0 %v9261_v17  ;;  %v9341_v17 = vcombine.low %v4158_v0, %v4162_v1  ;;  %v4274_v26 = vld [vmem:[#allocation8 + $0x9e0] sm:$0xff] }
 0x271   :  { %7090 = vmatprep.subr.bf16.mxu0 %v9254_v20  ;;  %v3934_v20 = vmul.f32 0.2, %v10204_v43  ;;  %v4398_v36 = vld [vmem:[#allocation8 + $0xdc0] sm:$0xff]  ;;  %v9454_v18 = vcombine.high %v4270_v24, %v4274_v26 }
 0x272   :  { %7130 = vmatpush2.bf16.msra.mxu1 %v9389_v19  ;;  %v9206_v19 = vcombine.high %v4022_v10, %v4026_v12  ;;  %v4262_v53 = vld [vmem:[#allocation8 + $0x980] sm:$0xff] }
 0x273   :  { %7131 = vmatprep.subr.bf16.mxu1 %v9382_v33  ;;  %v9334_v33 = vcombine.high %v4150_v58, %v4154_v13  ;;  %v3942_v32 = vsel %vm3926_vm2, %v10204_v43, %v3934_v20  ;;  %v4266_v35 = vld [vmem:[#allocation8 + $0x9a0] sm:$0xff] }
 0x274   :  { %7091 = vmatpush2.bf16.msra.mxu0 %v9253_v27  ;;  %v4402_v27 = vld [vmem:[#allocation8 + $0xde0] sm:$0xff]  ;;  %v10275_v45 = vpack.c.bf16 %v3942_v32, %v3942_v32  ;;  %v9446_v42 = vcombine.high %v4262_v53, %v4266_v35  ;;  %v9445_v52 = vcombine.low %v4262_v53, %v4266_v35  ;;  %v10288_v32 = vld [vmem:[#allocation8 + $0x5c8] sm:$0xff] }
 0x275   :  { %7092 = vmatprep.subr.bf16.mxu0 %v9246_v31  ;;  %v9205_v31 = vcombine.low %v4022_v10, %v4026_v12  ;;  %v9581_v46 = vcombine.low %v4398_v36, %v4402_v27  ;;  %v4254_v43 = vld [vmem:[#allocation8 + $0x940] sm:$0xff]  ;;  %v10290_v53 = vld [vmem:[#allocation8 + $0x5e8] sm:$0xff] }
 0x276   :  { %7132 = vmatpush2.bf16.msra.mxu1 %v9381_v29  ;;  %v693_v29 = vrot.slane %v10245_v47, %v692_v14  ;;  %v9453_v47 = vcombine.low %v4270_v24, %v4274_v26  ;;  %v4246_v16 = vld [vmem:[#allocation8 + $0x900] sm:$0xff] }
 0x277   :  { %7133 = vmatprep.subr.bf16.mxu1 %v9374_v5  ;;  %v9333_v5 = vcombine.low %v4150_v58, %v4154_v13  ;;  %v4250_v61 = vld [vmem:[#allocation8 + $0x920] sm:$0xff] }
 0x278   :  { %7093 = vmatpush2.bf16.msra.mxu0 %v9245_v37  ;;  %v9582_v37 = vcombine.high %v4398_v36, %v4402_v27  ;;  %v3635_v41 = vadd.f32 %v10257_v22, %v693_v29  ;;  %v4386_v22 = vld [vmem:[#allocation8 + $0xd60] sm:$0xff]  ;;  %v9430_v12 = vcombine.high %v4246_v16, %v4250_v61 }
 0x279   :  { %7094 = vmatprep.subr.bf16.mxu0 %v9238_v40  ;;  %v4390_v40 = vld [vmem:[#allocation8 + $0xd80] sm:$0xff] }
 0x27a   :  { %7134 = vmatpush2.bf16.msra.mxu1 %v9373_v38  ;;  %v3944_v38 = vsel %vm3928_vm3, %v10232_v21, %v3936_v30  ;;  %v4382_v21 = vld [vmem:[#allocation8 + $0xd40] sm:$0xff]  ;;  %v3676_v60 = vadd.f32 %v10262_v57, %v3635_v41  ;;  %v9429_v30 = vcombine.low %v4246_v16, %v4250_v61 }
 0x27b   :  { %7135 = vmatprep.subr.bf16.mxu1 %v9366_v23  ;;  %v4394_v23 = vld [vmem:[#allocation8 + $0xda0] sm:$0xff]  ;;  %v9566_v0 = vcombine.high %v4382_v21, %v4386_v22  ;;  %v9565_v58 = vcombine.low %v4382_v21, %v4386_v22 }
 0x27c   :  { %7095 = vmatpush2.bf16.msra.mxu0 %v9237_v63  ;;  %v10277_v63 = vpack.c.bf16 %v3944_v38, %v3944_v38  ;;  %v4378_v57 = vld [vmem:[#allocation8 + $0xd20] sm:$0xff]  ;;  %v9327_v38 = vcombine.low %v10288_v32, %v10290_v53 }
 0x27d   :  { %7096 = vmatprep.subr.bf16.mxu0 %v9230_v49  ;;  %v9574_v49 = vcombine.high %v4390_v40, %v4394_v23  ;;  %v4370_v24 = vld [vmem:[#allocation8 + $0xce0] sm:$0xff] }
 0x27e   :  { %7136 = vmatpush2.bf16.msra.mxu1 %v9365_v48  ;;  %v4258_v48 = vld [vmem:[#allocation8 + $0x960] sm:$0xff] }
 0x27f   :  { %7137 = vmatprep.subr.bf16.mxu1 %v9358_v50  ;;  %v4230_v29 = vld [vmem:[#allocation8 + $0x880] sm:$0xff] }
 0x280   :  { %7097 = vmatpush2.bf16.msra.mxu0 %v9229_v11  ;;  %v9438_v11 = vcombine.high %v4254_v43, %v4258_v48  ;;  %v4358_v35 = vld [vmem:[#allocation8 + $0xc80] sm:$0xff] }
 0x281   :  { %7098 = vmatprep.subr.bf16.mxu0 %v9222_v54  ;;  %v4334_v61 = vld [vmem:[#allocation8 + $0xbc0] sm:$0xff] }
 0x282   :  { %7138 = vmatpush2.bf16.msra.mxu1 %v9357_v56  ;;  %v9573_v56 = vcombine.low %v4390_v40, %v4394_v23 }
 0x283   :  { %7139 = vmatprep.subr.bf16.mxu1 %v9350_v4 }
 0x284   :  { %7099 = vmatpush2.bf16.msra.mxu0 %v9221_v3  ;;  %v4374_v3 = vld [vmem:[#allocation8 + $0xd00] sm:$0xff] }
 0x285   :  { %7100 = vmatprep.subr.bf16.mxu0 %v9214_v7  ;;  %v9558_v20 = vcombine.high %v4374_v3, %v4378_v57 }
 0x286   :  { %7140 = vmatpush2.bf16.msra.mxu1 %v9349_v25 }
 0x287   :  { %7141 = vmatprep.subr.bf16.mxu1 %v9342_v9  ;;  %v9437_v9 = vcombine.low %v4254_v43, %v4258_v48  ;;  %v4350_v43 = vld [vmem:[#allocation8 + $0xc40] sm:$0xff] }
 0x288   :  { %7101 = vmatpush2.bf16.msra.mxu0 %v9213_v15  ;;  %v4354_v48 = vld [vmem:[#allocation8 + $0xc60] sm:$0xff] }
 0x289   :  { %7102 = vmatprep.subr.bf16.mxu0 %v9206_v19  ;;  %v4242_v19 = vld [vmem:[#allocation8 + $0x8e0] sm:$0xff]  ;;  %v9533_v16 = vcombine.low %v4350_v43, %v4354_v48 }
 0x28a   :  { %7142 = vmatpush2.bf16.msra.mxu1 %v9341_v17  ;;  %v4238_v17 = vld [vmem:[#allocation8 + $0x8c0] sm:$0xff] }
 0x28b   :  { %7143 = vmatprep.subr.bf16.mxu1 %v9334_v33  ;;  %v4366_v33 = vld [vmem:[#allocation8 + $0xcc0] sm:$0xff]  ;;  %v9422_v27 = vcombine.high %v4238_v17, %v4242_v19  ;;  %v9421_v40 = vcombine.low %v4238_v17, %v4242_v19 }
 0x28c   :  { %7103 = vmatpush2.bf16.msra.mxu0 %v9205_v31  ;;  %v9557_v31 = vcombine.low %v4374_v3, %v4378_v57  ;;  %v9549_v41 = vcombine.low %v4366_v33, %v4370_v24  ;;  %v4462_v3 = vld [vmem:[#allocation8 + $0xfc0] sm:$0xff] }
 0x28d   :  { %7154 = vmatprep.subr.bf16.mxu0 %v9454_v18  ;;  %v9550_v18 = vcombine.high %v4366_v33, %v4370_v24  ;;  %v4466_v57 = vld [vmem:[#allocation8 + $0xfe0] sm:$0xff] }
 0x28e   :  { %7144 = vmatpush2.bf16.msra.mxu1 %v9333_v5  ;;  %v4234_v5 = vld [vmem:[#allocation8 + $0x8a0] sm:$0xff] }
 0x28f   :  { %7195 = vmatprep.subr.bf16.mxu1 %v9582_v37  ;;  %v10279_v50 = vpop.f32.mrf.mxu0  ;;  %7105 = vmatmul.mubr.bf16.vlgmr.msra.gmra.mxu0 %v10275_v45  ;;  %v4362_v37 = vld [vmem:[#allocation8 + $0xca0] sm:$0xff]  ;;  %v9414_v23 = vcombine.high %v4230_v29, %v4234_v5 }
 0x290   :  { %7155 = vmatpush1.bf16.msra.mxu0 %v9453_v47  ;;  %v4222_v47 = vld [vmem:[#allocation8 + $0x840] sm:$0xff]  ;;  %v9541_v22 = vcombine.low %v4358_v35, %v4362_v37 }
 0x291   :  { %v10283_v51 = vpop.f32.mrf.mxu1  ;;  %7146 = vmatmul.mubr.bf16.vlgmr.msra.gmra.mxu1 %v10277_v63  ;;  %v3716_v55 = vpop.f32.mrf.mxu0  ;;  %7156 = vmatprep.subr.bf16.mxu0 %v9446_v42  ;;  %v4226_v42 = vld [vmem:[#allocation8 + $0x860] sm:$0xff] }
 0x292   :  { %7196 = vmatpush1.bf16.msra.mxu1 %v9581_v46  ;;  %v3717_v54 = vadd.f32 %v3716_v55, %v3676_v60  ;;  %v9542_v46 = vcombine.high %v4358_v35, %v4362_v37  ;;  %v9406_v21 = vcombine.high %v4222_v47, %v4226_v42  ;;  %v4214_v60 = vld [vmem:[#allocation8 + $0x800] sm:$0xff]  ;;  %v9534_v55 = vcombine.high %v4350_v43, %v4354_v48 }
 0x293   :  { %v3757_v4 = vpop.f32.mrf.mxu1  ;;  %7197 = vmatprep.subr.bf16.mxu1 %v9574_v49  ;;  %v3718_v1 = vpop.f32.mrf.mxu0  ;;  %v9413_v49 = vcombine.low %v4230_v29, %v4234_v5  ;;  %v4318_v33 = vld [vmem:[#allocation8 + $0xb40] sm:$0xff] }
 0x294   :  { %v3758_v25 = vadd.f32 %v3757_v4, %v3717_v54  ;;  %7157 = vmatpush1.bf16.msra.mxu0 %v9445_v52  ;;  %v4218_v52 = vld [vmem:[#allocation8 + $0x820] sm:$0xff]  ;;  %v9405_v54 = vcombine.low %v4222_v47, %v4226_v42 }
 0x295   :  { %v3759_v7 = vpop.f32.mrf.mxu1  ;;  %v3719_v10 = vpop.f32.mrf.mxu0  ;;  %7158 = vmatprep.subr.bf16.mxu0 %v9438_v11  ;;  %v4342_v11 = vld [vmem:[#allocation8 + $0xc00] sm:$0xff]  ;;  %v9398_v4 = vcombine.high %v4214_v60, %v4218_v52 }
 0x296   :  { %7198 = vmatpush1.bf16.msra.mxu1 %v9573_v56  ;;  %vm3931_vm4 = vcmp.gt.f32.partialorder %v3758_v25, 0.0  ;;  %v3939_v13 = vmul.f32 0.2, %v3758_v25  ;;  %v4346_v56 = vld [vmem:[#allocation8 + $0xc20] sm:$0xff] }
 0x297   :  { %v3760_v15 = vpop.f32.mrf.mxu1  ;;  %7199 = vmatprep.subr.bf16.mxu1 %v9566_v0  ;;  %v4338_v0 = vld [vmem:[#allocation8 + $0xbe0] sm:$0xff]  ;;  %v9526_v1 = vcombine.high %v4342_v11, %v4346_v56 }
 0x298   :  { %v3947_v26 = vsel %vm3931_vm4, %v3758_v25, %v3939_v13  ;;  %7159 = vmatpush1.bf16.msra.mxu0 %v9437_v9  ;;  %v9397_v25 = vcombine.low %v4214_v60, %v4218_v52  ;;  %v9518_v7 = vcombine.high %v4334_v61, %v4338_v0  ;;  %v9525_v9 = vcombine.low %v4342_v11, %v4346_v56  ;;  %v4326_v10 = vld [vmem:[#allocation8 + $0xb80] sm:$0xff] }
 0x299   :  { %v10286_v36 = vpack.c.bf16 %v3947_v26, %v3947_v26  ;;  %7160 = vmatprep.subr.bf16.mxu0 %v9430_v12  ;;  %v4330_v12 = vld [vmem:[#allocation8 + $0xba0] sm:$0xff]  ;;  %v9517_v17 = vcombine.low %v4334_v61, %v4338_v0 }
 0x29a   :  { %7200 = vmatpush1.bf16.msra.mxu1 %v9565_v58  ;;  %v9646_v58 = vcombine.high %v4462_v3, %v4466_v57  ;;  %v4454_v13 = vld [vmem:[#allocation8 + $0xf80] sm:$0xff]  ;;  %v9510_v19 = vcombine.high %v4326_v10, %v4330_v12  ;;  %v9509_v29 = vcombine.low %v4326_v10, %v4330_v12 }
 0x29b   :  { %7201 = vmatprep.subr.bf16.mxu1 %v9558_v20  ;;  %7186 = vmatprep.mubr.bf16.mxu0 %v10286_v36  ;;  %v4458_v15 = vld [vmem:[#allocation8 + $0xfa0] sm:$0xff]  ;;  %v9645_v20 = vcombine.low %v4462_v3, %v4466_v57 }
 0x29c   :  { %7161 = vmatpush1.bf16.msra.mxu0 %v9429_v30  ;;  %v4322_v24 = vld [vmem:[#allocation8 + $0xb60] sm:$0xff]  ;;  %v9638_v26 = vcombine.high %v4454_v13, %v4458_v15  ;;  %v9637_v5 = vcombine.low %v4454_v13, %v4458_v15 }
 0x29d   :  { %7162 = vmatprep.subr.bf16.mxu0 %v9422_v27  ;;  %v4446_v30 = vld [vmem:[#allocation8 + $0xf40] sm:$0xff] }
 0x29e   :  { %7202 = vmatpush1.bf16.msra.mxu1 %v9557_v31  ;;  %v4450_v27 = vld [vmem:[#allocation8 + $0xf60] sm:$0xff]  ;;  %v9502_v31 = vcombine.high %v4318_v33, %v4322_v24 }
 0x29f   :  { %7203 = vmatprep.subr.bf16.mxu1 %v9550_v18  ;;  %v4310_v18 = vld [vmem:[#allocation8 + $0xb00] sm:$0xff]  ;;  %v9630_v37 = vcombine.high %v4446_v30, %v4450_v27  ;;  %v9629_v42 = vcombine.low %v4446_v30, %v4450_v27  ;;  %v4015_v30 = vld [vmem:[#allocation8 + $0x1c8] sm:$0xff] }
 0x2a0   :  { %7163 = vmatpush1.bf16.msra.mxu0 %v9421_v40  ;;  %v4314_v35 = vld [vmem:[#allocation8 + $0xb20] sm:$0xff]  ;;  %v4019_v27 = vld [vmem:[#allocation8 + $0x1e8] sm:$0xff] }
 0x2a1   :  { %7164 = vmatprep.subr.bf16.mxu0 %v9414_v23  ;;  %v4438_v40 = vld [vmem:[#allocation8 + $0xf00] sm:$0xff]  ;;  %v9494_v47 = vcombine.high %v4310_v18, %v4314_v35 }
 0x2a2   :  { %7204 = vmatpush1.bf16.msra.mxu1 %v9549_v41  ;;  %v4442_v23 = vld [vmem:[#allocation8 + $0xf20] sm:$0xff]  ;;  %v9501_v41 = vcombine.low %v4318_v33, %v4322_v24 }
 0x2a3   :  { %7205 = vmatprep.subr.bf16.mxu1 %v9542_v46  ;;  %v4302_v46 = vld [vmem:[#allocation8 + $0xac0] sm:$0xff]  ;;  %v9622_v48 = vcombine.high %v4438_v40, %v4442_v23  ;;  %v9621_v52 = vcombine.low %v4438_v40, %v4442_v23  ;;  %v9328_v40 = vcombine.high %v10288_v32, %v10290_v53  ;;  %v9199_v23 = vcombine.low %v4015_v30, %v4019_v27  ;;  %v4215_v53 = vld [vmem:[#allocation8 + $0x808] sm:$0xff] }
 0x2a4   :  { %7165 = vmatpush1.bf16.msra.mxu0 %v9413_v49  ;;  %v4306_v43 = vld [vmem:[#allocation8 + $0xae0] sm:$0xff] }
 0x2a5   :  { %7166 = vmatprep.subr.bf16.mxu0 %v9406_v21  ;;  %v4430_v49 = vld [vmem:[#allocation8 + $0xec0] sm:$0xff]  ;;  %v9486_v60 = vcombine.high %v4302_v46, %v4306_v43 }
 0x2a6   :  { %7206 = vmatpush1.bf16.msra.mxu1 %v9541_v22  ;;  %v4434_v21 = vld [vmem:[#allocation8 + $0xee0] sm:$0xff]  ;;  %v9493_v22 = vcombine.low %v4310_v18, %v4314_v35  ;;  %v4007_v35 = vld [vmem:[#allocation8 + $0x188] sm:$0xff] }
 0x2a7   :  { %7207 = vmatprep.subr.bf16.mxu1 %v9534_v55  ;;  %v4294_v55 = vld [vmem:[#allocation8 + $0xa80] sm:$0xff]  ;;  %v9614_v56 = vcombine.high %v4430_v49, %v4434_v21  ;;  %v9613_v0 = vcombine.low %v4430_v49, %v4434_v21 }
 0x2a8   :  { %7167 = vmatpush1.bf16.msra.mxu0 %v9405_v54  ;;  %v4298_v11 = vld [vmem:[#allocation8 + $0xaa0] sm:$0xff] }
 0x2a9   :  { %7168 = vmatprep.subr.bf16.mxu0 %v9398_v4  ;;  %v4422_v54 = vld [vmem:[#allocation8 + $0xe80] sm:$0xff]  ;;  %v9478_v61 = vcombine.high %v4294_v55, %v4298_v11  ;;  %v9477_v10 = vcombine.low %v4294_v55, %v4298_v11  ;;  %v3995_v55 = vld [vmem:[#allocation8 + $0x128] sm:$0xff] }
 0x2aa   :  { %7208 = vmatpush1.bf16.msra.mxu1 %v9533_v16  ;;  %v4426_v4 = vld [vmem:[#allocation8 + $0xea0] sm:$0xff]  ;;  %v9485_v16 = vcombine.low %v4302_v46, %v4306_v43  ;;  %v4003_v46 = vld [vmem:[#allocation8 + $0x168] sm:$0xff] }
 0x2ab   :  { %7209 = vmatprep.subr.bf16.mxu1 %v9526_v1  ;;  %v3715_v1 = vadd.f32 %v10279_v50, %v10259_v8  ;;  %v4286_v3 = vld [vmem:[#allocation8 + $0xa40] sm:$0xff] }
 0x2ac   :  { %7169 = vmatpush1.bf16.msra.mxu0 %v9397_v25  ;;  %v4290_v57 = vld [vmem:[#allocation8 + $0xa60] sm:$0xff]  ;;  %v9606_v25 = vcombine.high %v4422_v54, %v4426_v4 }
 0x2ad   :  { %7170 = vmatprep.subr.bf16.mxu0 %v9518_v7  ;;  %v4414_v7 = vld [vmem:[#allocation8 + $0xe40] sm:$0xff]  ;;  %v9470_v12 = vcombine.high %v4286_v3, %v4290_v57  ;;  %v3756_v13 = vadd.f32 %v10283_v51, %v3715_v1  ;;  %v9469_v50 = vcombine.low %v4286_v3, %v4290_v57  ;;  %v3987_v1 = vld [vmem:[#allocation8 + $0xe8] sm:$0xff] }
 0x2ae   :  { %7210 = vmatpush1.bf16.msra.mxu1 %v9525_v9  ;;  %v4418_v9 = vld [vmem:[#allocation8 + $0xe60] sm:$0xff] }
 0x2af   :  { %7211 = vmatprep.subr.bf16.mxu1 %v9646_v58  ;;  %v9605_v58 = vcombine.low %v4422_v54, %v4426_v4  ;;  %v4278_v15 = vld [vmem:[#allocation8 + $0xa00] sm:$0xff]  ;;  %v9597_v24 = vcombine.low %v4414_v7, %v4418_v9  ;;  %vm3930_vm5 = vcmp.gt.f32.partialorder %v3756_v13, 0.0 }
 0x2b0   :  { %7171 = vmatpush2.bf16.msra.mxu0 %v9517_v17  ;;  %v4282_v17 = vld [vmem:[#allocation8 + $0xa20] sm:$0xff] }
 0x2b1   :  { %7172 = vmatprep.subr.bf16.mxu0 %v9510_v19  ;;  %v9598_v19 = vcombine.high %v4414_v7, %v4418_v9  ;;  %v4410_v8 = vld [vmem:[#allocation8 + $0xe20] sm:$0xff]  ;;  %v9462_v33 = vcombine.high %v4278_v15, %v4282_v17  ;;  %v9461_v51 = vcombine.low %v4278_v15, %v4282_v17  ;;  %v3979_v7 = vld [vmem:[#allocation8 + $0xa8] sm:$0xff] }
 0x2b2   :  { %7212 = vmatpush2.bf16.msra.mxu1 %v9645_v20  ;;  %v4406_v20 = vld [vmem:[#allocation8 + $0xe00] sm:$0xff]  ;;  %v3959_v17 = vld [vmem:[#allocation8 + $0x8] sm:$0xff] }
 0x2b3   :  { %7213 = vmatprep.subr.bf16.mxu1 %v9638_v26  ;;  %v3938_v26 = vmul.f32 0.2, %v3756_v13 }
 0x2b4   :  { %7173 = vmatpush2.bf16.msra.mxu0 %v9509_v29  ;;  %v9590_v29 = vcombine.high %v4406_v20, %v4410_v8 }
 0x2b5   :  { %7174 = vmatprep.subr.bf16.mxu0 %v9502_v31  ;;  %v9200_v31 = vcombine.high %v4015_v30, %v4019_v27  ;;  %v3946_v18 = vsel %vm3930_vm5, %v3756_v13, %v3938_v26  ;;  %v4071_v30 = vld [vmem:[#allocation8 + $0x388] sm:$0xff] }
 0x2b6   :  { %7214 = vmatpush2.bf16.msra.mxu1 %v9637_v5  ;;  %v9589_v5 = vcombine.low %v4406_v20, %v4410_v8  ;;  %v4075_v27 = vld [vmem:[#allocation8 + $0x3a8] sm:$0xff] }
 0x2b7   :  { %7215 = vmatprep.subr.bf16.mxu1 %v9630_v37  ;;  %v4011_v37 = vld [vmem:[#allocation8 + $0x1a8] sm:$0xff] }
 0x2b8   :  { %7175 = vmatpush2.bf16.msra.mxu0 %v9501_v41  ;;  %v10300_v41 = vpack.c.bf16 %v3946_v18, %v3946_v18  ;;  %v9191_v49 = vcombine.low %v4007_v35, %v4011_v37  ;;  %v9255_v18 = vcombine.low %v4071_v30, %v4075_v27 }
 0x2b9   :  { %7176 = vmatprep.subr.bf16.mxu0 %v9494_v47  ;;  %v9192_v47 = vcombine.high %v4007_v35, %v4011_v37  ;;  %v4055_v37 = vld [vmem:[#allocation8 + $0x308] sm:$0xff] }
 0x2ba   :  { %7216 = vmatpush2.bf16.msra.mxu1 %v9629_v42  ;;  %v3999_v42 = vld [vmem:[#allocation8 + $0x148] sm:$0xff] }
 0x2bb   :  { %7217 = vmatprep.subr.bf16.mxu1 %v9622_v48  ;;  %v9183_v54 = vcombine.low %v3999_v42, %v4003_v46 }
 0x2bc   :  { %7177 = vmatpush2.bf16.msra.mxu0 %v9493_v22  ;;  %v9184_v22 = vcombine.high %v3999_v42, %v4003_v46  ;;  %v4047_v42 = vld [vmem:[#allocation8 + $0x2c8] sm:$0xff] }
 0x2bd   :  { %7178 = vmatprep.subr.bf16.mxu0 %v9486_v60  ;;  %v4051_v46 = vld [vmem:[#allocation8 + $0x2e8] sm:$0xff] }
 0x2be   :  { %7218 = vmatpush2.bf16.msra.mxu1 %v9621_v52  ;;  %v3991_v52 = vld [vmem:[#allocation8 + $0x108] sm:$0xff] }
 0x2bf   :  { %7219 = vmatprep.subr.bf16.mxu1 %v9614_v56  ;;  %v9175_v3 = vcombine.low %v3991_v52, %v3995_v55 }
 0x2c0   :  { %7179 = vmatpush2.bf16.msra.mxu0 %v9485_v16  ;;  %v9176_v16 = vcombine.high %v3991_v52, %v3995_v55  ;;  %v4039_v52 = vld [vmem:[#allocation8 + $0x288] sm:$0xff] }
 0x2c1   :  { %7180 = vmatprep.subr.bf16.mxu0 %v9478_v61  ;;  %v4043_v55 = vld [vmem:[#allocation8 + $0x2a8] sm:$0xff] }
 0x2c2   :  { %7220 = vmatpush2.bf16.msra.mxu1 %v9613_v0  ;;  %v3983_v0 = vld [vmem:[#allocation8 + $0xc8] sm:$0xff] }
 0x2c3   :  { %7221 = vmatprep.subr.bf16.mxu1 %v9606_v25  ;;  %v9168_v57 = vcombine.high %v3983_v0, %v3987_v1  ;;  %v3975_v25 = vld [vmem:[#allocation8 + $0x88] sm:$0xff]  ;;  %v9167_v9 = vcombine.low %v3983_v0, %v3987_v1  ;;  %v696_v0 = vsub.s32 6, %v10120_v44 }
 0x2c4   :  { %7181 = vmatpush2.bf16.msra.mxu0 %v9477_v10  ;;  %v9160_v10 = vcombine.high %v3975_v25, %v3979_v7  ;;  %v9159_v13 = vcombine.low %v3975_v25, %v3979_v7  ;;  %v4023_v1 = vld [vmem:[#allocation8 + $0x208] sm:$0xff] }
 0x2c5   :  { %7182 = vmatprep.subr.bf16.mxu0 %v9470_v12  ;;  %v3967_v12 = vld [vmem:[#allocation8 + $0x48] sm:$0xff] }
 0x2c6   :  { %7222 = vmatpush2.bf16.msra.mxu1 %v9605_v58  ;;  %v3971_v58 = vld [vmem:[#allocation8 + $0x68] sm:$0xff] }
 0x2c7   :  { %7223 = vmatprep.subr.bf16.mxu1 %v9598_v19  ;;  %v9152_v15 = vcombine.high %v3967_v12, %v3971_v58  ;;  %v3963_v19 = vld [vmem:[#allocation8 + $0x28] sm:$0xff]  ;;  %v9151_v20 = vcombine.low %v3967_v12, %v3971_v58 }
 0x2c8   :  { %7183 = vmatpush2.bf16.msra.mxu0 %v9469_v50  ;;  %v9144_v8 = vcombine.high %v3959_v17, %v3963_v19  ;;  %v4079_v50 = vld [vmem:[#allocation8 + $0x3c8] sm:$0xff] }
 0x2c9   :  { %7184 = vmatprep.subr.bf16.mxu0 %v9462_v33  ;;  %v4083_v33 = vld [vmem:[#allocation8 + $0x3e8] sm:$0xff] }
 0x2ca   :  { %7224 = vmatpush2.bf16.msra.mxu1 %v9597_v24  ;;  %v9143_v24 = vcombine.low %v3959_v17, %v3963_v19  ;;  %v9264_v26 = vcombine.high %v4079_v50, %v4083_v33  ;;  %v4271_v12 = vld [vmem:[#allocation8 + $0x9c8] sm:$0xff] }
 0x2cb   :  { %7225 = vmatprep.subr.bf16.mxu1 %v9590_v29  ;;  %v9263_v29 = vcombine.low %v4079_v50, %v4083_v33  ;;  %v4275_v58 = vld [vmem:[#allocation8 + $0x9e8] sm:$0xff] }
 0x2cc   :  { %7185 = vmatpush2.bf16.msra.mxu0 %v9461_v51  ;;  %v9256_v51 = vcombine.high %v4071_v30, %v4075_v27  ;;  %v9456_v17 = vcombine.high %v4271_v12, %v4275_v58  ;;  %v9455_v33 = vcombine.low %v4271_v12, %v4275_v58  ;;  %v4255_v30 = vld [vmem:[#allocation8 + $0x948] sm:$0xff] }
 0x2cd   :  { %7236 = vmatprep.subr.bf16.mxu0 %v9200_v31  ;;  %v4063_v31 = vld [vmem:[#allocation8 + $0x348] sm:$0xff] }
 0x2ce   :  { %7226 = vmatpush2.bf16.msra.mxu1 %v9589_v5  ;;  %v4067_v5 = vld [vmem:[#allocation8 + $0x368] sm:$0xff] }
 0x2cf   :  { %7277 = vmatprep.subr.bf16.mxu1 %v9328_v40  ;;  %v10302_v43 = vpop.f32.mrf.mxu0  ;;  %7187 = vmatmul.mubr.bf16.vlgmr.msra.gmra.mxu0 %v10300_v41  ;;  %v9248_v35 = vcombine.high %v4063_v31, %v4067_v5  ;;  %v4059_v40 = vld [vmem:[#allocation8 + $0x328] sm:$0xff] }
 0x2d0   :  { %7237 = vmatpush1.bf16.msra.mxu0 %v9199_v23  ;;  %7268 = vmatprep.mubr.bf16.mxu0 %v10250_v59  ;;  %v9247_v23 = vcombine.low %v4063_v31, %v4067_v5  ;;  %v4259_v27 = vld [vmem:[#allocation8 + $0x968] sm:$0xff] }
 0x2d1   :  { %v10305_v48 = vpop.f32.mrf.mxu1  ;;  %v10308_v21 = vpop.f32.mrf.mxu0  ;;  %7238 = vmatprep.subr.bf16.mxu0 %v9192_v47  ;;  %v9240_v47 = vcombine.high %v4055_v37, %v4059_v40  ;;  %v4231_v12 = vld [vmem:[#allocation8 + $0x888] sm:$0xff] }
 0x2d2   :  { %v4235_v58 = vld [vmem:[#allocation8 + $0x8a8] sm:$0xff] }
 0x2d3   :  { %v10310_v60 = vpop.f32.mrf.mxu1  ;;  %v3800_v11 = vpop.f32.mrf.mxu0 }
 0x2d4   :  { %7239 = vmatpush1.bf16.msra.mxu0 %v9191_v49  ;;  %v9239_v49 = vcombine.low %v4055_v37, %v4059_v40  ;;  %v9231_v11 = vcombine.low %v4047_v42, %v4051_v46 }
 0x2d5   :  { %v3841_v56 = vpop.f32.mrf.mxu1  ;;  %v3801_v4 = vpop.f32.mrf.mxu0  ;;  %7240 = vmatprep.subr.bf16.mxu0 %v9184_v22  ;;  %v9232_v22 = vcombine.high %v4047_v42, %v4051_v46 }
 0x2d6   :  { %v9224_v56 = vcombine.high %v4039_v52, %v4043_v55  ;;  %v4035_v4 = vld [vmem:[#allocation8 + $0x268] sm:$0xff] }
 0x2d7   :  { %v3842_v61 = vpop.f32.mrf.mxu1 }
 0x2d8   :  { %7241 = vmatpush1.bf16.msra.mxu0 %v9183_v54  ;;  %v4031_v54 = vld [vmem:[#allocation8 + $0x248] sm:$0xff] }
 0x2d9   :  { %7242 = vmatprep.subr.bf16.mxu0 %v9176_v16  ;;  %v9223_v16 = vcombine.low %v4039_v52, %v4043_v55  ;;  %v9216_v61 = vcombine.high %v4031_v54, %v4035_v4  ;;  %v9215_v25 = vcombine.low %v4031_v54, %v4035_v4  ;;  %v4139_v4 = vld [vmem:[#allocation8 + $0x5a8] sm:$0xff] }
 0x2dc   :  { %7243 = vmatpush1.bf16.msra.mxu0 %v9175_v3  ;;  %v4027_v3 = vld [vmem:[#allocation8 + $0x228] sm:$0xff] }
 0x2dd   :  { %7244 = vmatprep.subr.bf16.mxu0 %v9168_v57  ;;  %v700_v57 = vsub.s32 7, %v10120_v44  ;;  %v9208_v7 = vcombine.high %v4023_v1, %v4027_v3 }
 0x2e0   :  { %7245 = vmatpush1.bf16.msra.mxu0 %v9167_v9  ;;  %v9899_v9 = vld [vmem:[#allocation7] sm:$0xff] }
 0x2e1   :  { %7246 = vmatprep.subr.bf16.mxu0 %v9160_v10  ;;  %v697_v10 = vrot.slane %v9899_v9, %v696_v0 }
 0x2e3   :  { %v3797_v19 = vadd.f32 %v10302_v43, %v697_v10 }
 0x2e4   :  { %7247 = vmatpush1.bf16.msra.mxu0 %v9159_v13  ;;  %v701_v13 = vrot.slane %v9899_v9, %v700_v57 }
 0x2e5   :  { %7248 = vmatprep.subr.bf16.mxu0 %v9152_v15  ;;  %v9207_v15 = vcombine.low %v4023_v1, %v4027_v3 }
 0x2e6   :  { %v3799_v50 = vadd.f32 %v10308_v21, %v701_v13  ;;  %v4127_v13 = vld [vmem:[#allocation8 + $0x548] sm:$0xff] }
 0x2e8   :  { %7249 = vmatpush1.bf16.msra.mxu0 %v9151_v20  ;;  %v4263_v20 = vld [vmem:[#allocation8 + $0x988] sm:$0xff] }
 0x2e9   :  { %7250 = vmatprep.subr.bf16.mxu0 %v9144_v8  ;;  %v4267_v8 = vld [vmem:[#allocation8 + $0x9a8] sm:$0xff] }
 0x2ea   :  { %v9447_v43 = vcombine.low %v4263_v20, %v4267_v8 }
 0x2ec   :  { %7251 = vmatpush1.bf16.msra.mxu0 %v9143_v24  ;;  %v9448_v24 = vcombine.high %v4263_v20, %v4267_v8  ;;  %v9416_v20 = vcombine.high %v4231_v12, %v4235_v58 }
 0x2ed   :  { %7252 = vmatprep.subr.bf16.mxu0 %v9264_v26  ;;  %v3838_v26 = vadd.f32 %v10305_v48, %v3797_v19  ;;  %v4247_v48 = vld [vmem:[#allocation8 + $0x908] sm:$0xff] }
 0x2f0   :  { %7253 = vmatpush2.bf16.msra.mxu0 %v9263_v29 }
 0x2f1   :  { %7254 = vmatprep.subr.bf16.mxu0 %v9256_v51  ;;  %v3840_v51 = vadd.f32 %v10310_v60, %v3799_v50  ;;  %v9439_v60 = vcombine.low %v4255_v30, %v4259_v27  ;;  %v4223_v50 = vld [vmem:[#allocation8 + $0x848] sm:$0xff] }
 0x2f4   :  { %7255 = vmatpush2.bf16.msra.mxu0 %v9255_v18  ;;  %v9440_v18 = vcombine.high %v4255_v30, %v4259_v27  ;;  %v9415_v30 = vcombine.low %v4231_v12, %v4235_v58  ;;  %v4311_v58 = vld [vmem:[#allocation8 + $0xb08] sm:$0xff] }
 0x2f5   :  { %7256 = vmatprep.subr.bf16.mxu0 %v9248_v35 }
 0x2f8   :  { %7257 = vmatpush2.bf16.msra.mxu0 %v9247_v23  ;;  %v4251_v23 = vld [vmem:[#allocation8 + $0x928] sm:$0xff] }
 0x2f9   :  { %7258 = vmatprep.subr.bf16.mxu0 %v9240_v47  ;;  %v9432_v52 = vcombine.high %v4247_v48, %v4251_v23  ;;  %v9431_v3 = vcombine.low %v4247_v48, %v4251_v23  ;;  %v4107_v48 = vld [vmem:[#allocation8 + $0x4a8] sm:$0xff] }
 0x2fc   :  { %7259 = vmatpush2.bf16.msra.mxu0 %v9239_v49 }
 0x2fd   :  { %7260 = vmatprep.subr.bf16.mxu0 %v9232_v22 }
 0x300   :  { %7261 = vmatpush2.bf16.msra.mxu0 %v9231_v11 }
 0x301   :  { %7262 = vmatprep.subr.bf16.mxu0 %v9224_v56  ;;  %v4135_v56 = vld [vmem:[#allocation8 + $0x588] sm:$0xff] }
 0x302   :  { %v9320_v9 = vcombine.high %v4135_v56, %v4139_v4  ;;  %v9319_v19 = vcombine.low %v4135_v56, %v4139_v4  ;;  %v4319_v4 = vld [vmem:[#allocation8 + $0xb48] sm:$0xff] }
 0x304   :  { %7263 = vmatpush2.bf16.msra.mxu0 %v9223_v16  ;;  %v4239_v16 = vld [vmem:[#allocation8 + $0x8c8] sm:$0xff] }
 0x305   :  { %7264 = vmatprep.subr.bf16.mxu0 %v9216_v61  ;;  %v4243_v61 = vld [vmem:[#allocation8 + $0x8e8] sm:$0xff] }
 0x306   :  { %v9424_v10 = vcombine.high %v4239_v16, %v4243_v61 }
 0x308   :  { %7265 = vmatpush2.bf16.msra.mxu0 %v9215_v25 }
 0x309   :  { %7266 = vmatprep.subr.bf16.mxu0 %v9208_v7 }
 0x30c   :  { %7267 = vmatpush2.bf16.msra.mxu0 %v9207_v15  ;;  %v4131_v15 = vld [vmem:[#allocation8 + $0x568] sm:$0xff] }
 0x30d   :  { %7318 = vmatprep.subr.bf16.mxu0 %v9456_v17  ;;  %v9423_v17 = vcombine.low %v4239_v16, %v4243_v61  ;;  %v9312_v8 = vcombine.high %v4127_v13, %v4131_v15  ;;  %v9311_v27 = vcombine.low %v4127_v13, %v4131_v15  ;;  %v4323_v16 = vld [vmem:[#allocation8 + $0xb68] sm:$0xff] }
 0x30e   :  { %v4087_v61 = vld [vmem:[#allocation8 + $0x408] sm:$0xff] }
 0x30f   :  { %v3878_v29 = vpop.f32.mrf.mxu0  ;;  %7269 = vmatmul.mubr.bf16.vlgmr.msra.gmra.mxu0 %v10275_v45  ;;  %v4315_v13 = vld [vmem:[#allocation8 + $0xb28] sm:$0xff] }
 0x310   :  { %v3879_v31 = vadd.f32 %v3878_v29, %v3838_v26  ;;  %7319 = vmatpush1.bf16.msra.mxu0 %v9455_v33  ;;  %7350 = vmatprep.mubr.bf16.mxu0 %v10286_v36  ;;  %v4227_v33 = vld [vmem:[#allocation8 + $0x868] sm:$0xff] }
 0x311   :  { %v3919_v5 = vpop.f32.mrf.mxu1  ;;  %v3880_v21 = vpop.f32.mrf.mxu0  ;;  %7320 = vmatprep.subr.bf16.mxu0 %v9448_v24  ;;  %v4119_v24 = vld [vmem:[#allocation8 + $0x508] sm:$0xff]  ;;  %v9408_v29 = vcombine.high %v4223_v50, %v4227_v33 }
 0x312   :  { %v3920_v35 = vadd.f32 %v3919_v5, %v3879_v31  ;;  %v3881_v37 = vadd.f32 %v3880_v21, %v3840_v51  ;;  %v4123_v26 = vld [vmem:[#allocation8 + $0x528] sm:$0xff]  ;;  %v9407_v5 = vcombine.low %v4223_v50, %v4227_v33 }
 0x313   :  { %v3921_v40 = vpop.f32.mrf.mxu1  ;;  %v3882_v47 = vpop.f32.mrf.mxu0  ;;  %v9304_v32 = vcombine.high %v4119_v24, %v4123_v26  ;;  %v4111_v51 = vld [vmem:[#allocation8 + $0x4c8] sm:$0xff] }
 0x314   :  { %vm3932_vm6 = vcmp.gt.f32.partialorder %v3920_v35, 0.0  ;;  %v3940_v42 = vmul.f32 0.2, %v3920_v35  ;;  %v3922_v46 = vadd.f32 %v3921_v40, %v3881_v37  ;;  %7321 = vmatpush1.bf16.msra.mxu0 %v9447_v43  ;;  %v4115_v31 = vld [vmem:[#allocation8 + $0x4e8] sm:$0xff]  ;;  %v9303_v43 = vcombine.low %v4119_v24, %v4123_v26 }
 0x315   :  { %v3923_v49 = vpop.f32.mrf.mxu1  ;;  %v3883_v22 = vpop.f32.mrf.mxu0  ;;  %7322 = vmatprep.subr.bf16.mxu0 %v9440_v18  ;;  %v9296_v18 = vcombine.high %v4111_v51, %v4115_v31  ;;  %v4339_v37 = vld [vmem:[#allocation8 + $0xbe8] sm:$0xff]  ;;  %v9295_v47 = vcombine.low %v4111_v51, %v4115_v31 }
 0x316   :  { %vm3933_vm7 = vcmp.gt.f32.partialorder %v3922_v46, 0.0  ;;  %v3941_v55 = vmul.f32 0.2, %v3922_v46  ;;  %v3948_v54 = vsel %vm3932_vm6, %v3920_v35, %v3940_v42  ;;  %v4335_v35 = vld [vmem:[#allocation8 + $0xbc8] sm:$0xff] }
 0x317   :  { %v3924_v11 = vpop.f32.mrf.mxu1  ;;  %v10326_v7 = vpack.c.bf16 %v3948_v54, %v3948_v54  ;;  %v4103_v40 = vld [vmem:[#allocation8 + $0x488] sm:$0xff]  ;;  %v9520_v42 = vcombine.high %v4335_v35, %v4339_v37 }
 0x318   :  { %v3949_v1 = vsel %vm3933_vm7, %v3922_v46, %v3941_v55  ;;  %7323 = vmatpush1.bf16.msra.mxu0 %v9439_v60  ;;  %v9288_v46 = vcombine.high %v4103_v40, %v4107_v48  ;;  %v4327_v49 = vld [vmem:[#allocation8 + $0xb88] sm:$0xff]  ;;  %v9519_v55 = vcombine.low %v4335_v35, %v4339_v37  ;;  %v9287_v11 = vcombine.low %v4103_v40, %v4107_v48 }
 0x319   :  { %v10324_v25 = vpack.c.bf16 %v3949_v1, %v3949_v1  ;;  %7324 = vmatprep.subr.bf16.mxu0 %v9432_v52  ;;  %v4331_v60 = vld [vmem:[#allocation8 + $0xba8] sm:$0xff] }
 0x31a   :  { %v4095_v22 = vld [vmem:[#allocation8 + $0x448] sm:$0xff]  ;;  %v9512_v56 = vcombine.high %v4327_v49, %v4331_v60 }
 0x31b   :  { %7227 = vmatprep.mubr.bf16.mxu1 %v10324_v25  ;;  %v4099_v52 = vld [vmem:[#allocation8 + $0x468] sm:$0xff] }
 0x31c   :  { %7228 = vmatmul.mubr.bf16.vlgmr.msra.gmra.mxu1 %v10326_v7  ;;  %7325 = vmatpush1.bf16.msra.mxu0 %v9431_v3  ;;  %v9280_v54 = vcombine.high %v4095_v22, %v4099_v52  ;;  %v4091_v1 = vld [vmem:[#allocation8 + $0x428] sm:$0xff]  ;;  %v9511_v3 = vcombine.low %v4327_v49, %v4331_v60 }
 0x31d   :  { %7278 = vmatpush1.bf16.msra.mxu1 %v9327_v38  ;;  %7309 = vmatprep.mubr.bf16.mxu1 %v10253_v62  ;;  %v4219_v38 = vld [vmem:[#allocation8 + $0x828] sm:$0xff]  ;;  %v9272_v12 = vcombine.high %v4087_v61, %v4091_v1 }
 0x31e   :  { %7279 = vmatprep.subr.bf16.mxu1 %v9320_v9  ;;  %7326 = vmatprep.subr.bf16.mxu0 %v9424_v10  ;;  %v9400_v21 = vcombine.high %v4215_v53, %v4219_v38  ;;  %v9399_v23 = vcombine.low %v4215_v53, %v4219_v38  ;;  %v9279_v9 = vcombine.low %v4095_v22, %v4099_v52  ;;  %v4207_v15 = vld [vmem:[#allocation8 + $0x7c8] sm:$0xff] }
 0x31f   :  { %v9504_v10 = vcombine.high %v4319_v4, %v4323_v16  ;;  %v4303_v33 = vld [vmem:[#allocation8 + $0xac8] sm:$0xff] }
 0x320   :  { %7327 = vmatpush1.bf16.msra.mxu0 %v9423_v17  ;;  %v4211_v17 = vld [vmem:[#allocation8 + $0x7e8] sm:$0xff] }
 0x321   :  { %7280 = vmatpush1.bf16.msra.mxu1 %v9319_v19  ;;  %7328 = vmatprep.subr.bf16.mxu0 %v9416_v20  ;;  %v9503_v19 = vcombine.low %v4319_v4, %v4323_v16  ;;  %v9271_v20 = vcombine.low %v4087_v61, %v4091_v1  ;;  %v9392_v50 = vcombine.high %v4207_v15, %v4211_v17  ;;  %v4307_v24 = vld [vmem:[#allocation8 + $0xae8] sm:$0xff]  ;;  %v4016_v16 = vld [vmem:[#allocation8 + $0x1d0] sm:$0xff] }
 0x322   :  { %7281 = vmatprep.subr.bf16.mxu1 %v9312_v8  ;;  %v9496_v8 = vcombine.high %v4311_v58, %v4315_v13  ;;  %v4199_v26 = vld [vmem:[#allocation8 + $0x788] sm:$0xff]  ;;  %v4020_v61 = vld [vmem:[#allocation8 + $0x1f0] sm:$0xff] }
 0x323   :  { %v4295_v38 = vld [vmem:[#allocation8 + $0xa88] sm:$0xff] }
 0x324   :  { %7329 = vmatpush1.bf16.msra.mxu0 %v9415_v30  ;;  %v4203_v30 = vld [vmem:[#allocation8 + $0x7a8] sm:$0xff] }
 0x325   :  { %7282 = vmatpush1.bf16.msra.mxu1 %v9311_v27  ;;  %7330 = vmatprep.subr.bf16.mxu0 %v9408_v29  ;;  %v9495_v27 = vcombine.low %v4311_v58, %v4315_v13  ;;  %v9391_v29 = vcombine.low %v4207_v15, %v4211_v17  ;;  %v9384_v53 = vcombine.high %v4199_v26, %v4203_v30  ;;  %v4299_v51 = vld [vmem:[#allocation8 + $0xaa8] sm:$0xff]  ;;  %v4008_v15 = vld [vmem:[#allocation8 + $0x190] sm:$0xff] }
 0x326   :  { %7283 = vmatprep.subr.bf16.mxu1 %v9304_v32  ;;  %v9488_v32 = vcombine.high %v4303_v33, %v4307_v24  ;;  %v4191_v31 = vld [vmem:[#allocation8 + $0x748] sm:$0xff]  ;;  %v9202_v58 = vcombine.high %v4016_v16, %v4020_v61  ;;  %v4012_v17 = vld [vmem:[#allocation8 + $0x1b0] sm:$0xff] }
 0x327   :  { %v4287_v37 = vld [vmem:[#allocation8 + $0xa48] sm:$0xff] }
 0x328   :  { %7331 = vmatpush1.bf16.msra.mxu0 %v9407_v5  ;;  %v4195_v5 = vld [vmem:[#allocation8 + $0x768] sm:$0xff] }
 0x329   :  { %7284 = vmatpush1.bf16.msra.mxu1 %v9303_v43  ;;  %7332 = vmatprep.subr.bf16.mxu0 %v9400_v21  ;;  %v9487_v43 = vcombine.low %v4303_v33, %v4307_v24  ;;  %v9383_v21 = vcombine.low %v4199_v26, %v4203_v30  ;;  %v9376_v35 = vcombine.high %v4191_v31, %v4195_v5  ;;  %v4291_v40 = vld [vmem:[#allocation8 + $0xa68] sm:$0xff] }
 0x32a   :  { %7285 = vmatprep.subr.bf16.mxu1 %v9296_v18  ;;  %v9480_v18 = vcombine.high %v4295_v38, %v4299_v51  ;;  %v4183_v48 = vld [vmem:[#allocation8 + $0x708] sm:$0xff]  ;;  %v9194_v24 = vcombine.high %v4008_v15, %v4012_v17 }
 0x32b   :  { %v4279_v60 = vld [vmem:[#allocation8 + $0xa08] sm:$0xff] }
 0x32c   :  { %7333 = vmatpush1.bf16.msra.mxu0 %v9399_v23  ;;  %v4187_v23 = vld [vmem:[#allocation8 + $0x728] sm:$0xff] }
 0x32d   :  { %7286 = vmatpush1.bf16.msra.mxu1 %v9295_v47  ;;  %7334 = vmatprep.subr.bf16.mxu0 %v9520_v42  ;;  %v9479_v47 = vcombine.low %v4295_v38, %v4299_v51  ;;  %v9375_v42 = vcombine.low %v4191_v31, %v4195_v5  ;;  %v9368_v49 = vcombine.high %v4183_v48, %v4187_v23  ;;  %v4283_v22 = vld [vmem:[#allocation8 + $0xa28] sm:$0xff] }
 0x32e   :  { %7287 = vmatprep.subr.bf16.mxu1 %v9288_v46  ;;  %v9472_v46 = vcombine.high %v4287_v37, %v4291_v40  ;;  %v4175_v52 = vld [vmem:[#allocation8 + $0x6c8] sm:$0xff] }
 0x32f   :  { %v4167_v1 = vld [vmem:[#allocation8 + $0x688] sm:$0xff] }
 0x330   :  { %7335 = vmatpush2.bf16.msra.mxu0 %v9519_v55  ;;  %v4179_v55 = vld [vmem:[#allocation8 + $0x6e8] sm:$0xff] }
 0x331   :  { %7288 = vmatpush1.bf16.msra.mxu1 %v9287_v11  ;;  %7336 = vmatprep.subr.bf16.mxu0 %v9512_v56  ;;  %v9471_v11 = vcombine.low %v4287_v37, %v4291_v40  ;;  %v9367_v56 = vcombine.low %v4183_v48, %v4187_v23  ;;  %v9360_v4 = vcombine.high %v4175_v52, %v4179_v55  ;;  %v4155_v38 = vld [vmem:[#allocation8 + $0x628] sm:$0xff]  ;;  %v3992_v40 = vld [vmem:[#allocation8 + $0x110] sm:$0xff] }
 0x332   :  { %7289 = vmatprep.subr.bf16.mxu1 %v9280_v54  ;;  %v9464_v54 = vcombine.high %v4279_v60, %v4283_v22  ;;  %v3996_v48 = vld [vmem:[#allocation8 + $0x130] sm:$0xff] }
 0x334   :  { %7337 = vmatpush2.bf16.msra.mxu0 %v9511_v3  ;;  %v4171_v3 = vld [vmem:[#allocation8 + $0x6a8] sm:$0xff] }
 0x335   :  { %7290 = vmatpush1.bf16.msra.mxu1 %v9279_v9  ;;  %7338 = vmatprep.subr.bf16.mxu0 %v9504_v10  ;;  %v9463_v9 = vcombine.low %v4279_v60, %v4283_v22  ;;  %v9359_v10 = vcombine.low %v4175_v52, %v4179_v55  ;;  %v9352_v13 = vcombine.high %v4167_v1, %v4171_v3 }
 0x336   :  { %7291 = vmatprep.subr.bf16.mxu1 %v9272_v12  ;;  %v4470_v12 = vld [vmem:[#allocation10] sm:$0xff]  ;;  %v9351_v33 = vcombine.low %v4167_v1, %v4171_v3  ;;  %v9178_v55 = vcombine.high %v3992_v40, %v3996_v48  ;;  %v9177_v1 = vcombine.low %v3992_v40, %v3996_v48  ;;  %v4363_v40 = vld [vmem:[#allocation8 + $0xca8] sm:$0xff] }
 0x337   :  { %v4479_v26 = vrot.slane %v4470_v12, %v676_v34 }
 0x338   :  { %7339 = vmatpush2.bf16.msra.mxu0 %v9503_v19  ;;  %v4159_v19 = vld [vmem:[#allocation8 + $0x648] sm:$0xff] }
 0x339   :  { %7292 = vmatpush1.bf16.msra.mxu1 %v9271_v20  ;;  %7340 = vmatprep.subr.bf16.mxu0 %v9496_v8  ;;  %v4163_v20 = vld [vmem:[#allocation8 + $0x668] sm:$0xff]  ;;  %v4475_v8 = vrot.slane %v4470_v12, %v672_v28  ;;  %v9193_v28 = vcombine.low %v4008_v15, %v4012_v17  ;;  %v3976_v12 = vld [vmem:[#allocation8 + $0x90] sm:$0xff] }
 0x33a   :  { %7293 = vmatprep.subr.bf16.mxu1 %v9392_v50  ;;  %v9201_v50 = vcombine.low %v4016_v16, %v4020_v61  ;;  %v9344_v30 = vcombine.high %v4159_v19, %v4163_v20  ;;  %v3984_v16 = vld [vmem:[#allocation8 + $0xd0] sm:$0xff]  ;;  %v4387_v15 = vld [vmem:[#allocation8 + $0xd68] sm:$0xff] }
 0x33b   :  { %v3988_v61 = vld [vmem:[#allocation8 + $0xf0] sm:$0xff] }
 0x33c   :  { %7341 = vmatpush2.bf16.msra.mxu0 %v9495_v27  ;;  %v4000_v27 = vld [vmem:[#allocation8 + $0x150] sm:$0xff]  ;;  %v9169_v17 = vcombine.low %v3984_v16, %v3988_v61 }
 0x33d   :  { %7294 = vmatpush2.bf16.msra.mxu1 %v9391_v29  ;;  %7342 = vmatprep.subr.bf16.mxu0 %v9488_v32  ;;  %v4004_v29 = vld [vmem:[#allocation8 + $0x170] sm:$0xff] }
 0x33e   :  { %7295 = vmatprep.subr.bf16.mxu1 %v9384_v53  ;;  %v4151_v53 = vld [vmem:[#allocation8 + $0x608] sm:$0xff]  ;;  %v9185_v60 = vcombine.low %v4000_v27, %v4004_v29 }
 0x33f   :  { %v9336_v37 = vcombine.high %v4151_v53, %v4155_v38  ;;  %v9335_v52 = vcombine.low %v4151_v53, %v4155_v38  ;;  %v3960_v53 = vld [vmem:[#allocation8 + $0x10] sm:$0xff] }
 0x340   :  { %7343 = vmatpush2.bf16.msra.mxu0 %v9487_v43  ;;  %v9343_v43 = vcombine.low %v4159_v19, %v4163_v20  ;;  %v3964_v38 = vld [vmem:[#allocation8 + $0x30] sm:$0xff] }
 0x341   :  { %7296 = vmatpush2.bf16.msra.mxu1 %v9383_v21  ;;  %7344 = vmatprep.subr.bf16.mxu0 %v9480_v18  ;;  %v9186_v21 = vcombine.high %v4000_v27, %v4004_v29  ;;  %v9145_v48 = vcombine.low %v3960_v53, %v3964_v38 }
 0x342   :  { %7297 = vmatprep.subr.bf16.mxu1 %v9376_v35 }
 0x344   :  { %7345 = vmatpush2.bf16.msra.mxu0 %v9479_v47  ;;  %v4399_v47 = vld [vmem:[#allocation8 + $0xdc8] sm:$0xff] }
 0x345   :  { %7298 = vmatpush2.bf16.msra.mxu1 %v9375_v42  ;;  %7346 = vmatprep.subr.bf16.mxu0 %v9472_v46  ;;  %v4403_v42 = vld [vmem:[#allocation8 + $0xde8] sm:$0xff] }
 0x346   :  { %7299 = vmatprep.subr.bf16.mxu1 %v9368_v49  ;;  %v9583_v3 = vcombine.low %v4399_v47, %v4403_v42 }
 0x348   :  { %7347 = vmatpush2.bf16.msra.mxu0 %v9471_v11 }
 0x349   :  { %7300 = vmatpush2.bf16.msra.mxu1 %v9367_v56  ;;  %7348 = vmatprep.subr.bf16.mxu0 %v9464_v54  ;;  %v9584_v56 = vcombine.high %v4399_v47, %v4403_v42  ;;  %v4391_v54 = vld [vmem:[#allocation8 + $0xd88] sm:$0xff] }
 0x34a   :  { %7301 = vmatprep.subr.bf16.mxu1 %v9360_v4  ;;  %v4395_v4 = vld [vmem:[#allocation8 + $0xda8] sm:$0xff] }
 0x34b   :  { %v9575_v19 = vcombine.low %v4391_v54, %v4395_v4 }
 0x34c   :  { %7349 = vmatpush2.bf16.msra.mxu0 %v9463_v9  ;;  %v9576_v9 = vcombine.high %v4391_v54, %v4395_v4  ;;  %v4064_v4 = vld [vmem:[#allocation8 + $0x350] sm:$0xff] }
 0x34d   :  { %7302 = vmatpush2.bf16.msra.mxu1 %v9359_v10  ;;  %7400 = vmatprep.subr.bf16.mxu0 %v9202_v58  ;;  %v9170_v10 = vcombine.high %v3984_v16, %v3988_v61  ;;  %v3980_v58 = vld [vmem:[#allocation8 + $0xb0] sm:$0xff]  ;;  %v4343_v61 = vld [vmem:[#allocation8 + $0xc08] sm:$0xff] }
 0x34e   :  { %7303 = vmatprep.subr.bf16.mxu1 %v9352_v13  ;;  %v4383_v13 = vld [vmem:[#allocation8 + $0xd48] sm:$0xff]  ;;  %v9162_v20 = vcombine.high %v3976_v12, %v3980_v58  ;;  %v4068_v16 = vld [vmem:[#allocation8 + $0x370] sm:$0xff] }
 0x34f   :  { %v7106_v32 = vpop.f32.mrf.mxu0  ;;  %7351 = vmatmul.mubr.bf16.vlgmr.msra.gmra.mxu0 %v10300_v41  ;;  %v9567_v27 = vcombine.low %v4383_v13, %v4387_v15 }
 0x350   :  { %v7107_v51 = vadd.f32 %v7106_v32, %v4475_v8  ;;  %7401 = vmatpush1.bf16.msra.mxu0 %v9201_v50  ;;  %7432 = vmatprep.mubr.bf16.mxu0 %v10250_v59  ;;  %v9568_v8 = vcombine.high %v4383_v13, %v4387_v15  ;;  %v3968_v50 = vld [vmem:[#allocation8 + $0x50] sm:$0xff]  ;;  %v4463_v15 = vld [vmem:[#allocation8 + $0xfc8] sm:$0xff] }
 0x351   :  { %v7147_v31 = vpop.f32.mrf.mxu1  ;;  %7304 = vmatpush2.bf16.msra.mxu1 %v9351_v33  ;;  %v7108_v5 = vpop.f32.mrf.mxu0  ;;  %7402 = vmatprep.subr.bf16.mxu0 %v9194_v24  ;;  %v3972_v33 = vld [vmem:[#allocation8 + $0x70] sm:$0xff]  ;;  %v4375_v24 = vld [vmem:[#allocation8 + $0xd08] sm:$0xff] }
 0x352   :  { %v10340_v34 = vadd.f32 %v7147_v31, %v7107_v51  ;;  %v7109_v18 = vadd.f32 %v7108_v5, %v4479_v26  ;;  %7305 = vmatprep.subr.bf16.mxu1 %v9344_v30  ;;  %v4379_v26 = vld [vmem:[#allocation8 + $0xd28] sm:$0xff]  ;;  %v9161_v30 = vcombine.low %v3976_v12, %v3980_v58  ;;  %v9154_v29 = vcombine.high %v3968_v50, %v3972_v33  ;;  %v4056_v58 = vld [vmem:[#allocation8 + $0x310] sm:$0xff] }
 0x353   :  { %v7149_v35 = vpop.f32.mrf.mxu1  ;;  %v7110_v23 = vpop.f32.mrf.mxu0  ;;  %v9560_v32 = vcombine.high %v4375_v24, %v4379_v26  ;;  %v4367_v51 = vld [vmem:[#allocation8 + $0xcc8] sm:$0xff]  ;;  %v9559_v5 = vcombine.low %v4375_v24, %v4379_v26  ;;  %v4060_v13 = vld [vmem:[#allocation8 + $0x330] sm:$0xff] }
 0x354   :  { %v10342_v46 = vadd.f32 %v7149_v35, %v7109_v18  ;;  %7403 = vmatpush1.bf16.msra.mxu0 %v9193_v28  ;;  %v4371_v31 = vld [vmem:[#allocation8 + $0xce8] sm:$0xff]  ;;  %v9153_v28 = vcombine.low %v3968_v50, %v3972_v33  ;;  %v4080_v18 = vld [vmem:[#allocation8 + $0x3d0] sm:$0xff] }
 0x355   :  { %v7151_v49 = vpop.f32.mrf.mxu1  ;;  %7306 = vmatpush2.bf16.msra.mxu1 %v9343_v43  ;;  %v7111_v22 = vpop.f32.mrf.mxu0  ;;  %7404 = vmatprep.subr.bf16.mxu0 %v9186_v21  ;;  %v9146_v43 = vcombine.high %v3960_v53, %v3964_v38  ;;  %v9552_v21 = vcombine.high %v4367_v51, %v4371_v31  ;;  %v4084_v35 = vld [vmem:[#allocation8 + $0x3f0] sm:$0xff]  ;;  %v9551_v23 = vcombine.low %v4367_v51, %v4371_v31  ;;  %v4455_v26 = vld [vmem:[#allocation8 + $0xf88] sm:$0xff] }
 0x356   :  { %7307 = vmatprep.subr.bf16.mxu1 %v9336_v37  ;;  %v4359_v37 = vld [vmem:[#allocation8 + $0xc88] sm:$0xff]  ;;  %v9266_v47 = vcombine.high %v4080_v18, %v4084_v35  ;;  %v4072_v49 = vld [vmem:[#allocation8 + $0x390] sm:$0xff] }
 0x357   :  { %v7152_v11 = vpop.f32.mrf.mxu1  ;;  %v9544_v42 = vcombine.high %v4359_v37, %v4363_v40  ;;  %v4351_v22 = vld [vmem:[#allocation8 + $0xc48] sm:$0xff]  ;;  %v4048_v33 = vld [vmem:[#allocation8 + $0x2d0] sm:$0xff] }
 0x358   :  { %7405 = vmatpush1.bf16.msra.mxu0 %v9185_v60  ;;  %v4076_v60 = vld [vmem:[#allocation8 + $0x3b0] sm:$0xff]  ;;  %v9543_v11 = vcombine.low %v4359_v37, %v4363_v40  ;;  %v4447_v31 = vld [vmem:[#allocation8 + $0xf48] sm:$0xff] }
 0x359   :  { %7308 = vmatpush2.bf16.msra.mxu1 %v9335_v52  ;;  %7406 = vmatprep.subr.bf16.mxu0 %v9178_v55  ;;  %v4355_v52 = vld [vmem:[#allocation8 + $0xc68] sm:$0xff]  ;;  %v9265_v55 = vcombine.low %v4080_v18, %v4084_v35  ;;  %v4052_v24 = vld [vmem:[#allocation8 + $0x2f0] sm:$0xff] }
 0x35a   :  { %7359 = vmatprep.subr.bf16.mxu1 %v9584_v56  ;;  %v9258_v56 = vcombine.high %v4072_v49, %v4076_v60  ;;  %v9536_v54 = vcombine.high %v4351_v22, %v4355_v52  ;;  %v4040_v38 = vld [vmem:[#allocation8 + $0x290] sm:$0xff]  ;;  %v4439_v40 = vld [vmem:[#allocation8 + $0xf08] sm:$0xff] }
 0x35b   :  { %v4044_v51 = vld [vmem:[#allocation8 + $0x2b0] sm:$0xff] }
 0x35c   :  { %7310 = vmatmul.mubr.bf16.vlgmr.msra.gmra.mxu1 %v10277_v63  ;;  %7407 = vmatpush1.bf16.msra.mxu0 %v9177_v1  ;;  %v4347_v1 = vld [vmem:[#allocation8 + $0xc28] sm:$0xff]  ;;  %v4032_v35 = vld [vmem:[#allocation8 + $0x250] sm:$0xff] }
 0x35d   :  { %7360 = vmatpush1.bf16.msra.mxu1 %v9583_v3  ;;  %7391 = vmatprep.mubr.bf16.mxu1 %v10324_v25  ;;  %v9257_v3 = vcombine.low %v4072_v49, %v4076_v60  ;;  %v9528_v12 = vcombine.high %v4343_v61, %v4347_v1  ;;  %v4036_v37 = vld [vmem:[#allocation8 + $0x270] sm:$0xff] }
 0x35e   :  { %7361 = vmatprep.subr.bf16.mxu1 %v9576_v9  ;;  %7408 = vmatprep.subr.bf16.mxu0 %v9170_v10  ;;  %v9535_v9 = vcombine.low %v4351_v22, %v4355_v52  ;;  %v9250_v10 = vcombine.high %v4064_v4, %v4068_v16  ;;  %v4024_v60 = vld [vmem:[#allocation8 + $0x210] sm:$0xff]  ;;  %v4431_v52 = vld [vmem:[#allocation8 + $0xec8] sm:$0xff] }
 0x35f   :  { %v4028_v22 = vld [vmem:[#allocation8 + $0x230] sm:$0xff] }
 0x360   :  { %7409 = vmatpush1.bf16.msra.mxu0 %v9169_v17  ;;  %v4467_v17 = vld [vmem:[#allocation8 + $0xfe8] sm:$0xff] }
 0x361   :  { %7362 = vmatpush1.bf16.msra.mxu1 %v9575_v19  ;;  %7410 = vmatprep.subr.bf16.mxu0 %v9162_v20  ;;  %v9249_v19 = vcombine.low %v4064_v4, %v4068_v16  ;;  %v9527_v20 = vcombine.low %v4343_v61, %v4347_v1  ;;  %v9648_v50 = vcombine.high %v4463_v15, %v4467_v17  ;;  %v4272_v16 = vld [vmem:[#allocation8 + $0x9d0] sm:$0xff]  ;;  %v4423_v1 = vld [vmem:[#allocation8 + $0xe88] sm:$0xff] }
 0x362   :  { %7363 = vmatprep.subr.bf16.mxu1 %v9568_v8  ;;  %v9242_v8 = vcombine.high %v4056_v58, %v4060_v13  ;;  %v4276_v61 = vld [vmem:[#allocation8 + $0x9f0] sm:$0xff] }
 0x364   :  { %7411 = vmatpush1.bf16.msra.mxu0 %v9161_v30  ;;  %v4459_v30 = vld [vmem:[#allocation8 + $0xfa8] sm:$0xff] }
 0x365   :  { %7364 = vmatpush1.bf16.msra.mxu1 %v9567_v27  ;;  %7412 = vmatprep.subr.bf16.mxu0 %v9154_v29  ;;  %v9241_v27 = vcombine.low %v4056_v58, %v4060_v13  ;;  %v9647_v29 = vcombine.low %v4463_v15, %v4467_v17  ;;  %v9640_v53 = vcombine.high %v4455_v26, %v4459_v30  ;;  %v4264_v13 = vld [vmem:[#allocation8 + $0x990] sm:$0xff]  ;;  %v4415_v17 = vld [vmem:[#allocation8 + $0xe48] sm:$0xff] }
 0x366   :  { %7365 = vmatprep.subr.bf16.mxu1 %v9560_v32  ;;  %v9234_v32 = vcombine.high %v4048_v33, %v4052_v24  ;;  %v4268_v15 = vld [vmem:[#allocation8 + $0x9b0] sm:$0xff] }
 0x368   :  { %7413 = vmatpush1.bf16.msra.mxu0 %v9153_v28  ;;  %v4451_v28 = vld [vmem:[#allocation8 + $0xf68] sm:$0xff] }
 0x369   :  { %7366 = vmatpush1.bf16.msra.mxu1 %v9559_v5  ;;  %7414 = vmatprep.subr.bf16.mxu0 %v9146_v43  ;;  %v9233_v5 = vcombine.low %v4048_v33, %v4052_v24  ;;  %v9639_v43 = vcombine.low %v4455_v26, %v4459_v30  ;;  %v9632_v18 = vcombine.high %v4447_v31, %v4451_v28  ;;  %v4256_v24 = vld [vmem:[#allocation8 + $0x950] sm:$0xff] }
 0x36a   :  { %7367 = vmatprep.subr.bf16.mxu1 %v9552_v21  ;;  %v9226_v21 = vcombine.high %v4040_v38, %v4044_v51  ;;  %v4260_v26 = vld [vmem:[#allocation8 + $0x970] sm:$0xff] }
 0x36c   :  { %7415 = vmatpush1.bf16.msra.mxu0 %v9145_v48  ;;  %v4443_v48 = vld [vmem:[#allocation8 + $0xf28] sm:$0xff] }
 0x36d   :  { %7368 = vmatpush1.bf16.msra.mxu1 %v9551_v23  ;;  %7416 = vmatprep.subr.bf16.mxu0 %v9266_v47  ;;  %v9225_v23 = vcombine.low %v4040_v38, %v4044_v51  ;;  %v9631_v47 = vcombine.low %v4447_v31, %v4451_v28  ;;  %v9624_v49 = vcombine.high %v4439_v40, %v4443_v48 }
 0x36e   :  { %7369 = vmatprep.subr.bf16.mxu1 %v9544_v42  ;;  %v9218_v42 = vcombine.high %v4032_v35, %v4036_v37  ;;  %v9442_v31 = vcombine.high %v4256_v24, %v4260_v26 }
 0x370   :  { %7417 = vmatpush2.bf16.msra.mxu0 %v9265_v55  ;;  %v4435_v55 = vld [vmem:[#allocation8 + $0xee8] sm:$0xff] }
 0x371   :  { %7370 = vmatpush1.bf16.msra.mxu1 %v9543_v11  ;;  %7418 = vmatprep.subr.bf16.mxu0 %v9258_v56  ;;  %v9217_v11 = vcombine.low %v4032_v35, %v4036_v37  ;;  %v9623_v56 = vcombine.low %v4439_v40, %v4443_v48  ;;  %v9616_v4 = vcombine.high %v4431_v52, %v4435_v55  ;;  %v4144_v35 = vld [vmem:[#allocation8 + $0x5d0] sm:$0xff] }
 0x372   :  { %7371 = vmatprep.subr.bf16.mxu1 %v9536_v54  ;;  %v9210_v54 = vcombine.high %v4024_v60, %v4028_v22  ;;  %v9441_v37 = vcombine.low %v4256_v24, %v4260_v26  ;;  %v4116_v24 = vld [vmem:[#allocation8 + $0x4f0] sm:$0xff] }
 0x374   :  { %7419 = vmatpush2.bf16.msra.mxu0 %v9257_v3  ;;  %v4427_v3 = vld [vmem:[#allocation8 + $0xea8] sm:$0xff] }
 0x375   :  { %7372 = vmatpush1.bf16.msra.mxu1 %v9535_v9  ;;  %7420 = vmatprep.subr.bf16.mxu0 %v9250_v10  ;;  %v9209_v9 = vcombine.low %v4024_v60, %v4028_v22  ;;  %v9615_v10 = vcombine.low %v4431_v52, %v4435_v55  ;;  %v9608_v58 = vcombine.high %v4423_v1, %v4427_v3  ;;  %v4244_v60 = vld [vmem:[#allocation8 + $0x8f0] sm:$0xff] }
 0x376   :  { %7373 = vmatprep.subr.bf16.mxu1 %v9528_v12  ;;  %v9458_v12 = vcombine.high %v4272_v16, %v4276_v61 }
 0x378   :  { %7421 = vmatpush2.bf16.msra.mxu0 %v9249_v19  ;;  %v4419_v19 = vld [vmem:[#allocation8 + $0xe68] sm:$0xff] }
 0x379   :  { %7374 = vmatpush1.bf16.msra.mxu1 %v9527_v20  ;;  %7422 = vmatprep.subr.bf16.mxu0 %v9242_v8  ;;  %v9457_v20 = vcombine.low %v4272_v16, %v4276_v61  ;;  %v9607_v8 = vcombine.low %v4423_v1, %v4427_v3  ;;  %v9600_v33 = vcombine.high %v4415_v17, %v4419_v19  ;;  %v4132_v16 = vld [vmem:[#allocation8 + $0x570] sm:$0xff] }
 0x37a   :  { %7375 = vmatprep.subr.bf16.mxu1 %v9648_v50  ;;  %v9450_v50 = vcombine.high %v4264_v13, %v4268_v15  ;;  %v9599_v51 = vcombine.low %v4415_v17, %v4419_v19 }
 0x37c   :  { %7423 = vmatpush2.bf16.msra.mxu0 %v9241_v27  ;;  %v4407_v27 = vld [vmem:[#allocation8 + $0xe08] sm:$0xff] }
 0x37d   :  { %7376 = vmatpush2.bf16.msra.mxu1 %v9647_v29  ;;  %7424 = vmatprep.subr.bf16.mxu0 %v9234_v32  ;;  %v4411_v29 = vld [vmem:[#allocation8 + $0xe28] sm:$0xff] }
 0x37e   :  { %7377 = vmatprep.subr.bf16.mxu1 %v9640_v53  ;;  %v9449_v53 = vcombine.low %v4264_v13, %v4268_v15  ;;  %v9591_v48 = vcombine.low %v4407_v27, %v4411_v29  ;;  %v4124_v13 = vld [vmem:[#allocation8 + $0x530] sm:$0xff] }
 0x380   :  { %7425 = vmatpush2.bf16.msra.mxu0 %v9233_v5  ;;  %v9592_v5 = vcombine.high %v4407_v27, %v4411_v29 }
 0x381   :  { %7378 = vmatpush2.bf16.msra.mxu1 %v9639_v43  ;;  %7426 = vmatprep.subr.bf16.mxu0 %v9226_v21  ;;  %v4248_v43 = vld [vmem:[#allocation8 + $0x910] sm:$0xff] }
 0x382   :  { %7379 = vmatprep.subr.bf16.mxu1 %v9632_v18  ;;  %v4252_v21 = vld [vmem:[#allocation8 + $0x930] sm:$0xff] }
 0x383   :  { %v9433_v22 = vcombine.low %v4248_v43, %v4252_v21 }
 0x384   :  { %7427 = vmatpush2.bf16.msra.mxu0 %v9225_v23  ;;  %v9434_v23 = vcombine.high %v4248_v43, %v4252_v21 }
 0x385   :  { %7380 = vmatpush2.bf16.msra.mxu1 %v9631_v47  ;;  %7428 = vmatprep.subr.bf16.mxu0 %v9218_v42  ;;  %v4136_v42 = vld [vmem:[#allocation8 + $0x590] sm:$0xff] }
 0x386   :  { %7381 = vmatprep.subr.bf16.mxu1 %v9624_v49  ;;  %v4140_v49 = vld [vmem:[#allocation8 + $0x5b0] sm:$0xff] }
 0x387   :  { %v9322_v55 = vcombine.high %v4136_v42, %v4140_v49  ;;  %v9321_v1 = vcombine.low %v4136_v42, %v4140_v49  ;;  %v4320_v49 = vld [vmem:[#allocation8 + $0xb50] sm:$0xff] }
 0x388   :  { %7429 = vmatpush2.bf16.msra.mxu0 %v9217_v11 }
 0x389   :  { %7382 = vmatpush2.bf16.msra.mxu1 %v9623_v56  ;;  %7430 = vmatprep.subr.bf16.mxu0 %v9210_v54  ;;  %v4232_v56 = vld [vmem:[#allocation8 + $0x890] sm:$0xff] }
 0x38a   :  { %7383 = vmatprep.subr.bf16.mxu1 %v9616_v4  ;;  %v4236_v54 = vld [vmem:[#allocation8 + $0x8b0] sm:$0xff] }
 0x38b   :  { %v4128_v4 = vld [vmem:[#allocation8 + $0x550] sm:$0xff]  ;;  %v9418_v3 = vcombine.high %v4232_v56, %v4236_v54  ;;  %v9417_v15 = vcombine.low %v4232_v56, %v4236_v54 }
 0x38c   :  { %7431 = vmatpush2.bf16.msra.mxu0 %v9209_v9  ;;  %v9314_v9 = vcombine.high %v4128_v4, %v4132_v16  ;;  %v9313_v17 = vcombine.low %v4128_v4, %v4132_v16  ;;  %v4312_v54 = vld [vmem:[#allocation8 + $0xb10] sm:$0xff] }
 0x38d   :  { %7384 = vmatpush2.bf16.msra.mxu1 %v9615_v10  ;;  %7482 = vmatprep.subr.bf16.mxu0 %v9458_v12  ;;  %v4224_v10 = vld [vmem:[#allocation8 + $0x850] sm:$0xff] }
 0x38e   :  { %7385 = vmatprep.subr.bf16.mxu1 %v9608_v58  ;;  %v4228_v12 = vld [vmem:[#allocation8 + $0x870] sm:$0xff] }
 0x38f   :  { %v7188_v30 = vpop.f32.mrf.mxu0  ;;  %7433 = vmatmul.mubr.bf16.vlgmr.msra.gmra.mxu0 %v10275_v45  ;;  %v4120_v58 = vld [vmem:[#allocation8 + $0x510] sm:$0xff]  ;;  %v9410_v19 = vcombine.high %v4224_v10, %v4228_v12  ;;  %v9409_v26 = vcombine.low %v4224_v10, %v4228_v12 }
 0x390   :  { %v10348_v32 = vadd.f32 %v7188_v30, %v10340_v34  ;;  %7483 = vmatpush1.bf16.msra.mxu0 %v9457_v20  ;;  %7514 = vmatprep.mubr.bf16.mxu0 %v10286_v36  ;;  %v4148_v34 = vld [vmem:[#allocation8 + $0x5f0] sm:$0xff]  ;;  %v9306_v20 = vcombine.high %v4120_v58, %v4124_v13  ;;  %v9305_v30 = vcombine.low %v4120_v58, %v4124_v13 }
 0x391   :  { %7386 = vmatpush2.bf16.msra.mxu1 %v9607_v8  ;;  %v7190_v38 = vpop.f32.mrf.mxu0  ;;  %7484 = vmatprep.subr.bf16.mxu0 %v9450_v50  ;;  %v9330_v47 = vcombine.high %v4144_v35, %v4148_v34  ;;  %v9329_v52 = vcombine.low %v4144_v35, %v4148_v34  ;;  %v4216_v8 = vld [vmem:[#allocation8 + $0x810] sm:$0xff] }
 0x392   :  { %v10352_v28 = vadd.f32 %v7190_v38, %v10342_v46  ;;  %7387 = vmatprep.subr.bf16.mxu1 %v9600_v33  ;;  %v4240_v46 = vld [vmem:[#allocation8 + $0x8d0] sm:$0xff] }
 0x393   :  { %v7192_v18 = vpop.f32.mrf.mxu0  ;;  %v9426_v11 = vcombine.high %v4240_v46, %v4244_v60  ;;  %v9425_v61 = vcombine.low %v4240_v46, %v4244_v60  ;;  %v4220_v50 = vld [vmem:[#allocation8 + $0x830] sm:$0xff] }
 0x394   :  { %7485 = vmatpush1.bf16.msra.mxu0 %v9449_v53  ;;  %v4112_v33 = vld [vmem:[#allocation8 + $0x4d0] sm:$0xff]  ;;  %v9402_v27 = vcombine.high %v4216_v8, %v4220_v50 }
 0x395   :  { %7388 = vmatpush2.bf16.msra.mxu1 %v9599_v51  ;;  %v7193_v40 = vpop.f32.mrf.mxu0  ;;  %7486 = vmatprep.subr.bf16.mxu0 %v9442_v31  ;;  %v9298_v29 = vcombine.high %v4112_v33, %v4116_v24  ;;  %v4336_v53 = vld [vmem:[#allocation8 + $0xbd0] sm:$0xff]  ;;  %v9297_v43 = vcombine.low %v4112_v33, %v4116_v24 }
 0x396   :  { %7389 = vmatprep.subr.bf16.mxu1 %v9592_v5  ;;  %v4340_v38 = vld [vmem:[#allocation8 + $0xbf0] sm:$0xff]  ;;  %v9401_v5 = vcombine.low %v4216_v8, %v4220_v50 }
 0x397   :  { %v4104_v51 = vld [vmem:[#allocation8 + $0x490] sm:$0xff]  ;;  %v9522_v21 = vcombine.high %v4336_v53, %v4340_v38 }
 0x398   :  { %7487 = vmatpush1.bf16.msra.mxu0 %v9441_v37  ;;  %v4108_v31 = vld [vmem:[#allocation8 + $0x4b0] sm:$0xff] }
 0x399   :  { %7390 = vmatpush2.bf16.msra.mxu1 %v9591_v48  ;;  %7488 = vmatprep.subr.bf16.mxu0 %v9434_v23  ;;  %v9290_v18 = vcombine.high %v4104_v51, %v4108_v31  ;;  %v4328_v35 = vld [vmem:[#allocation8 + $0xb90] sm:$0xff]  ;;  %v9521_v48 = vcombine.low %v4336_v53, %v4340_v38  ;;  %v9289_v23 = vcombine.low %v4104_v51, %v4108_v31 }
 0x39a   :  { %7441 = vmatprep.subr.bf16.mxu1 %v9330_v47  ;;  %v4332_v34 = vld [vmem:[#allocation8 + $0xbb0] sm:$0xff] }
 0x39b   :  { %v4096_v37 = vld [vmem:[#allocation8 + $0x450] sm:$0xff]  ;;  %v9514_v47 = vcombine.high %v4328_v35, %v4332_v34 }
 0x39c   :  { %7392 = vmatmul.mubr.bf16.vlgmr.msra.gmra.mxu1 %v10326_v7  ;;  %7489 = vmatpush1.bf16.msra.mxu0 %v9433_v22  ;;  %v4100_v40 = vld [vmem:[#allocation8 + $0x470] sm:$0xff] }
 0x39d   :  { %7442 = vmatpush1.bf16.msra.mxu1 %v9329_v52  ;;  %7473 = vmatprep.mubr.bf16.mxu1 %v10253_v62  ;;  %v9282_v42 = vcombine.high %v4096_v37, %v4100_v40  ;;  %v4324_v46 = vld [vmem:[#allocation8 + $0xb70] sm:$0xff]  ;;  %v9513_v52 = vcombine.low %v4328_v35, %v4332_v34 }
 0x39e   :  { %7443 = vmatprep.subr.bf16.mxu1 %v9322_v55  ;;  %7490 = vmatprep.subr.bf16.mxu0 %v9426_v11  ;;  %v4088_v60 = vld [vmem:[#allocation8 + $0x410] sm:$0xff]  ;;  %v9281_v55 = vcombine.low %v4096_v37, %v4100_v40  ;;  %v9506_v11 = vcombine.high %v4320_v49, %v4324_v46 }
 0x39f   :  { %v4092_v22 = vld [vmem:[#allocation8 + $0x430] sm:$0xff] }
 0x3a0   :  { %7491 = vmatpush1.bf16.msra.mxu0 %v9425_v61  ;;  %v9274_v56 = vcombine.high %v4088_v60, %v4092_v22  ;;  %v4316_v4 = vld [vmem:[#allocation8 + $0xb30] sm:$0xff] }
 0x3a1   :  { %7444 = vmatpush1.bf16.msra.mxu1 %v9321_v1  ;;  %7492 = vmatprep.subr.bf16.mxu0 %v9418_v3  ;;  %v4208_v16 = vld [vmem:[#allocation8 + $0x7d0] sm:$0xff]  ;;  %v9505_v1 = vcombine.low %v4320_v49, %v4324_v46  ;;  %v9273_v3 = vcombine.low %v4088_v60, %v4092_v22  ;;  %v4017_v46 = vld [vmem:[#allocation8 + $0x1d8] sm:$0xff] }
 0x3a2   :  { %7445 = vmatprep.subr.bf16.mxu1 %v9314_v9  ;;  %v4212_v61 = vld [vmem:[#allocation8 + $0x7f0] sm:$0xff]  ;;  %v9498_v9 = vcombine.high %v4312_v54, %v4316_v4  ;;  %v4021_v60 = vld [vmem:[#allocation8 + $0x1f8] sm:$0xff] }
 0x3a3   :  { %v9394_v10 = vcombine.high %v4208_v16, %v4212_v61  ;;  %v4304_v12 = vld [vmem:[#allocation8 + $0xad0] sm:$0xff] }
 0x3a4   :  { %7493 = vmatpush1.bf16.msra.mxu0 %v9417_v15  ;;  %v4308_v58 = vld [vmem:[#allocation8 + $0xaf0] sm:$0xff] }
 0x3a5   :  { %7446 = vmatpush1.bf16.msra.mxu1 %v9313_v17  ;;  %7494 = vmatprep.subr.bf16.mxu0 %v9410_v19  ;;  %v4200_v13 = vld [vmem:[#allocation8 + $0x790] sm:$0xff]  ;;  %v9497_v17 = vcombine.low %v4312_v54, %v4316_v4  ;;  %v9393_v19 = vcombine.low %v4208_v16, %v4212_v61  ;;  %v4009_v4 = vld [vmem:[#allocation8 + $0x198] sm:$0xff] }
 0x3a6   :  { %7447 = vmatprep.subr.bf16.mxu1 %v9306_v20  ;;  %v4204_v15 = vld [vmem:[#allocation8 + $0x7b0] sm:$0xff]  ;;  %v9490_v20 = vcombine.high %v4304_v12, %v4308_v58  ;;  %v4013_v16 = vld [vmem:[#allocation8 + $0x1b8] sm:$0xff] }
 0x3a7   :  { %v9386_v8 = vcombine.high %v4200_v13, %v4204_v15  ;;  %v4296_v50 = vld [vmem:[#allocation8 + $0xa90] sm:$0xff] }
 0x3a8   :  { %7495 = vmatpush1.bf16.msra.mxu0 %v9409_v26  ;;  %v4300_v33 = vld [vmem:[#allocation8 + $0xab0] sm:$0xff] }
 0x3a9   :  { %7448 = vmatpush1.bf16.msra.mxu1 %v9305_v30  ;;  %7496 = vmatprep.subr.bf16.mxu0 %v9402_v27  ;;  %v4192_v24 = vld [vmem:[#allocation8 + $0x750] sm:$0xff]  ;;  %v9489_v30 = vcombine.low %v4304_v12, %v4308_v58  ;;  %v9385_v27 = vcombine.low %v4200_v13, %v4204_v15  ;;  %v4001_v58 = vld [vmem:[#allocation8 + $0x158] sm:$0xff] }
 0x3aa   :  { %7449 = vmatprep.subr.bf16.mxu1 %v9298_v29  ;;  %v4196_v26 = vld [vmem:[#allocation8 + $0x770] sm:$0xff]  ;;  %v9482_v29 = vcombine.high %v4296_v50, %v4300_v33  ;;  %v4005_v13 = vld [vmem:[#allocation8 + $0x178] sm:$0xff] }
 0x3ab   :  { %v9378_v53 = vcombine.high %v4192_v24, %v4196_v26  ;;  %v4288_v38 = vld [vmem:[#allocation8 + $0xa50] sm:$0xff] }
 0x3ac   :  { %7497 = vmatpush1.bf16.msra.mxu0 %v9401_v5  ;;  %v4292_v51 = vld [vmem:[#allocation8 + $0xa70] sm:$0xff] }
 0x3ad   :  { %7450 = vmatpush1.bf16.msra.mxu1 %v9297_v43  ;;  %7498 = vmatprep.subr.bf16.mxu0 %v9522_v21  ;;  %v4184_v31 = vld [vmem:[#allocation8 + $0x710] sm:$0xff]  ;;  %v9481_v43 = vcombine.low %v4296_v50, %v4300_v33  ;;  %v9377_v21 = vcombine.low %v4192_v24, %v4196_v26  ;;  %v9188_v33 = vcombine.high %v4001_v58, %v4005_v13  ;;  %v3993_v26 = vld [vmem:[#allocation8 + $0x118] sm:$0xff] }
 0x3ae   :  { %7451 = vmatprep.subr.bf16.mxu1 %v9290_v18  ;;  %v4188_v5 = vld [vmem:[#allocation8 + $0x730] sm:$0xff]  ;;  %v9474_v18 = vcombine.high %v4288_v38, %v4292_v51 }
 0x3af   :  { %v9370_v35 = vcombine.high %v4184_v31, %v4188_v5  ;;  %v4280_v34 = vld [vmem:[#allocation8 + $0xa10] sm:$0xff] }
 0x3b0   :  { %7499 = vmatpush2.bf16.msra.mxu0 %v9521_v48  ;;  %v4284_v37 = vld [vmem:[#allocation8 + $0xa30] sm:$0xff] }
 0x3b1   :  { %7452 = vmatpush1.bf16.msra.mxu1 %v9289_v23  ;;  %7500 = vmatprep.subr.bf16.mxu0 %v9514_v47  ;;  %v4176_v40 = vld [vmem:[#allocation8 + $0x6d0] sm:$0xff]  ;;  %v9473_v23 = vcombine.low %v4288_v38, %v4292_v51  ;;  %v9369_v47 = vcombine.low %v4184_v31, %v4188_v5  ;;  %v9187_v38 = vcombine.low %v4001_v58, %v4005_v13  ;;  %v3961_v58 = vld [vmem:[#allocation8 + $0x18] sm:$0xff] }
 0x3b2   :  { %7453 = vmatprep.subr.bf16.mxu1 %v9282_v42  ;;  %v4180_v48 = vld [vmem:[#allocation8 + $0x6f0] sm:$0xff]  ;;  %v9466_v42 = vcombine.high %v4280_v34, %v4284_v37  ;;  %v3965_v13 = vld [vmem:[#allocation8 + $0x38] sm:$0xff] }
 0x3b3   :  { %v9362_v49 = vcombine.high %v4176_v40, %v4180_v48  ;;  %v4168_v22 = vld [vmem:[#allocation8 + $0x690] sm:$0xff] }
 0x3b4   :  { %7501 = vmatpush2.bf16.msra.mxu0 %v9513_v52  ;;  %v4172_v52 = vld [vmem:[#allocation8 + $0x6b0] sm:$0xff] }
 0x3b5   :  { %7454 = vmatpush1.bf16.msra.mxu1 %v9281_v55  ;;  %7502 = vmatprep.subr.bf16.mxu0 %v9506_v11  ;;  %v9465_v55 = vcombine.low %v4280_v34, %v4284_v37  ;;  %v9361_v11 = vcombine.low %v4176_v40, %v4180_v48  ;;  %v9354_v54 = vcombine.high %v4168_v22, %v4172_v52  ;;  %v4160_v61 = vld [vmem:[#allocation8 + $0x650] sm:$0xff] }
 0x3b6   :  { %7455 = vmatprep.subr.bf16.mxu1 %v9274_v56  ;;  %v9204_v56 = vcombine.high %v4017_v46, %v4021_v60 }
 0x3b8   :  { %7503 = vmatpush2.bf16.msra.mxu0 %v9505_v1  ;;  %v4164_v1 = vld [vmem:[#allocation8 + $0x670] sm:$0xff] }
 0x3b9   :  { %7456 = vmatpush1.bf16.msra.mxu1 %v9273_v3  ;;  %7504 = vmatprep.subr.bf16.mxu0 %v9498_v9  ;;  %v9203_v3 = vcombine.low %v4017_v46, %v4021_v60  ;;  %v9353_v9 = vcombine.low %v4168_v22, %v4172_v52  ;;  %v9346_v12 = vcombine.high %v4160_v61, %v4164_v1 }
 0x3ba   :  { %7457 = vmatprep.subr.bf16.mxu1 %v9394_v10  ;;  %v9196_v10 = vcombine.high %v4009_v4, %v4013_v16  ;;  %v9345_v50 = vcombine.low %v4160_v61, %v4164_v1  ;;  %v4380_v61 = vld [vmem:[#allocation8 + $0xd30] sm:$0xff] }
 0x3bc   :  { %7505 = vmatpush2.bf16.msra.mxu0 %v9497_v17  ;;  %v4152_v17 = vld [vmem:[#allocation8 + $0x610] sm:$0xff] }
 0x3bd   :  { %7458 = vmatpush2.bf16.msra.mxu1 %v9393_v19  ;;  %7506 = vmatprep.subr.bf16.mxu0 %v9490_v20  ;;  %v4156_v19 = vld [vmem:[#allocation8 + $0x630] sm:$0xff]  ;;  %v9195_v20 = vcombine.low %v4009_v4, %v4013_v16  ;;  %v3973_v4 = vld [vmem:[#allocation8 + $0x78] sm:$0xff] }
 0x3be   :  { %7459 = vmatprep.subr.bf16.mxu1 %v9386_v8  ;;  %v9338_v24 = vcombine.high %v4152_v17, %v4156_v19  ;;  %v9337_v31 = vcombine.low %v4152_v17, %v4156_v19  ;;  %v4376_v16 = vld [vmem:[#allocation8 + $0xd10] sm:$0xff] }
 0x3bf   :  { %v4368_v17 = vld [vmem:[#allocation8 + $0xcd0] sm:$0xff] }
 0x3c0   :  { %7507 = vmatpush2.bf16.msra.mxu0 %v9489_v30  ;;  %v3997_v30 = vld [vmem:[#allocation8 + $0x138] sm:$0xff]  ;;  %v4372_v19 = vld [vmem:[#allocation8 + $0xcf0] sm:$0xff] }
 0x3c1   :  { %7460 = vmatpush2.bf16.msra.mxu1 %v9385_v27  ;;  %7508 = vmatprep.subr.bf16.mxu0 %v9482_v29  ;;  %v4400_v29 = vld [vmem:[#allocation8 + $0xdd0] sm:$0xff]  ;;  %v9179_v34 = vcombine.low %v3993_v26, %v3997_v30 }
 0x3c2   :  { %7461 = vmatprep.subr.bf16.mxu1 %v9378_v53  ;;  %v4404_v53 = vld [vmem:[#allocation8 + $0xdf0] sm:$0xff] }
 0x3c3   :  { %v9586_v5 = vcombine.high %v4400_v29, %v4404_v53  ;;  %v9585_v37 = vcombine.low %v4400_v29, %v4404_v53  ;;  %v4360_v29 = vld [vmem:[#allocation8 + $0xc90] sm:$0xff] }
 0x3c4   :  { %7509 = vmatpush2.bf16.msra.mxu0 %v9481_v43  ;;  %v4392_v43 = vld [vmem:[#allocation8 + $0xd90] sm:$0xff] }
 0x3c5   :  { %7462 = vmatpush2.bf16.msra.mxu1 %v9377_v21  ;;  %7510 = vmatprep.subr.bf16.mxu0 %v9474_v18  ;;  %v4396_v21 = vld [vmem:[#allocation8 + $0xdb0] sm:$0xff]  ;;  %v3985_v18 = vld [vmem:[#allocation8 + $0xd8] sm:$0xff] }
 0x3c6   :  { %7463 = vmatprep.subr.bf16.mxu1 %v9370_v35  ;;  %v3989_v35 = vld [vmem:[#allocation8 + $0xf8] sm:$0xff]  ;;  %v9578_v40 = vcombine.high %v4392_v43, %v4396_v21  ;;  %v9577_v52 = vcombine.low %v4392_v43, %v4396_v21  ;;  %v4364_v53 = vld [vmem:[#allocation8 + $0xcb0] sm:$0xff] }
 0x3c7   :  { %v9172_v48 = vcombine.high %v3985_v18, %v3989_v35  ;;  %v9171_v60 = vcombine.low %v3985_v18, %v3989_v35  ;;  %v4077_v43 = vld [vmem:[#allocation8 + $0x3b8] sm:$0xff]  ;;  %v4352_v21 = vld [vmem:[#allocation8 + $0xc50] sm:$0xff] }
 0x3c8   :  { %7511 = vmatpush2.bf16.msra.mxu0 %v9473_v23  ;;  %v3977_v23 = vld [vmem:[#allocation8 + $0x98] sm:$0xff]  ;;  %v4356_v18 = vld [vmem:[#allocation8 + $0xc70] sm:$0xff] }
 0x3c9   :  { %7464 = vmatpush2.bf16.msra.mxu1 %v9369_v47  ;;  %7512 = vmatprep.subr.bf16.mxu0 %v9466_v42  ;;  %v3981_v47 = vld [vmem:[#allocation8 + $0xb8] sm:$0xff]  ;;  %v4384_v42 = vld [vmem:[#allocation8 + $0xd50] sm:$0xff] }
 0x3ca   :  { %7465 = vmatprep.subr.bf16.mxu1 %v9362_v49  ;;  %v4388_v49 = vld [vmem:[#allocation8 + $0xd70] sm:$0xff] }
 0x3cc   :  { %7513 = vmatpush2.bf16.msra.mxu0 %v9465_v55  ;;  %v9164_v55 = vcombine.high %v3977_v23, %v3981_v47 }
 0x3cd   :  { %7466 = vmatpush2.bf16.msra.mxu1 %v9361_v11  ;;  %7564 = vmatprep.subr.bf16.mxu0 %v9204_v56  ;;  %v9570_v56 = vcombine.high %v4384_v42, %v4388_v49 }
 0x3ce   :  { %7467 = vmatprep.subr.bf16.mxu1 %v9354_v54  ;;  %v3969_v54 = vld [vmem:[#allocation8 + $0x58] sm:$0xff] }
 0x3cf   :  { %v10356_v15 = vpop.f32.mrf.mxu0  ;;  %7515 = vmatmul.mubr.bf16.vlgmr.msra.gmra.mxu0 %v10300_v41 }
 0x3d0   :  { %7565 = vmatpush1.bf16.msra.mxu0 %v9203_v3  ;;  %7596 = vmatprep.mubr.bf16.mxu0 %v10250_v59  ;;  %v9180_v59 = vcombine.high %v3993_v26, %v3997_v30  ;;  %v9163_v3 = vcombine.low %v3977_v23, %v3981_v47  ;;  %v9554_v26 = vcombine.high %v4368_v17, %v4372_v19  ;;  %v4081_v30 = vld [vmem:[#allocation8 + $0x3d8] sm:$0xff] }
 0x3d1   :  { %7468 = vmatpush2.bf16.msra.mxu1 %v9353_v9  ;;  %v10360_v8 = vpop.f32.mrf.mxu0  ;;  %7566 = vmatprep.subr.bf16.mxu0 %v9196_v10  ;;  %v9569_v9 = vcombine.low %v4384_v42, %v4388_v49  ;;  %v4065_v23 = vld [vmem:[#allocation8 + $0x358] sm:$0xff]  ;;  %v4344_v42 = vld [vmem:[#allocation8 + $0xc10] sm:$0xff] }
 0x3d2   :  { %7469 = vmatprep.subr.bf16.mxu1 %v9346_v12  ;;  %v9562_v12 = vcombine.high %v4376_v16, %v4380_v61  ;;  %v4069_v47 = vld [vmem:[#allocation8 + $0x378] sm:$0xff]  ;;  %v4348_v49 = vld [vmem:[#allocation8 + $0xc30] sm:$0xff] }
 0x3d3   :  { %v7274_v27 = vpop.f32.mrf.mxu0 }
 0x3d4   :  { %7567 = vmatpush1.bf16.msra.mxu0 %v9195_v20  ;;  %v9155_v20 = vcombine.low %v3969_v54, %v3973_v4  ;;  %v4085_v27 = vld [vmem:[#allocation8 + $0x3f8] sm:$0xff] }
 0x3d5   :  { %7470 = vmatpush2.bf16.msra.mxu1 %v9345_v50  ;;  %v7275_v51 = vpop.f32.mrf.mxu0  ;;  %7568 = vmatprep.subr.bf16.mxu0 %v9188_v33  ;;  %v9561_v33 = vcombine.low %v4376_v16, %v4380_v61  ;;  %v4468_v16 = vld [vmem:[#allocation8 + $0xff0] sm:$0xff] }
 0x3d6   :  { %7471 = vmatprep.subr.bf16.mxu1 %v9338_v24  ;;  %v9148_v24 = vcombine.high %v3961_v58, %v3965_v13 }
 0x3d8   :  { %7569 = vmatpush1.bf16.msra.mxu0 %v9187_v38  ;;  %v9147_v38 = vcombine.low %v3961_v58, %v3965_v13  ;;  %v4456_v58 = vld [vmem:[#allocation8 + $0xf90] sm:$0xff] }
 0x3d9   :  { %7472 = vmatpush2.bf16.msra.mxu1 %v9337_v31  ;;  %7570 = vmatprep.subr.bf16.mxu0 %v9180_v59  ;;  %v9553_v31 = vcombine.low %v4368_v17, %v4372_v19  ;;  %v9546_v59 = vcombine.high %v4360_v29, %v4364_v53  ;;  %v4460_v13 = vld [vmem:[#allocation8 + $0xfb0] sm:$0xff] }
 0x3da   :  { %7523 = vmatprep.subr.bf16.mxu1 %v9586_v5  ;;  %v4073_v5 = vld [vmem:[#allocation8 + $0x398] sm:$0xff] }
 0x3dc   :  { %7474 = vmatmul.mubr.bf16.vlgmr.msra.gmra.mxu1 %v10277_v63  ;;  %v7229_v46 = vpop.f32.mrf.mxu1  ;;  %7571 = vmatpush1.bf16.msra.mxu0 %v9179_v34  ;;  %v9267_v34 = vcombine.low %v4081_v30, %v4085_v27 }
 0x3dd   :  { %v10364_v22 = vadd.f32 %v7229_v46, %v10348_v32  ;;  %7524 = vmatpush1.bf16.msra.mxu1 %v9585_v37  ;;  %7555 = vmatprep.mubr.bf16.mxu1 %v10324_v25  ;;  %v9156_v32 = vcombine.high %v3969_v54, %v3973_v4  ;;  %v9545_v37 = vcombine.low %v4360_v29, %v4364_v53  ;;  %v4061_v54 = vld [vmem:[#allocation8 + $0x338] sm:$0xff]  ;;  %v4464_v4 = vld [vmem:[#allocation8 + $0xfd0] sm:$0xff] }
 0x3de   :  { %v7231_v11 = vpop.f32.mrf.mxu1  ;;  %7525 = vmatprep.subr.bf16.mxu1 %v9578_v40  ;;  %7572 = vmatprep.subr.bf16.mxu0 %v9172_v48  ;;  %v9260_v40 = vcombine.high %v4073_v5, %v4077_v43  ;;  %v9538_v48 = vcombine.high %v4352_v21, %v4356_v18  ;;  %v4452_v29 = vld [vmem:[#allocation8 + $0xf70] sm:$0xff] }
 0x3df   :  { %v10368_v50 = vadd.f32 %v7231_v11, %v10352_v28  ;;  %v9268_v28 = vcombine.high %v4081_v30, %v4085_v27  ;;  %v9530_v11 = vcombine.high %v4344_v42, %v4348_v49  ;;  %v4045_v30 = vld [vmem:[#allocation8 + $0x2b8] sm:$0xff]  ;;  %v4448_v27 = vld [vmem:[#allocation8 + $0xf50] sm:$0xff] }
 0x3e0   :  { %v7233_v1 = vpop.f32.mrf.mxu1  ;;  %7573 = vmatpush1.bf16.msra.mxu0 %v9171_v60  ;;  %v9259_v60 = vcombine.low %v4073_v5, %v4077_v43  ;;  %v4037_v5 = vld [vmem:[#allocation8 + $0x278] sm:$0xff]  ;;  %v4440_v43 = vld [vmem:[#allocation8 + $0xf10] sm:$0xff] }
 0x3e1   :  { %7526 = vmatpush1.bf16.msra.mxu1 %v9577_v52  ;;  %7574 = vmatprep.subr.bf16.mxu0 %v9164_v55  ;;  %v7736_v51 = vsel %vm7728_vm8, %v10368_v50, 0.0  ;;  %v9537_v52 = vcombine.low %v4352_v21, %v4356_v18  ;;  %v9252_v55 = vcombine.high %v4065_v23, %v4069_v47  ;;  %v9251_v1 = vcombine.low %v4065_v23, %v4069_v47  ;;  %v4444_v21 = vld [vmem:[#allocation8 + $0xf30] sm:$0xff]  ;;  %v4029_v23 = vld [vmem:[#allocation8 + $0x238] sm:$0xff] }
 0x3e2   :  { %v7234_v10 = vpop.f32.mrf.mxu1  ;;  %7527 = vmatprep.subr.bf16.mxu1 %v9570_v56  ;;  %v7737_v35 = vrot.slane %v7736_v51, 4  ;;  %v4057_v56 = vld [vmem:[#allocation8 + $0x318] sm:$0xff]  ;;  %v4432_v47 = vld [vmem:[#allocation8 + $0xed0] sm:$0xff] }
 0x3e3   :  { %v4049_v10 = vld [vmem:[#allocation8 + $0x2d8] sm:$0xff]  ;;  %v9243_v19 = vcombine.low %v4057_v56, %v4061_v54 }
 0x3e4   :  { %7575 = vmatpush1.bf16.msra.mxu0 %v9163_v3  ;;  %v7738_v46 = vadd.f32 %v7737_v35, %v7736_v51  ;;  %v9529_v3 = vcombine.low %v4344_v42, %v4348_v49  ;;  %v9641_v51 = vcombine.low %v4456_v58, %v4460_v13  ;;  %v4436_v42 = vld [vmem:[#allocation8 + $0xef0] sm:$0xff] }
 0x3e5   :  { %7528 = vmatpush1.bf16.msra.mxu1 %v9569_v9  ;;  %7576 = vmatprep.subr.bf16.mxu0 %v9156_v32  ;;  %v9244_v9 = vcombine.high %v4057_v56, %v4061_v54  ;;  %v9650_v32 = vcombine.high %v4464_v4, %v4468_v16  ;;  %v4277_v56 = vld [vmem:[#allocation8 + $0x9f8] sm:$0xff]  ;;  %v4424_v54 = vld [vmem:[#allocation8 + $0xe90] sm:$0xff] }
 0x3e6   :  { %7529 = vmatprep.subr.bf16.mxu1 %v9562_v12  ;;  %v7739_v61 = vrot.slane %v7738_v46, 2  ;;  %v4053_v12 = vld [vmem:[#allocation8 + $0x2f8] sm:$0xff] }
 0x3e8   :  { %7577 = vmatpush1.bf16.msra.mxu0 %v9155_v20  ;;  %v7740_v17 = vadd.f32 %v7739_v61, %v7738_v46  ;;  %v9649_v20 = vcombine.low %v4464_v4, %v4468_v16  ;;  %v4428_v4 = vld [vmem:[#allocation8 + $0xeb0] sm:$0xff]  ;;  %v7729_v16 = vsel %vm7728_vm8, %v10364_v22, 0.0 }
 0x3e9   :  { %7530 = vmatpush1.bf16.msra.mxu1 %v9561_v33  ;;  %7578 = vmatprep.subr.bf16.mxu0 %v9148_v24  ;;  %v9236_v33 = vcombine.high %v4049_v10, %v4053_v12  ;;  %v9642_v24 = vcombine.high %v4456_v58, %v4460_v13  ;;  %v7730_v58 = vrot.slane %v7729_v16, 4  ;;  %v4416_v13 = vld [vmem:[#allocation8 + $0xe50] sm:$0xff] }
 0x3ea   :  { %7531 = vmatprep.subr.bf16.mxu1 %v9554_v26  ;;  %v4041_v26 = vld [vmem:[#allocation8 + $0x298] sm:$0xff]  ;;  %v7741_v53 = vrot.slane %v7740_v17, 1 }
 0x3eb   :  { %v9227_v35 = vcombine.low %v4041_v26, %v4045_v30 }
 0x3ec   :  { %7579 = vmatpush1.bf16.msra.mxu0 %v9147_v38  ;;  %v9235_v38 = vcombine.low %v4049_v10, %v4053_v12  ;;  %v7742_v18 = vadd.f32 %v7741_v53, %v7740_v17  ;;  %v4265_v10 = vld [vmem:[#allocation8 + $0x998] sm:$0xff]  ;;  %v4420_v17 = vld [vmem:[#allocation8 + $0xe70] sm:$0xff] }
 0x3ed   :  { %7532 = vmatpush1.bf16.msra.mxu1 %v9553_v31  ;;  %7580 = vmatprep.subr.bf16.mxu0 %v9268_v28  ;;  %v9228_v31 = vcombine.high %v4041_v26, %v4045_v30  ;;  %v9634_v28 = vcombine.high %v4448_v27, %v4452_v29  ;;  %v4269_v12 = vld [vmem:[#allocation8 + $0x9b8] sm:$0xff]  ;;  %v4408_v53 = vld [vmem:[#allocation8 + $0xe10] sm:$0xff] }
 0x3ee   :  { %7533 = vmatprep.subr.bf16.mxu1 %v9546_v59  ;;  %v4033_v59 = vld [vmem:[#allocation8 + $0x258] sm:$0xff]  ;;  %v7787_v49 = vmul.f32 0.5, %v7742_v18 }
 0x3ef   :  { %v9219_v46 = vcombine.low %v4033_v59, %v4037_v5  ;;  %v4257_v26 = vld [vmem:[#allocation8 + $0x958] sm:$0xff] }
 0x3f0   :  { %7581 = vmatpush2.bf16.msra.mxu0 %v9267_v34  ;;  %v9633_v34 = vcombine.low %v4448_v27, %v4452_v29  ;;  %v10375_v61 = vsub.f32 %v10368_v50, %v7787_v49  ;;  %v9609_v50 = vcombine.low %v4424_v54, %v4428_v4  ;;  %v4261_v30 = vld [vmem:[#allocation8 + $0x978] sm:$0xff]  ;;  %v7731_v27 = vadd.f32 %v7730_v58, %v7729_v16 }
 0x3f1   :  { %7534 = vmatpush1.bf16.msra.mxu1 %v9545_v37  ;;  %7582 = vmatprep.subr.bf16.mxu0 %v9260_v40  ;;  %v9220_v37 = vcombine.high %v4033_v59, %v4037_v5  ;;  %v9626_v40 = vcombine.high %v4440_v43, %v4444_v21  ;;  %v9601_v59 = vcombine.low %v4416_v13, %v4420_v17  ;;  %v4253_v18 = vld [vmem:[#allocation8 + $0x938] sm:$0xff] }
 0x3f2   :  { %7535 = vmatprep.subr.bf16.mxu1 %v9538_v48  ;;  %v4025_v48 = vld [vmem:[#allocation8 + $0x218] sm:$0xff]  ;;  %v9444_v5 = vcombine.high %v4257_v26, %v4261_v30 }
 0x3f3   :  { %v4137_v49 = vld [vmem:[#allocation8 + $0x598] sm:$0xff] }
 0x3f4   :  { %7583 = vmatpush2.bf16.msra.mxu0 %v9259_v60  ;;  %v9625_v60 = vcombine.low %v4440_v43, %v4444_v21  ;;  %v4249_v21 = vld [vmem:[#allocation8 + $0x918] sm:$0xff] }
 0x3f5   :  { %7536 = vmatpush1.bf16.msra.mxu1 %v9537_v52  ;;  %7584 = vmatprep.subr.bf16.mxu0 %v9252_v55  ;;  %v9212_v52 = vcombine.high %v4025_v48, %v4029_v23  ;;  %v9618_v55 = vcombine.high %v4432_v47, %v4436_v42 }
 0x3f6   :  { %7537 = vmatprep.subr.bf16.mxu1 %v9530_v11  ;;  %v4273_v11 = vld [vmem:[#allocation8 + $0x9d8] sm:$0xff] }
 0x3f8   :  { %7585 = vmatpush2.bf16.msra.mxu0 %v9251_v1  ;;  %v9211_v1 = vcombine.low %v4025_v48, %v4029_v23  ;;  %v9443_v48 = vcombine.low %v4257_v26, %v4261_v30  ;;  %v4225_v30 = vld [vmem:[#allocation8 + $0x858] sm:$0xff] }
 0x3f9   :  { %7538 = vmatpush1.bf16.msra.mxu1 %v9529_v3  ;;  %7586 = vmatprep.subr.bf16.mxu0 %v9244_v9  ;;  %v9617_v3 = vcombine.low %v4432_v47, %v4436_v42  ;;  %v9460_v9 = vcombine.high %v4273_v11, %v4277_v56  ;;  %v9436_v47 = vcombine.high %v4249_v21, %v4253_v18 }
 0x3fa   :  { %7539 = vmatprep.subr.bf16.mxu1 %v9650_v32  ;;  %v9610_v32 = vcombine.high %v4424_v54, %v4428_v4  ;;  %v4245_v54 = vld [vmem:[#allocation8 + $0x8f8] sm:$0xff]  ;;  %v9435_v4 = vcombine.low %v4249_v21, %v4253_v18 }
 0x3fc   :  { %7587 = vmatpush2.bf16.msra.mxu0 %v9243_v19  ;;  %v7803_v19 = vmul.f32 %v10375_v61, %v10375_v61 }
 0x3fd   :  { %7540 = vmatpush2.bf16.msra.mxu1 %v9649_v20  ;;  %7588 = vmatprep.subr.bf16.mxu0 %v9236_v33  ;;  %v9459_v20 = vcombine.low %v4273_v11, %v4277_v56  ;;  %v9452_v33 = vcombine.high %v4265_v10, %v4269_v12  ;;  %v4141_v11 = vld [vmem:[#allocation8 + $0x5b8] sm:$0xff] }
 0x3fe   :  { %7541 = vmatprep.subr.bf16.mxu1 %v9642_v24  ;;  %v9602_v24 = vcombine.high %v4416_v13, %v4420_v17  ;;  %v4241_v56 = vld [vmem:[#allocation8 + $0x8d8] sm:$0xff] }
 0x3ff   :  { %v4129_v13 = vld [vmem:[#allocation8 + $0x558] sm:$0xff] }
 0x400   :  { %7589 = vmatpush2.bf16.msra.mxu0 %v9235_v38  ;;  %v4412_v38 = vld [vmem:[#allocation8 + $0xe30] sm:$0xff]  ;;  %v4133_v17 = vld [vmem:[#allocation8 + $0x578] sm:$0xff] }
 0x401   :  { %7542 = vmatpush2.bf16.msra.mxu1 %v9641_v51  ;;  %7590 = vmatprep.subr.bf16.mxu0 %v9228_v31  ;;  %v7817_v51 = vsel %vm7728_vm8, %v7803_v19, 0.0  ;;  %v9451_v31 = vcombine.low %v4265_v10, %v4269_v12  ;;  %v9594_v43 = vcombine.high %v4408_v53, %v4412_v38  ;;  %v9593_v23 = vcombine.low %v4408_v53, %v4412_v38  ;;  %v4237_v10 = vld [vmem:[#allocation8 + $0x8b8] sm:$0xff] }
 0x402   :  { %7543 = vmatprep.subr.bf16.mxu1 %v9634_v28 }
 0x404   :  { %7591 = vmatpush2.bf16.msra.mxu0 %v9227_v35  ;;  %v7732_v35 = vrot.slane %v7731_v27, 2 }
 0x405   :  { %7544 = vmatpush2.bf16.msra.mxu1 %v9633_v34  ;;  %7592 = vmatprep.subr.bf16.mxu0 %v9220_v37  ;;  %v4145_v37 = vld [vmem:[#allocation8 + $0x5d8] sm:$0xff] }
 0x406   :  { %7545 = vmatprep.subr.bf16.mxu1 %v9626_v40  ;;  %v4149_v40 = vld [vmem:[#allocation8 + $0x5f8] sm:$0xff] }
 0x407   :  { %v9332_v42 = vcombine.high %v4145_v37, %v4149_v40 }
 0x408   :  { %7593 = vmatpush2.bf16.msra.mxu0 %v9219_v46  ;;  %v10386_v46 = vld [vmem:[#allocation10] sm:$0xff] }
 0x409   :  { %7546 = vmatpush2.bf16.msra.mxu1 %v9625_v60  ;;  %7594 = vmatprep.subr.bf16.mxu0 %v9212_v52  ;;  %v4483_v60 = vrot.slane %v10386_v46, %v680_v2  ;;  %v7733_v52 = vadd.f32 %v7732_v35, %v7731_v27  ;;  %v4487_v16 = vrot.slane %v10386_v46, %v684_v6  ;;  %v4229_v27 = vld [vmem:[#allocation8 + $0x878] sm:$0xff] }
 0x40a   :  { %7547 = vmatprep.subr.bf16.mxu1 %v9618_v55  ;;  %v9427_v6 = vcombine.low %v4241_v56, %v4245_v54  ;;  %v9412_v21 = vcombine.high %v4225_v30, %v4229_v27 }
 0x40b   :  { %v7271_v2 = vadd.f32 %v10356_v15, %v4483_v60  ;;  %v7734_v12 = vrot.slane %v7733_v52, 1  ;;  %v9316_v15 = vcombine.high %v4129_v13, %v4133_v17  ;;  %v4337_v60 = vld [vmem:[#allocation8 + $0xbd8] sm:$0xff] }
 0x40c   :  { %7595 = vmatpush2.bf16.msra.mxu0 %v9211_v1  ;;  %v9331_v1 = vcombine.low %v4145_v37, %v4149_v40  ;;  %v4221_v37 = vld [vmem:[#allocation8 + $0x838] sm:$0xff] }
 0x40d   :  { %7548 = vmatpush2.bf16.msra.mxu1 %v9617_v3  ;;  %7646 = vmatprep.subr.bf16.mxu0 %v9460_v9  ;;  %v9324_v3 = vcombine.high %v4137_v49, %v4141_v11  ;;  %v9428_v9 = vcombine.high %v4241_v56, %v4245_v54  ;;  %v7735_v53 = vadd.f32 %v7734_v12, %v7733_v52  ;;  %v4109_v56 = vld [vmem:[#allocation8 + $0x4b8] sm:$0xff] }
 0x40e   :  { %7549 = vmatprep.subr.bf16.mxu1 %v9610_v32  ;;  %v4233_v32 = vld [vmem:[#allocation8 + $0x898] sm:$0xff] }
 0x40f   :  { %v10379_v29 = vpop.f32.mrf.mxu0  ;;  %7597 = vmatmul.mubr.bf16.vlgmr.msra.gmra.mxu0 %v10275_v45  ;;  %v7818_v45 = vrot.slane %v7817_v51, 4  ;;  %v7786_v40 = vmul.f32 0.5, %v7735_v53 }
 0x410   :  { %7647 = vmatpush1.bf16.msra.mxu0 %v9459_v20  ;;  %7678 = vmatprep.mubr.bf16.mxu0 %v10286_v36  ;;  %v9323_v20 = vcombine.low %v4137_v49, %v4141_v11  ;;  %v4105_v11 = vld [vmem:[#allocation8 + $0x498] sm:$0xff] }
 0x411   :  { %7550 = vmatpush2.bf16.msra.mxu1 %v9609_v50  ;;  %v10384_v28 = vpop.f32.mrf.mxu0  ;;  %7648 = vmatprep.subr.bf16.mxu0 %v9452_v33  ;;  %v7819_v55 = vadd.f32 %v7818_v45, %v7817_v51  ;;  %v7273_v50 = vadd.f32 %v10360_v8, %v4487_v16  ;;  %v10405_v52 = vsub.f32 %v10364_v22, %v7786_v40  ;;  %v4101_v22 = vld [vmem:[#allocation8 + $0x478] sm:$0xff] }
 0x412   :  { %7551 = vmatprep.subr.bf16.mxu1 %v9602_v24  ;;  %v9420_v24 = vcombine.high %v4233_v32, %v4237_v10  ;;  %v4205_v40 = vld [vmem:[#allocation8 + $0x7b8] sm:$0xff] }
 0x413   :  { %v7356_v34 = vpop.f32.mrf.mxu0  ;;  %v7820_v58 = vrot.slane %v7819_v55, 2 }
 0x414   :  { %7649 = vmatpush1.bf16.msra.mxu0 %v9451_v31  ;;  %v4121_v31 = vld [vmem:[#allocation8 + $0x518] sm:$0xff] }
 0x415   :  { %7552 = vmatpush2.bf16.msra.mxu1 %v9601_v59  ;;  %v7357_v36 = vpop.f32.mrf.mxu0  ;;  %7650 = vmatprep.subr.bf16.mxu0 %v9444_v5  ;;  %v7821_v38 = vadd.f32 %v7820_v58, %v7819_v55  ;;  %v4125_v59 = vld [vmem:[#allocation8 + $0x538] sm:$0xff]  ;;  %v9291_v58 = vcombine.low %v4105_v11, %v4109_v56 }
 0x416   :  { %7553 = vmatprep.subr.bf16.mxu1 %v9594_v43  ;;  %v9419_v43 = vcombine.low %v4233_v32, %v4237_v10  ;;  %v9308_v45 = vcombine.high %v4121_v31, %v4125_v59  ;;  %v4217_v34 = vld [vmem:[#allocation8 + $0x818] sm:$0xff]  ;;  %v7802_v32 = vmul.f32 %v10405_v52, %v10405_v52 }
 0x417   :  { %v4113_v36 = vld [vmem:[#allocation8 + $0x4d8] sm:$0xff]  ;;  %v9403_v54 = vcombine.low %v4217_v34, %v4221_v37 }
 0x418   :  { %7651 = vmatpush1.bf16.msra.mxu0 %v9443_v48  ;;  %v7822_v48 = vrot.slane %v7821_v38, 1 }
 0x419   :  { %7554 = vmatpush2.bf16.msra.mxu1 %v9593_v23  ;;  %7652 = vmatprep.subr.bf16.mxu0 %v9436_v47  ;;  %v9411_v23 = vcombine.low %v4225_v30, %v4229_v27  ;;  %v9307_v47 = vcombine.low %v4121_v31, %v4125_v59  ;;  %v4209_v31 = vld [vmem:[#allocation8 + $0x7d8] sm:$0xff] }
 0x41a   :  { %7605 = vmatprep.subr.bf16.mxu1 %v9332_v42  ;;  %v9404_v42 = vcombine.high %v4217_v34, %v4221_v37  ;;  %v7823_v55 = vadd.f32 %v7822_v48, %v7821_v38  ;;  %v4313_v38 = vld [vmem:[#allocation8 + $0xb18] sm:$0xff] }
 0x41b   :  { %v4213_v59 = vld [vmem:[#allocation8 + $0x7f8] sm:$0xff] }
 0x41c   :  { %v7311_v19 = vpop.f32.mrf.mxu1  ;;  %7556 = vmatmul.mubr.bf16.vlgmr.msra.gmra.mxu1 %v10326_v7  ;;  %7653 = vmatpush1.bf16.msra.mxu0 %v9435_v4  ;;  %v7867_v10 = vmul.f32 0.5, %v7823_v55  ;;  %v4309_v34 = vld [vmem:[#allocation8 + $0xaf8] sm:$0xff] }
 0x41d   :  { %v7312_v33 = vadd.f32 %v7311_v19, %v7271_v2  ;;  %7606 = vmatpush1.bf16.msra.mxu1 %v9331_v1  ;;  %7637 = vmatprep.mubr.bf16.mxu1 %v10253_v62  ;;  %v9315_v62 = vcombine.low %v4129_v13, %v4133_v17  ;;  %v9292_v1 = vcombine.high %v4105_v11, %v4109_v56  ;;  %v4097_v2 = vld [vmem:[#allocation8 + $0x458] sm:$0xff] }
 0x41e   :  { %v7313_v26 = vpop.f32.mrf.mxu1  ;;  %7607 = vmatprep.subr.bf16.mxu1 %v9324_v3  ;;  %7654 = vmatprep.subr.bf16.mxu0 %v9428_v9  ;;  %v4329_v3 = vld [vmem:[#allocation8 + $0xb98] sm:$0xff]  ;;  %v9284_v17 = vcombine.high %v4097_v2, %v4101_v22 }
 0x41f   :  { %v7314_v51 = vadd.f32 %v7313_v26, %v7273_v50  ;;  %v10399_v5 = vadd.f32 %v10379_v29, %v7312_v33  ;;  %v4117_v29 = vld [vmem:[#allocation8 + $0x4f8] sm:$0xff]  ;;  %v7875_v50 = vadd.f32 1e-05, %v7867_v10 }
 0x420   :  { %v7315_v8 = vpop.f32.mrf.mxu1  ;;  %7655 = vmatpush1.bf16.msra.mxu0 %v9427_v6  ;;  %v9300_v49 = vcombine.high %v4113_v36, %v4117_v29  ;;  %v9299_v4 = vcombine.low %v4113_v36, %v4117_v29  ;;  %v4333_v9 = vld [vmem:[#allocation8 + $0xbb8] sm:$0xff]  ;;  %v7810_v6 = vsel %vm7728_vm8, %v7802_v32, 0.0  ;;  %v9395_v36 = vcombine.low %v4209_v31, %v4213_v59 }
 0x421   :  { %7608 = vmatpush1.bf16.msra.mxu1 %v9323_v20  ;;  %7656 = vmatprep.subr.bf16.mxu0 %v9420_v24  ;;  %v10402_v18 = vadd.f32 %v10384_v28, %v7314_v51  ;;  %v4341_v28 = vld [vmem:[#allocation8 + $0xbf8] sm:$0xff]  ;;  %v9516_v13 = vcombine.high %v4329_v3, %v4333_v9  ;;  %v9515_v26 = vcombine.low %v4329_v3, %v4333_v9  ;;  %v7811_v27 = vrot.slane %v7810_v6, 4 }
 0x422   :  { %v7316_v35 = vpop.f32.mrf.mxu1  ;;  %7609 = vmatprep.subr.bf16.mxu1 %v9316_v15  ;;  %v9524_v16 = vcombine.high %v4337_v60, %v4341_v28  ;;  %v9523_v12 = vcombine.low %v4337_v60, %v4341_v28  ;;  %v4321_v19 = vld [vmem:[#allocation8 + $0xb58] sm:$0xff]  ;;  %v9283_v15 = vcombine.low %v4097_v2, %v4101_v22  ;;  %9882 = vrsqrt.f32 %v7875_v50 }
 0x423   :  { %v4325_v20 = vld [vmem:[#allocation8 + $0xb78] sm:$0xff]  ;;  %v9396_v35 = vcombine.high %v4209_v31, %v4213_v59 }
 0x424   :  { %7657 = vmatpush1.bf16.msra.mxu0 %v9419_v43  ;;  %v4089_v33 = vld [vmem:[#allocation8 + $0x418] sm:$0xff]  ;;  %v9508_v30 = vcombine.high %v4321_v19, %v4325_v20  ;;  %v9507_v8 = vcombine.low %v4321_v19, %v4325_v20 }
 0x425   :  { %7610 = vmatpush1.bf16.msra.mxu1 %v9315_v62  ;;  %7658 = vmatprep.subr.bf16.mxu0 %v9412_v21  ;;  %v4093_v24 = vld [vmem:[#allocation8 + $0x438] sm:$0xff]  ;;  %v7812_v21 = vadd.f32 %v7811_v27, %v7810_v6 }
 0x426   :  { %7611 = vmatprep.subr.bf16.mxu1 %v9308_v45  ;;  %v9276_v53 = vcombine.high %v4089_v33, %v4093_v24  ;;  %v4317_v51 = vld [vmem:[#allocation8 + $0xb38] sm:$0xff]  ;;  %v9275_v43 = vcombine.low %v4089_v33, %v4093_v24 }
 0x427   :  { %v9500_v62 = vcombine.high %v4313_v38, %v4317_v51  ;;  %v4305_v45 = vld [vmem:[#allocation8 + $0xad8] sm:$0xff]  ;;  %v9499_v48 = vcombine.low %v4313_v38, %v4317_v51 }
 0x428   :  { %7659 = vmatpush1.bf16.msra.mxu0 %v9411_v23  ;;  %v4201_v37 = vld [vmem:[#allocation8 + $0x798] sm:$0xff]  ;;  %v9492_v29 = vcombine.high %v4305_v45, %v4309_v34  ;;  %v7813_v23 = vrot.slane %v7812_v21, 2  ;;  %v9491_v55 = vcombine.low %v4305_v45, %v4309_v34 }
 0x429   :  { %7612 = vmatpush1.bf16.msra.mxu1 %v9307_v47  ;;  %7660 = vmatprep.subr.bf16.mxu0 %v9404_v42  ;;  %v9388_v47 = vcombine.high %v4201_v37, %v4205_v40  ;;  %v4297_v42 = vld [vmem:[#allocation8 + $0xa98] sm:$0xff]  ;;  %v9387_v11 = vcombine.low %v4201_v37, %v4205_v40 }
 0x42a   :  { %7613 = vmatprep.subr.bf16.mxu1 %v9300_v49  ;;  %v4301_v49 = vld [vmem:[#allocation8 + $0xab8] sm:$0xff] }
 0x42b   :  { %v4193_v60 = vld [vmem:[#allocation8 + $0x758] sm:$0xff]  ;;  %v9484_v56 = vcombine.high %v4297_v42, %v4301_v49  ;;  %v9483_v10 = vcombine.low %v4297_v42, %v4301_v49  ;;  %v9822_v49 = vld [vmem:[%s10666_s5 + $0x68] sm:$0xff]  }
 0x42c   :  { %7661 = vmatpush1.bf16.msra.mxu0 %v9403_v54  ;;  %v4197_v28 = vld [vmem:[#allocation8 + $0x778] sm:$0xff]  ;;  %v7814_v54 = vadd.f32 %v7813_v23, %v7812_v21  ;;  %v9819_v21 = vld [vmem:[%s10666_s5 + $0x38] sm:$0xff]  }
 0x42d   :  { %7614 = vmatpush1.bf16.msra.mxu1 %v9299_v4  ;;  %7662 = vmatprep.subr.bf16.mxu0 %v9524_v16  ;;  %v9380_v4 = vcombine.high %v4193_v60, %v4197_v28  ;;  %v4289_v16 = vld [vmem:[#allocation8 + $0xa58] sm:$0xff]  ;;  %v9379_v2 = vcombine.low %v4193_v60, %v4197_v28 }
 0x42e   :  { %7615 = vmatprep.subr.bf16.mxu1 %v9292_v1  ;;  %v4293_v1 = vld [vmem:[#allocation8 + $0xa78] sm:$0xff] }
 0x42f   :  { %v4185_v3 = vld [vmem:[#allocation8 + $0x718] sm:$0xff]  ;;  %v9883_v32 = vpop.eup %9882  ;;  %v9476_v22 = vcombine.high %v4289_v16, %v4293_v1  ;;  %v9475_v50 = vcombine.low %v4289_v16, %v4293_v1 }
 0x430   :  { %7663 = vmatpush2.bf16.msra.mxu0 %v9523_v12  ;;  %v4189_v9 = vld [vmem:[#allocation8 + $0x738] sm:$0xff]  ;;  %v7815_v12 = vrot.slane %v7814_v54, 1  ;;  %v7891_v19 = vmul.f32 %v9883_v32, %v10375_v61  ;;  %v9818_v61 = vld [vmem:[%s10666_s5 + $0x78] sm:$0xff]  }
 0x431   :  { %7616 = vmatpush1.bf16.msra.mxu1 %v9291_v58  ;;  %7664 = vmatprep.subr.bf16.mxu0 %v9516_v13  ;;  %v9372_v58 = vcombine.high %v4185_v3, %v4189_v9  ;;  %v4281_v13 = vld [vmem:[#allocation8 + $0xa18] sm:$0xff]  ;;  %v9371_v33 = vcombine.low %v4185_v3, %v4189_v9  ;;  %v9825_v9 = vld [vmem:[%s10666_s5 + $0x20] sm:$0xff]  }
 0x432   :  { %7617 = vmatprep.subr.bf16.mxu1 %v9284_v17  ;;  %v4285_v17 = vld [vmem:[#allocation8 + $0xa38] sm:$0xff]  ;;  %vm7899_vm9 = vcmp.gt.f32.partialorder %v7891_v19, 0.0 }
 0x433   :  { %v4177_v20 = vld [vmem:[#allocation8 + $0x6d8] sm:$0xff]  ;;  %v9468_v24 = vcombine.high %v4281_v13, %v4285_v17  ;;  %v9467_v38 = vcombine.low %v4281_v13, %v4285_v17  ;;  %v9827_v13 = vld [vmem:[%s10666_s5 + $0x18] sm:$0xff]  }
 0x434   :  { %7665 = vmatpush2.bf16.msra.mxu0 %v9515_v26  ;;  %v4181_v6 = vld [vmem:[#allocation8 + $0x6f8] sm:$0xff]  ;;  %v7816_v26 = vadd.f32 %v7815_v12, %v7814_v54 }
 0x435   :  { %7618 = vmatpush1.bf16.msra.mxu1 %v9283_v15  ;;  %7666 = vmatprep.subr.bf16.mxu0 %v9508_v30  ;;  %v9364_v15 = vcombine.high %v4177_v20, %v4181_v6  ;;  %v4169_v30 = vld [vmem:[#allocation8 + $0x698] sm:$0xff]  ;;  %v9363_v51 = vcombine.low %v4177_v20, %v4181_v6 }
 0x436   :  { %7619 = vmatprep.subr.bf16.mxu1 %v9276_v53  ;;  %v4173_v27 = vld [vmem:[#allocation8 + $0x6b8] sm:$0xff]  ;;  %v7907_v53 = vmul.f32 0.2, %v7891_v19  ;;  %v7866_v31 = vmul.f32 0.5, %v7816_v26 }
 0x437   :  { %v9356_v59 = vcombine.high %v4169_v30, %v4173_v27  ;;  %v9820_v45 = vld [vmem:[%s10666_s5 + $0x70] sm:$0xff]  }
 0x438   :  { %7667 = vmatpush2.bf16.msra.mxu0 %v9507_v8  ;;  %v7915_v8 = vsel %vm7899_vm9, %v7891_v19, %v7907_v53  ;;  %v7874_v34 = vadd.f32 1e-05, %v7866_v31  ;;  %v9821_v23 = vld [vmem:[%s10666_s5 + $0x30] sm:$0xff]  }
 0x439   :  { %7620 = vmatpush1.bf16.msra.mxu1 %v9275_v43  ;;  %7668 = vmatprep.subr.bf16.mxu0 %v9500_v62  ;;  %v4161_v43 = vld [vmem:[#allocation8 + $0x658] sm:$0xff]  ;;  %v7923_v37 = vpack.c.bf16 %v7915_v8, %v7915_v8 }
 0x43a   :  { %7621 = vmatprep.subr.bf16.mxu1 %v9396_v35  ;;  %v4165_v62 = vld [vmem:[#allocation8 + $0x678] sm:$0xff]  ;;  %v9355_v35 = vcombine.low %v4169_v30, %v4173_v27  ;;  %9884 = vrsqrt.f32 %v7874_v34 }
 0x43b   :  { %v9348_v40 = vcombine.high %v4161_v43, %v4165_v62  ;;  %v9347_v42 = vcombine.low %v4161_v43, %v4165_v62  ;;  %v4401_v28 = vld [vmem:[#allocation8 + $0xdd8] sm:$0xff] }
 0x43c   :  { %7669 = vmatpush2.bf16.msra.mxu0 %v9499_v48  ;;  %v4393_v1 = vld [vmem:[#allocation8 + $0xd98] sm:$0xff] }
 0x43d   :  { %7622 = vmatpush2.bf16.msra.mxu1 %v9395_v36  ;;  %7670 = vmatprep.subr.bf16.mxu0 %v9492_v29  ;;  %v4153_v36 = vld [vmem:[#allocation8 + $0x618] sm:$0xff] }
 0x43e   :  { %7623 = vmatprep.subr.bf16.mxu1 %v9388_v47  ;;  %v4157_v29 = vld [vmem:[#allocation8 + $0x638] sm:$0xff] }
 0x43f   :  { %v9339_v54 = vcombine.low %v4153_v36, %v4157_v29  ;;  %v4397_v3 = vld [vmem:[#allocation8 + $0xdb8] sm:$0xff] }
 0x440   :  { %7671 = vmatpush2.bf16.msra.mxu0 %v9491_v55  ;;  %v4405_v55 = vld [vmem:[#allocation8 + $0xdf8] sm:$0xff]  ;;  %v9579_v19 = vcombine.low %v4393_v1, %v4397_v3 }
 0x441   :  { %7624 = vmatpush2.bf16.msra.mxu1 %v9387_v11  ;;  %7672 = vmatprep.subr.bf16.mxu0 %v9484_v56  ;;  %v9823_v11 = vld [vmem:[%s10666_s5 + $0x28] sm:$0xff]   ;;  %v9588_v16 = vcombine.high %v4401_v28, %v4405_v55  ;;  %v9587_v32 = vcombine.low %v4401_v28, %v4405_v55  ;;  %v4389_v12 = vld [vmem:[#allocation8 + $0xd78] sm:$0xff] }
 0x442   :  { %7625 = vmatprep.subr.bf16.mxu1 %v9380_v4  ;;  %v9824_v4 = vld [vmem:[%s10666_s5 + $0x60] sm:$0xff]   ;;  %v9828_v20 = vld [vmem:[%s10666_s5 + $0x50] sm:$0xff]  }
 0x443   :  { %v4381_v26 = vld [vmem:[#allocation8 + $0xd38] sm:$0xff] }
 0x444   :  { %7673 = vmatpush2.bf16.msra.mxu0 %v9483_v10  ;;  %v9580_v10 = vcombine.high %v4393_v1, %v4397_v3  ;;  %v4369_v8 = vld [vmem:[#allocation8 + $0xcd8] sm:$0xff] }
 0x445   :  { %7626 = vmatpush2.bf16.msra.mxu1 %v9379_v2  ;;  %7674 = vmatprep.subr.bf16.mxu0 %v9476_v22  ;;  %v9826_v2 = vld [vmem:[%s10666_s5 + $0x58] sm:$0xff]   ;;  %v4385_v22 = vld [vmem:[#allocation8 + $0xd58] sm:$0xff] }
 0x446   :  { %7627 = vmatprep.subr.bf16.mxu1 %v9372_v58  ;;  %v9571_v53 = vcombine.low %v4385_v22, %v4389_v12  ;;  %v4373_v43 = vld [vmem:[#allocation8 + $0xcf8] sm:$0xff] }
 0x448   :  { %7675 = vmatpush2.bf16.msra.mxu0 %v9475_v50  ;;  %v9885_v50 = vpop.eup %9884 }
 0x449   :  { %7628 = vmatpush2.bf16.msra.mxu1 %v9371_v33  ;;  %7676 = vmatprep.subr.bf16.mxu0 %v9468_v24 }
 0x44a   :  { %7629 = vmatprep.subr.bf16.mxu1 %v9364_v15 }
 0x44c   :  { %7677 = vmatpush2.bf16.msra.mxu0 %v9467_v38  ;;  %v9830_v38 = vld [vmem:[%s10666_s5 + $0x48] sm:$0xff]  }
 0x44d   :  { %7630 = vmatpush2.bf16.msra.mxu1 %v9363_v51  ;;  %9718 = vmatprep.subr.bf16.mxu0 %v9818_v61 }
 0x44e   :  { %7631 = vmatprep.subr.bf16.mxu1 %v9356_v59 }
 0x44f   :  { %v10420_v48 = vpop.f32.mrf.mxu0  ;;  %7679 = vmatmul.mubr.bf16.vlgmr.msra.gmra.mxu0 %v10300_v41  ;;  %v9340_v41 = vcombine.high %v4153_v36, %v4157_v29  ;;  %v9556_v36 = vcombine.high %v4369_v8, %v4373_v43  ;;  %v4361_v29 = vld [vmem:[#allocation8 + $0xc98] sm:$0xff] }
 0x450   :  { %9719 = vmatpush3.bf16.msra.mxu0 %v9819_v21  ;;  %8481 = vmatprep.mubr.bf16.mxu0 %v7923_v37 }
 0x451   :  { %7632 = vmatpush2.bf16.msra.mxu1 %v9355_v35  ;;  %v10426_v47 = vpop.f32.mrf.mxu0  ;;  %9720 = vmatprep.subr.bf16.mxu0 %v9820_v45  ;;  %v9831_v35 = vld [vmem:[%s10666_s5 + $0x8] sm:$0xff]  }
 0x452   :  { %7633 = vmatprep.subr.bf16.mxu1 %v9348_v40 }
 0x453   :  { %v7438_v60 = vpop.f32.mrf.mxu0 }
 0x454   :  { %9721 = vmatpush3.bf16.msra.mxu0 %v9821_v23  ;;  %v4365_v23 = vld [vmem:[#allocation8 + $0xcb8] sm:$0xff]  ;;  %v9555_v60 = vcombine.low %v4369_v8, %v4373_v43 }
 0x455   :  { %7634 = vmatpush2.bf16.msra.mxu1 %v9347_v42  ;;  %v7439_v56 = vpop.f32.mrf.mxu0  ;;  %9722 = vmatprep.subr.bf16.mxu0 %v9822_v49  ;;  %v9548_v55 = vcombine.high %v4361_v29, %v4365_v23  ;;  %v9547_v1 = vcombine.low %v4361_v29, %v4365_v23  ;;  %v9854_v23 = vld [vmem:[%s10666_s5 + $0x168] sm:$0xff]  }
 0x456   :  { %7635 = vmatprep.subr.bf16.mxu1 %v9340_v41  ;;  %v9833_v41 = vld [vmem:[%s10666_s5] sm:$0xff]   ;;  %v4353_v56 = vld [vmem:[#allocation8 + $0xc58] sm:$0xff] }
 0x458   :  { %9723 = vmatpush3.bf16.msra.mxu0 %v9823_v11 }
 0x459   :  { %7636 = vmatpush2.bf16.msra.mxu1 %v9339_v54  ;;  %9724 = vmatprep.subr.bf16.mxu0 %v9824_v4  ;;  %v4357_v54 = vld [vmem:[#allocation8 + $0xc78] sm:$0xff] }
 0x45a   :  { %7687 = vmatprep.subr.bf16.mxu1 %v9588_v16 }
 0x45c   :  { %v7393_v58 = vpop.f32.mrf.mxu1  ;;  %7638 = vmatmul.mubr.bf16.vlgmr.msra.gmra.mxu1 %v10277_v63  ;;  %9725 = vmatpush3.bf16.msra.mxu0 %v9825_v9  ;;  %v9572_v63 = vcombine.high %v4385_v22, %v4389_v12 }
 0x45d   :  { %v10448_v17 = vadd.f32 %v7393_v58, %v10399_v5  ;;  %7688 = vmatpush1.bf16.msra.mxu1 %v9587_v32  ;;  %7719 = vmatprep.mubr.bf16.mxu1 %v10324_v25  ;;  %v4377_v5 = vld [vmem:[#allocation8 + $0xd18] sm:$0xff]  ;;  %v9540_v32 = vcombine.high %v4353_v56, %v4357_v54  ;;  %v9539_v58 = vcombine.low %v4353_v56, %v4357_v54  ;;  %v9856_v56 = vld [vmem:[%s10666_s5 + $0x160] sm:$0xff]  }
 0x45e   :  { %v7395_v6 = vpop.f32.mrf.mxu1  ;;  %7689 = vmatprep.subr.bf16.mxu1 %v9580_v10  ;;  %9726 = vmatprep.subr.bf16.mxu0 %v9826_v2  ;;  %v9829_v25 = vld [vmem:[%s10666_s5 + $0x10] sm:$0xff]   ;;  %v9564_v59 = vcombine.high %v4377_v5, %v4381_v26  ;;  %v9563_v45 = vcombine.low %v4377_v5, %v4381_v26 }
 0x45f   :  { %v7743_v33 = vsel %vm7728_vm8, %v10448_v17, 0.0  ;;  %v7396_v24 = vadd.f32 %v7395_v6, %v10402_v18  ;;  %v7890_v18 = vmul.f32 %v9885_v50, %v10405_v52  ;;  %v9832_v52 = vld [vmem:[%s10666_s5 + $0x40] sm:$0xff]   ;;  %v4345_v10 = vld [vmem:[#allocation8 + $0xc18] sm:$0xff] }
 0x460   :  { %v7744_v15 = vrot.slane %v7743_v33, 4  ;;  %v7397_v30 = vpop.f32.mrf.mxu1  ;;  %9727 = vmatpush3.bf16.msra.mxu0 %v9827_v13  ;;  %v4349_v2 = vld [vmem:[#allocation8 + $0xc38] sm:$0xff] }
 0x461   :  { %v7750_v27 = vsel %vm7728_vm8, %v7396_v24, 0.0  ;;  %7690 = vmatpush1.bf16.msra.mxu1 %v9579_v19  ;;  %9728 = vmatprep.subr.bf16.mxu0 %v9828_v20  ;;  %v7906_v34 = vmul.f32 0.2, %v7890_v18  ;;  %vm7898_vm10 = vcmp.gt.f32.partialorder %v7890_v18, 0.0  ;;  %v9532_v19 = vcombine.high %v4345_v10, %v4349_v2  ;;  %v4465_v20 = vld [vmem:[#allocation8 + $0xfd8] sm:$0xff] }
 0x462   :  { %v7745_v51 = vadd.f32 %v7744_v15, %v7743_v33  ;;  %v7751_v61 = vrot.slane %v7750_v27, 4  ;;  %v7398_v31 = vpop.f32.mrf.mxu1  ;;  %7691 = vmatprep.subr.bf16.mxu1 %v9572_v63  ;;  %v4469_v6 = vld [vmem:[#allocation8 + $0xff8] sm:$0xff]  ;;  %v9531_v5 = vcombine.low %v4345_v10, %v4349_v2 }
 0x463   :  { %v7914_v11 = vsel %vm7898_vm10, %v7890_v18, %v7906_v34  ;;  %v4457_v15 = vld [vmem:[#allocation8 + $0xf98] sm:$0xff]  ;;  %v9851_v31 = vld [vmem:[%s10666_s5 + $0x138] sm:$0xff]  }
 0x464   :  { %v7746_v62 = vrot.slane %v7745_v51, 2  ;;  %v7752_v21 = vadd.f32 %v7751_v61, %v7750_v27  ;;  %9729 = vmatpush3.bf16.msra.mxu0 %v9829_v25  ;;  %v7922_v3 = vpack.c.bf16 %v7914_v11, %v7914_v11  ;;  %v4461_v30 = vld [vmem:[#allocation8 + $0xfb8] sm:$0xff] }
 0x465   :  { %7692 = vmatpush1.bf16.msra.mxu1 %v9571_v53  ;;  %9730 = vmatprep.subr.bf16.mxu0 %v9830_v38  ;;  %v9651_v53 = vcombine.low %v4465_v20, %v4469_v6  ;;  %v9644_v38 = vcombine.high %v4457_v15, %v4461_v30  ;;  %v4453_v61 = vld [vmem:[#allocation8 + $0xf78] sm:$0xff]  ;;  %v9643_v43 = vcombine.low %v4457_v15, %v4461_v30 }
 0x466   :  { %v7747_v37 = vadd.f32 %v7746_v62, %v7745_v51  ;;  %v7753_v40 = vrot.slane %v7752_v21, 2  ;;  %7693 = vmatprep.subr.bf16.mxu1 %v9564_v59  ;;  %v4449_v51 = vld [vmem:[#allocation8 + $0xf58] sm:$0xff] }
 0x467   :  { %v9636_v62 = vcombine.high %v4449_v51, %v4453_v61  ;;  %v4445_v34 = vld [vmem:[#allocation8 + $0xf38] sm:$0xff] }
 0x468   :  { %v7748_v42 = vrot.slane %v7747_v37, 1  ;;  %v7754_v49 = vadd.f32 %v7753_v40, %v7752_v21  ;;  %9731 = vmatpush3.bf16.msra.mxu0 %v9831_v35  ;;  %v9852_v21 = vld [vmem:[%s10666_s5 + $0x170] sm:$0xff]  }
 0x469   :  { %7694 = vmatpush1.bf16.msra.mxu1 %v9563_v45  ;;  %9732 = vmatprep.subr.bf16.mxu0 %v9832_v52  ;;  %v4441_v52 = vld [vmem:[#allocation8 + $0xf18] sm:$0xff] }
 0x46a   :  { %v7755_v28 = vrot.slane %v7754_v49, 1  ;;  %7695 = vmatprep.subr.bf16.mxu1 %v9556_v36  ;;  %v7749_v4 = vadd.f32 %v7748_v42, %v7747_v37  ;;  %v9853_v37 = vld [vmem:[%s10666_s5 + $0x130] sm:$0xff]   ;;  %v9635_v36 = vcombine.low %v4449_v51, %v4453_v61  ;;  %v9628_v29 = vcombine.high %v4441_v52, %v4445_v34 }
 0x46b   :  { %v4417_v2 = vld [vmem:[#allocation8 + $0xe58] sm:$0xff] }
 0x46c   :  { %v7756_v16 = vadd.f32 %v7755_v28, %v7754_v49  ;;  %9733 = vmatpush3.bf16.msra.mxu0 %v9833_v41  ;;  %v7788_v22 = vmul.f32 0.5, %v7749_v4  ;;  %v4433_v41 = vld [vmem:[#allocation8 + $0xed8] sm:$0xff]  ;;  %v9855_v28 = vld [vmem:[%s10666_s5 + $0x128] sm:$0xff]  }
 0x46d   :  { %7696 = vmatpush1.bf16.msra.mxu1 %v9555_v60  ;;  %v4437_v60 = vld [vmem:[#allocation8 + $0xef8] sm:$0xff] }
 0x46e   :  { %v7789_v9 = vmul.f32 0.5, %v7756_v16  ;;  %7697 = vmatprep.subr.bf16.mxu1 %v9548_v55  ;;  %v10479_v63 = vsub.f32 %v10448_v17, %v7788_v22  ;;  %v9850_v17 = vld [vmem:[%s10666_s5 + $0x178] sm:$0xff]   ;;  %v9627_v55 = vcombine.low %v4441_v52, %v4445_v34  ;;  %v9620_v11 = vcombine.high %v4433_v41, %v4437_v60  ;;  %v4425_v4 = vld [vmem:[#allocation8 + $0xe98] sm:$0xff] }
 0x46f   :  { %8482 = vmatmul.mubr.bf16.vlgmr.msra.gmra.mxu0 %v7922_v3  ;;  %9762 = vmatprep.subr.bf16.mxu0 %v9850_v17  ;;  %v4429_v16 = vld [vmem:[#allocation8 + $0xeb8] sm:$0xff]  ;;  %v9619_v3 = vcombine.low %v4433_v41, %v4437_v60  ;;  %v9840_v60 = vld [vmem:[%s10666_s5 + $0xe0] sm:$0xff]  }
 0x470   :  { %v10474_v12 = vsub.f32 %v7396_v24, %v7789_v9  ;;  %v9652_v24 = vcombine.high %v4465_v20, %v4469_v6  ;;  %v7804_v25 = vmul.f32 %v10479_v63, %v10479_v63  ;;  %9763 = vmatpush3.bf16.msra.mxu0 %v9851_v31  ;;  %v9612_v9 = vcombine.high %v4425_v4, %v4429_v16  ;;  %v4421_v22 = vld [vmem:[#allocation8 + $0xe78] sm:$0xff] }
 0x471   :  { %7698 = vmatpush1.bf16.msra.mxu1 %v9547_v1  ;;  %9764 = vmatprep.subr.bf16.mxu0 %v9852_v21  ;;  %v9857_v1 = vld [vmem:[%s10666_s5 + $0x120] sm:$0xff]   ;;  %v9860_v20 = vld [vmem:[%s10666_s5 + $0x150] sm:$0xff]   ;;  %v9603_v15 = vcombine.low %v4417_v2, %v4421_v22 }
 0x472   :  { %v7805_v13 = vmul.f32 %v10474_v12, %v10474_v12  ;;  %7699 = vmatprep.subr.bf16.mxu1 %v9540_v32  ;;  %v7824_v59 = vsel %vm7728_vm8, %v7804_v25, 0.0  ;;  %v9858_v32 = vld [vmem:[%s10666_s5 + $0x158] sm:$0xff]   ;;  %v9836_v52 = vld [vmem:[%s10666_s5 + $0xf0] sm:$0xff]  }
 0x473   :  { %v7825_v35 = vrot.slane %v7824_v59, 4 }
 0x474   :  { %v7831_v50 = vsel %vm7728_vm8, %v7805_v13, 0.0  ;;  %9765 = vmatpush3.bf16.msra.mxu0 %v9853_v37  ;;  %v9611_v13 = vcombine.low %v4425_v4, %v4429_v16  ;;  %v9845_v4 = vld [vmem:[%s10666_s5 + $0x90] sm:$0xff]   ;;  %v9846_v16 = vld [vmem:[%s10666_s5 + $0xc8] sm:$0xff]  }
 0x475   :  { %v7832_v33 = vrot.slane %v7831_v50, 4  ;;  %7700 = vmatpush1.bf16.msra.mxu1 %v9539_v58  ;;  %v7826_v42 = vadd.f32 %v7825_v35, %v7824_v59  ;;  %9766 = vmatprep.subr.bf16.mxu0 %v9854_v23  ;;  %v9859_v58 = vld [vmem:[%s10666_s5 + $0x118] sm:$0xff]   ;;  %v9864_v59 = vld [vmem:[%s10666_s5 + $0x140] sm:$0xff]   ;;  %v4495_v35 = vrot.slane %v10386_v46, %v692_v14 }
 0x476   :  { %7701 = vmatprep.subr.bf16.mxu1 %v9532_v19  ;;  %v9604_v19 = vcombine.high %v4417_v2, %v4421_v22 }
 0x477   :  { %v7833_v26 = vadd.f32 %v7832_v33, %v7831_v50  ;;  %v7827_v54 = vrot.slane %v7826_v42, 2  ;;  %v4409_v33 = vld [vmem:[#allocation8 + $0xe18] sm:$0xff]  ;;  %v7437_v14 = vadd.f32 %v10426_v47, %v4495_v35 }
 0x478   :  { %9767 = vmatpush3.bf16.msra.mxu0 %v9855_v28  ;;  %v9841_v28 = vld [vmem:[%s10666_s5 + $0xa0] sm:$0xff]  }
 0x479   :  { %v7834_v27 = vrot.slane %v7833_v26, 2  ;;  %7702 = vmatpush1.bf16.msra.mxu1 %v9531_v5  ;;  %9768 = vmatprep.subr.bf16.mxu0 %v9856_v56  ;;  %v7828_v10 = vadd.f32 %v7827_v54, %v7826_v42  ;;  %v4413_v5 = vld [vmem:[#allocation8 + $0xe38] sm:$0xff] }
 0x47a   :  { %7703 = vmatprep.subr.bf16.mxu1 %v9652_v24  ;;  %v9861_v24 = vld [vmem:[%s10666_s5 + $0x110] sm:$0xff]   ;;  %v9596_v25 = vcombine.high %v4409_v33, %v4413_v5  ;;  %v9595_v61 = vcombine.low %v4409_v33, %v4413_v5 }
 0x47b   :  { %v7835_v18 = vadd.f32 %v7834_v27, %v7833_v26  ;;  %v7829_v6 = vrot.slane %v7828_v10, 1  ;;  %v9862_v27 = vld [vmem:[%s10666_s5 + $0x148] sm:$0xff]   ;;  %v9844_v56 = vld [vmem:[%s10666_s5 + $0xd0] sm:$0xff]  }
 0x47c   :  { %9769 = vmatpush3.bf16.msra.mxu0 %v9857_v1 }
 0x47d   :  { %v7836_v8 = vrot.slane %v7835_v18, 1  ;;  %7704 = vmatpush2.bf16.msra.mxu1 %v9651_v53  ;;  %9770 = vmatprep.subr.bf16.mxu0 %v9858_v32  ;;  %v7830_v53 = vadd.f32 %v7829_v6, %v7828_v10  ;;  %v9849_v10 = vld [vmem:[%s10666_s5 + $0x80] sm:$0xff]  }
 0x47e   :  { %7705 = vmatprep.subr.bf16.mxu1 %v9644_v38 }
 0x47f   :  { %v7837_v45 = vadd.f32 %v7836_v8, %v7835_v18  ;;  %v9863_v18 = vld [vmem:[%s10666_s5 + $0x108] sm:$0xff]   ;;  %v9834_v8 = vld [vmem:[%s10666_s5 + $0xf8] sm:$0xff]  }
 0x480   :  { %9771 = vmatpush3.bf16.msra.mxu0 %v9859_v58 }
 0x481   :  { %v7869_v40 = vmul.f32 0.5, %v7837_v45  ;;  %7706 = vmatpush2.bf16.msra.mxu1 %v9643_v43  ;;  %9772 = vmatprep.subr.bf16.mxu0 %v9860_v20  ;;  %v4491_v43 = vrot.slane %v10386_v46, %v688_v39  ;;  %v9835_v45 = vld [vmem:[%s10666_s5 + $0xb8] sm:$0xff]  }
 0x482   :  { %7707 = vmatprep.subr.bf16.mxu1 %v9636_v62  ;;  %v7868_v62 = vmul.f32 0.5, %v7830_v53 }
 0x483   :  { %v7877_v49 = vadd.f32 1e-05, %v7869_v40  ;;  %v7435_v39 = vadd.f32 %v10420_v48, %v4491_v43  ;;  %v9838_v48 = vld [vmem:[%s10666_s5 + $0xe8] sm:$0xff]  }
 0x484   :  { %9773 = vmatpush3.bf16.msra.mxu0 %v9861_v24  ;;  %v7876_v34 = vadd.f32 1e-05, %v7868_v62 }
 0x485   :  { %9886 = vrsqrt.f32 %v7877_v49  ;;  %7708 = vmatpush2.bf16.msra.mxu1 %v9635_v36  ;;  %9774 = vmatprep.subr.bf16.mxu0 %v9862_v27  ;;  %v9837_v36 = vld [vmem:[%s10666_s5 + $0xb0] sm:$0xff]  }
 0x486   :  { %7709 = vmatprep.subr.bf16.mxu1 %v9628_v29  ;;  %9888 = vrsqrt.f32 %v7876_v34 }
 0x488   :  { %9775 = vmatpush3.bf16.msra.mxu0 %v9863_v18 }
 0x489   :  { %7710 = vmatpush2.bf16.msra.mxu1 %v9627_v55  ;;  %9776 = vmatprep.subr.bf16.mxu0 %v9864_v59  ;;  %v9842_v55 = vld [vmem:[%s10666_s5 + $0xd8] sm:$0xff]  }
 0x48a   :  { %7711 = vmatprep.subr.bf16.mxu1 %v9620_v11  ;;  %v9843_v11 = vld [vmem:[%s10666_s5 + $0x98] sm:$0xff]  }
 0x48d   :  { %7712 = vmatpush2.bf16.msra.mxu1 %v9619_v3  ;;  %v9847_v3 = vld [vmem:[%s10666_s5 + $0x88] sm:$0xff]  }
 0x48e   :  { %7713 = vmatprep.subr.bf16.mxu1 %v9612_v9  ;;  %v9848_v9 = vld [vmem:[%s10666_s5 + $0xc0] sm:$0xff]  }
 0x48f   :  { %v7516_v50 = vpop.f32.mrf.mxu0 }
 0x491   :  { %7714 = vmatpush2.bf16.msra.mxu1 %v9611_v13  ;;  %v7518_v26 = vpop.f32.mrf.mxu0 }
 0x492   :  { %v9887_v30 = vpop.eup %9886  ;;  %7715 = vmatprep.subr.bf16.mxu1 %v9604_v19 }
 0x493   :  { %v7893_v38 = vmul.f32 %v9887_v30, %v10474_v12  ;;  %v7520_v17 = vpop.f32.mrf.mxu0  ;;  %v9865_v12 = vld [vmem:[%s10666_s5 + $0x100] sm:$0xff]   ;;  %v9889_v54 = vpop.eup %9888 }
 0x494   :  { %9777 = vmatpush3.bf16.msra.mxu0 %v9865_v12  ;;  %v7892_v1 = vmul.f32 %v9889_v54, %v10479_v63  ;;  %v9870_v54 = vld [vmem:[%s10666_s5 + $0x1e8] sm:$0xff]  }
 0x495   :  { %7716 = vmatpush2.bf16.msra.mxu1 %v9603_v15  ;;  %v7521_v51 = vpop.f32.mrf.mxu0  ;;  %vm7901_vm11 = vcmp.gt.f32.partialorder %v7893_v38, 0.0  ;;  %v7909_v31 = vmul.f32 0.2, %v7893_v38 }
 0x496   :  { %7717 = vmatprep.subr.bf16.mxu1 %v9596_v25  ;;  %v7908_v32 = vmul.f32 0.2, %v7892_v1  ;;  %vm7900_vm12 = vcmp.gt.f32.partialorder %v7892_v1, 0.0 }
 0x497   :  { %v7917_v21 = vsel %vm7901_vm11, %v7893_v38, %v7909_v31 }
 0x498   :  { %v7925_v37 = vpack.c.bf16 %v7917_v21, %v7917_v21  ;;  %v7916_v2 = vsel %vm7900_vm12, %v7892_v1, %v7908_v32  ;;  %v9872_v1 = vld [vmem:[%s10666_s5 + $0x1e0] sm:$0xff]   ;;  %v9875_v32 = vld [vmem:[%s10666_s5 + $0x198] sm:$0xff]  }
 0x499   :  { %7718 = vmatpush2.bf16.msra.mxu1 %v9595_v61  ;;  %v7924_v63 = vpack.c.bf16 %v7916_v2, %v7916_v2 }
 0x49a   :  { %9740 = vmatprep.subr.bf16.mxu1 %v9834_v8 }
 0x49c   :  { %v7475_v40 = vpop.f32.mrf.mxu1  ;;  %7720 = vmatmul.mubr.bf16.vlgmr.msra.gmra.mxu1 %v10326_v7  ;;  %v9839_v7 = vld [vmem:[%s10666_s5 + $0xa8] sm:$0xff]  }
 0x49d   :  { %v7476_v46 = vadd.f32 %v7475_v40, %v7435_v39  ;;  %9741 = vmatpush3.bf16.msra.mxu1 %v9835_v45  ;;  %8521 = vmatprep.mubr.bf16.mxu1 %v7925_v37 }
 0x49e   :  { %v7477_v29 = vpop.f32.mrf.mxu1  ;;  %9742 = vmatprep.subr.bf16.mxu1 %v9836_v52 }
 0x49f   :  { %v7478_v23 = vadd.f32 %v7477_v29, %v7437_v14  ;;  %v7517_v42 = vadd.f32 %v7516_v50, %v7476_v46 }
 0x4a0   :  { %v7479_v49 = vpop.f32.mrf.mxu1 }
 0x4a1   :  { %9743 = vmatpush3.bf16.msra.mxu1 %v9837_v36  ;;  %v7519_v47 = vadd.f32 %v7518_v26, %v7478_v23  ;;  %v9867_v49 = vld [vmem:[%s10666_s5 + $0x1b8] sm:$0xff]  }
 0x4a2   :  { %v7480_v41 = vpop.f32.mrf.mxu1  ;;  %9744 = vmatprep.subr.bf16.mxu1 %v9838_v48  ;;  %v9866_v48 = vld [vmem:[%s10666_s5 + $0x1f8] sm:$0xff]  }
 0x4a3   :  { %v9868_v41 = vld [vmem:[%s10666_s5 + $0x1f0] sm:$0xff]  }
 0x4a5   :  { %9745 = vmatpush3.bf16.msra.mxu1 %v9839_v7 }
 0x4a6   :  { %9746 = vmatprep.subr.bf16.mxu1 %v9840_v60 }
 0x4a9   :  { %9747 = vmatpush3.bf16.msra.mxu1 %v9841_v28 }
 0x4aa   :  { %9748 = vmatprep.subr.bf16.mxu1 %v9842_v55  ;;  %v9869_v55 = vld [vmem:[%s10666_s5 + $0x1b0] sm:$0xff]  }
 0x4ad   :  { %9749 = vmatpush3.bf16.msra.mxu1 %v9843_v11 }
 0x4ae   :  { %9750 = vmatprep.subr.bf16.mxu1 %v9844_v56 }
 0x4b1   :  { %9751 = vmatpush3.bf16.msra.mxu1 %v9845_v4 }
 0x4b2   :  { %9752 = vmatprep.subr.bf16.mxu1 %v9846_v16  ;;  %v9871_v16 = vld [vmem:[%s10666_s5 + $0x1a8] sm:$0xff]  }
 0x4b5   :  { %9753 = vmatpush3.bf16.msra.mxu1 %v9847_v3  ;;  %v9873_v3 = vld [vmem:[%s10666_s5 + $0x1a0] sm:$0xff]  }
 0x4b6   :  { %9754 = vmatprep.subr.bf16.mxu1 %v9848_v9  ;;  %v9874_v9 = vld [vmem:[%s10666_s5 + $0x1d8] sm:$0xff]  }
 0x4b9   :  { %9755 = vmatpush3.bf16.msra.mxu1 %v9849_v10  ;;  %v9876_v10 = vld [vmem:[%s10666_s5 + $0x1d0] sm:$0xff]  }
 0x4ba   :  { %9784 = vmatprep.subr.bf16.mxu1 %v9866_v48 }
 0x4bc   :  { %8522 = vmatmul.mubr.bf16.vlgmr.msra.gmra.mxu1 %v7924_v63  ;;  %v9877_v63 = vld [vmem:[%s10666_s5 + $0x190] sm:$0xff]  }
 0x4bd   :  { %9785 = vmatpush3.bf16.msra.mxu1 %v9867_v49 }
 0x4be   :  { %9786 = vmatprep.subr.bf16.mxu1 %v9868_v41 }
 0x4c1   :  { %9787 = vmatpush3.bf16.msra.mxu1 %v9869_v55 }
 0x4c2   :  { %9788 = vmatprep.subr.bf16.mxu1 %v9870_v54 }
 0x4c5   :  { %9789 = vmatpush3.bf16.msra.mxu1 %v9871_v16 }
 0x4c6   :  { %9790 = vmatprep.subr.bf16.mxu1 %v9872_v1 }
 0x4c9   :  { %9791 = vmatpush3.bf16.msra.mxu1 %v9873_v3 }
 0x4ca   :  { %9792 = vmatprep.subr.bf16.mxu1 %v9874_v9 }
 0x4cd   :  { %9793 = vmatpush3.bf16.msra.mxu1 %v9875_v32 }
 0x4ce   :  { %9794 = vmatprep.subr.bf16.mxu1 %v9876_v10 }
 0x4cf   :  { %v10592_v22 = vpop.f32.mrf.mxu0 }
 0x4d1   :  { %v10594_v58 = vpop.f32.mrf.mxu0  ;;  %9795 = vmatpush3.bf16.msra.mxu1 %v9877_v63 }
 0x4d3   :  { %v7602_v13 = vpop.f32.mrf.mxu0 }
 0x4d5   :  { %v7603_v19 = vpop.f32.mrf.mxu0 }
 0x4dc   :  { %v7557_v20 = vpop.f32.mrf.mxu1 }
 0x4dd   :  { %v7558_v6 = vadd.f32 %v7557_v20, %v7517_v42 }
 0x4de   :  { %v7559_v50 = vpop.f32.mrf.mxu1 }
 0x4df   :  { %v7757_v33 = vsel %vm7728_vm8, %v7558_v6, 0.0  ;;  %v7560_v5 = vadd.f32 %v7559_v50, %v7519_v47  ;;  %v9878_v50 = vld [vmem:[%s10666_s5 + $0x1c8] sm:$0xff]  }
 0x4e0   :  { %v7758_v24 = vrot.slane %v7757_v33, 4  ;;  %v7561_v26 = vpop.f32.mrf.mxu1  ;;  %9796 = vmatprep.subr.bf16.mxu1 %v9878_v50 }
 0x4e1   :  { %v7764_v15 = vsel %vm7728_vm8, %v7560_v5, 0.0  ;;  %v9879_v26 = vld [vmem:[%s10666_s5 + $0x188] sm:$0xff]  }
 0x4e2   :  { %v7759_v30 = vadd.f32 %v7758_v24, %v7757_v33  ;;  %v7765_v25 = vrot.slane %v7764_v15, 4  ;;  %v7562_v27 = vpop.f32.mrf.mxu1  ;;  %9797 = vmatpush3.bf16.msra.mxu1 %v9879_v26  ;;  %v9653_v26 = vld [vmem:[#allocation11] ss:$0 sm:$0xff] }
 0x4e3   :  { %v9881_v27 = vld [vmem:[%s10666_s5 + $0x180] sm:$0xff]  }
 0x4e4   :  { %v7760_v53 = vrot.slane %v7759_v30, 2  ;;  %v7766_v38 = vadd.f32 %v7765_v25, %v7764_v15  ;;  %v9880_v15 = vld [vmem:[%s10666_s5 + $0x1c0] sm:$0xff]   ;;  %s10061_s5 = smov [#allocation13]  }
 0x4e5   :  { %9798 = vmatprep.subr.bf16.mxu1 %v9880_v15  ;;  %s8617_s16 = sshll.u32 %s10061_s5, 4  ;;  %s8618_s16 = int_to_ptr.vmem [resolvable:$true] %s8617_s16 }
 0x4e6   :  { %v7761_v17 = vadd.f32 %v7760_v53, %v7759_v30  ;;  %v7767_v18 = vrot.slane %v7766_v38, 2  ;;  %9799 = vmatpush3.bf16.msra.mxu1 %v9881_v27  ;;  %s10022_s17 = scalar_lea.vmem %s8618_s16, 32  ;;  %p10027_p3 = scmp.lt.s32.totalorder %s8618_s16, %s8618_s16 }
 0x4e7   :  { %p10023_p2 = scmp.ne.s32.totalorder %s8618_s16, %s10022_s17  ;;  %p10028_p4 = scmp.lt.s32.totalorder %s10022_s17, %s10022_s17 }
 0x4e8   :  { %v7762_v51 = vrot.slane %v7761_v17, 1  ;;  %v7768_v61 = vadd.f32 %v7767_v18, %v7766_v38  ;;  %v9901_v38 = vld [vmem:[#allocation10] sm:$0xff] }
 0x4e9   :  { %p10029_p5 = por %p10028_p4, %p10027_p3 }
 0x4ea   :  { %v7763_v31 = vadd.f32 %v7762_v51, %v7761_v17  ;;  %v7769_v59 = vrot.slane %v7768_v61, 1  ;;  %v4499_v17 = vrot.slane %v9901_v38, %v696_v0 }
 0x4eb   :  { %p10030_p6 = pnand %p10029_p5, %p10023_p2 }
 0x4ec   :  { %v7790_v12 = vmul.f32 0.5, %v7763_v31  ;;  %v7770_v8 = vadd.f32 %v7769_v59, %v7768_v61  ;;  %v4503_v61 = vrot.slane %v9901_v38, %v700_v57  ;;  %v7599_v59 = vadd.f32 %v10592_v22, %v4499_v17 }
 0x4ee   :  { %v7798_v43 = vsub.f32 %v7558_v6, %v7790_v12  ;;  %v7791_v62 = vmul.f32 0.5, %v7770_v8  ;;  %v7601_v8 = vadd.f32 %v10594_v58, %v4503_v61 }
 0x4f0   :  { %v7806_v21 = vmul.f32 %v7798_v43, %v7798_v43  ;;  %v7799_v35 = vsub.f32 %v7560_v5, %v7791_v62 }
 0x4f2   :  { %v7838_v45 = vsel %vm7728_vm8, %v7806_v21, 0.0  ;;  %v7807_v52 = vmul.f32 %v7799_v35, %v7799_v35 }
 0x4f3   :  { %v7839_v39 = vrot.slane %v7838_v45, 4 }
 0x4f4   :  { %v7845_v34 = vsel %vm7728_vm8, %v7807_v52, 0.0 }
 0x4f5   :  { %v7840_v37 = vadd.f32 %v7839_v39, %v7838_v45  ;;  %v7846_v40 = vrot.slane %v7845_v34, 4 }
 0x4f7   :  { %v7841_v14 = vrot.slane %v7840_v37, 2  ;;  %v7847_v46 = vadd.f32 %v7846_v40, %v7845_v34 }
 0x4f9   :  { %v7842_v36 = vadd.f32 %v7841_v14, %v7840_v37  ;;  %v7848_v29 = vrot.slane %v7847_v46, 2 }
 0x4fb   :  { %v7843_v23 = vrot.slane %v7842_v36, 1  ;;  %v7849_v42 = vadd.f32 %v7848_v29, %v7847_v46 }
 0x4fd   :  { %v7844_v7 = vadd.f32 %v7843_v23, %v7842_v36  ;;  %v7850_v47 = vrot.slane %v7849_v42, 1 }
 0x4ff   :  { %v7870_v60 = vmul.f32 0.5, %v7844_v7  ;;  %v7851_v28 = vadd.f32 %v7850_v47, %v7849_v42 }
 0x501   :  { %v7878_v11 = vadd.f32 1e-05, %v7870_v60  ;;  %v7871_v56 = vmul.f32 0.5, %v7851_v28 }
 0x503   :  { %9890 = vrsqrt.f32 %v7878_v11  ;;  %v7879_v4 = vadd.f32 1e-05, %v7871_v56 }
 0x505   :  { %9892 = vrsqrt.f32 %v7879_v4 }
 0x50f   :  { %v7680_v2 = vpop.f32.mrf.mxu0 }
 0x510   :  { %v9891_v13 = vpop.eup %9890 }
 0x511   :  { %v7894_v19 = vmul.f32 %v9891_v13, %v7798_v43  ;;  %v7682_v20 = vpop.f32.mrf.mxu0 }
 0x512   :  { %v9893_v6 = vpop.eup %9892 }
 0x513   :  { %vm7902_vm13 = vcmp.gt.f32.partialorder %v7894_v19, 0.0  ;;  %v7910_v33 = vmul.f32 0.2, %v7894_v19  ;;  %v7895_v5 = vmul.f32 %v9893_v6, %v7799_v35  ;;  %v7684_v24 = vpop.f32.mrf.mxu0 }
 0x515   :  { %v7685_v30 = vpop.f32.mrf.mxu0  ;;  %vm7903_vm14 = vcmp.gt.f32.partialorder %v7895_v5, 0.0  ;;  %v7911_v25 = vmul.f32 0.2, %v7895_v5  ;;  %v7918_v53 = vsel %vm7902_vm13, %v7894_v19, %v7910_v33 }
 0x516   :  { %v7926_v31 = vpack.c.bf16 %v7918_v53, %v7918_v53 }
 0x517   :  { %v7919_v18 = vsel %vm7903_vm14, %v7895_v5, %v7911_v25 }
 0x518   :  { %v7927_v51 = vpack.c.bf16 %v7919_v18, %v7919_v18 }
 0x51a   :  { %8561 = vmatprep.mubr.bf16.mxu0 %v7927_v51 }
 0x51b   :  { %8562 = vmatmul.mubr.bf16.vlgmr.msra.gmra.mxu0 %v7926_v31 }
 0x51c   :  { %v7639_v12 = vpop.f32.mrf.mxu1 }
 0x51d   :  { %v7640_v43 = vadd.f32 %v7639_v12, %v7599_v59 }
 0x51e   :  { %v7641_v62 = vpop.f32.mrf.mxu1 }
 0x51f   :  { %v7642_v21 = vadd.f32 %v7641_v62, %v7601_v8  ;;  %v7681_v35 = vadd.f32 %v7680_v2, %v7640_v43 }
 0x520   :  { %v7643_v45 = vpop.f32.mrf.mxu1 }
 0x521   :  { %v7683_v0 = vadd.f32 %v7682_v20, %v7642_v21 }
 0x522   :  { %v7644_v52 = vpop.f32.mrf.mxu1 }
 0x52f   :  { %v9734_v39 = vpop.f32.mrf.mxu0 }
 0x531   :  { %v9735_v34 = vpop.f32.mrf.mxu0 }
 0x532   :  { %v9736_v44 = vadd.f32 %v9735_v34, %v9734_v39 }
 0x533   :  { %v9737_v57 = vpop.f32.mrf.mxu0 }
 0x534   :  { %v8484_v53 = vadd.f32 %v9736_v44, %v9653_v26 }
 0x535   :  { %v9738_v37 = vpop.f32.mrf.mxu0 }
 0x55c   :  { %v7721_v40 = vpop.f32.mrf.mxu1 }
 0x55d   :  { %v7722_v14 = vadd.f32 %v7721_v40, %v7681_v35 }
 0x55e   :  { %v7723_v46 = vpop.f32.mrf.mxu1 }
 0x55f   :  { %v7771_v22 = vsel %vm7728_vm8, %v7722_v14, 0.0  ;;  %v7724_v36 = vadd.f32 %v7723_v46, %v7683_v0 }
 0x560   :  { %v7772_v29 = vrot.slane %v7771_v22, 4  ;;  %v7725_v58 = vpop.f32.mrf.mxu1 }
 0x561   :  { %v7778_v48 = vsel %vm7728_vm8, %v7724_v36, 0.0 }
 0x562   :  { %v7773_v23 = vadd.f32 %v7772_v29, %v7771_v22  ;;  %v7779_v42 = vrot.slane %v7778_v48, 4  ;;  %v7726_v49 = vpop.f32.mrf.mxu1 }
 0x564   :  { %v7774_v7 = vrot.slane %v7773_v23, 2  ;;  %v7780_v47 = vadd.f32 %v7779_v42, %v7778_v48 }
 0x566   :  { %v7775_v41 = vadd.f32 %v7774_v7, %v7773_v23  ;;  %v7781_v60 = vrot.slane %v7780_v47, 2 }
 0x568   :  { %v7776_v28 = vrot.slane %v7775_v41, 1  ;;  %v7782_v55 = vadd.f32 %v7781_v60, %v7780_v47 }
 0x56a   :  { %v7777_v11 = vadd.f32 %v7776_v28, %v7775_v41  ;;  %v7783_v56 = vrot.slane %v7782_v55, 1 }
 0x56c   :  { %v7792_v54 = vmul.f32 0.5, %v7777_v11  ;;  %v7784_v4 = vadd.f32 %v7783_v56, %v7782_v55 }
 0x56e   :  { %v7800_v16 = vsub.f32 %v7722_v14, %v7792_v54  ;;  %v7793_v1 = vmul.f32 0.5, %v7784_v4 }
 0x570   :  { %v7808_v3 = vmul.f32 %v7800_v16, %v7800_v16  ;;  %v7801_v9 = vsub.f32 %v7724_v36, %v7793_v1 }
 0x572   :  { %v7852_v32 = vsel %vm7728_vm8, %v7808_v3, 0.0  ;;  %v7809_v10 = vmul.f32 %v7801_v9, %v7801_v9 }
 0x573   :  { %v7853_v2 = vrot.slane %v7852_v32, 4 }
 0x574   :  { %v7859_v63 = vsel %vm7728_vm8, %v7809_v10, 0.0 }
 0x575   :  { %v7854_v13 = vadd.f32 %v7853_v2, %v7852_v32  ;;  %v7860_v19 = vrot.slane %v7859_v63, 4 }
 0x577   :  { %v7855_v20 = vrot.slane %v7854_v13, 2  ;;  %v7861_v6 = vadd.f32 %v7860_v19, %v7859_v63 }
 0x579   :  { %v7856_v50 = vadd.f32 %v7855_v20, %v7854_v13  ;;  %v7862_v33 = vrot.slane %v7861_v6, 2 }
 0x57b   :  { %v7857_v5 = vrot.slane %v7856_v50, 1  ;;  %v7863_v24 = vadd.f32 %v7862_v33, %v7861_v6 }
 0x57c   :  { %v9756_v15 = vpop.f32.mrf.mxu1 }
 0x57d   :  { %v7858_v30 = vadd.f32 %v7857_v5, %v7856_v50  ;;  %v7864_v25 = vrot.slane %v7863_v24, 1 }
 0x57e   :  { %v9757_v27 = vpop.f32.mrf.mxu1 }
 0x57f   :  { %v7872_v38 = vmul.f32 0.5, %v7858_v30  ;;  %v7865_v17 = vadd.f32 %v7864_v25, %v7863_v24  ;;  %v9758_v18 = vadd.f32 %v9757_v27, %v9756_v15 }
 0x580   :  { %v9759_v51 = vpop.f32.mrf.mxu1 }
 0x581   :  { %v7880_v61 = vadd.f32 1e-05, %v7872_v38  ;;  %v7873_v31 = vmul.f32 0.5, %v7865_v17  ;;  %v8524_v59 = vadd.f32 %v9758_v18, %v8484_v53 }
 0x582   :  { %v9760_v12 = vpop.f32.mrf.mxu1 }
 0x583   :  { %9894 = vrsqrt.f32 %v7880_v61  ;;  %v7881_v8 = vadd.f32 1e-05, %v7873_v31 }
 0x585   :  { %9896 = vrsqrt.f32 %v7881_v8 }
 0x590   :  { %v9895_v43 = vpop.eup %9894 }
 0x591   :  { %v7896_v62 = vmul.f32 %v9895_v43, %v7800_v16 }
 0x592   :  { %v9897_v21 = vpop.eup %9896 }
 0x593   :  { %vm7904_vm15 = vcmp.gt.f32.partialorder %v7896_v62, 0.0  ;;  %v7912_v35 = vmul.f32 0.2, %v7896_v62  ;;  %v7897_v45 = vmul.f32 %v9897_v21, %v7801_v9 }
 0x595   :  { %vm7905_vm0 = vcmp.gt.f32.partialorder %v7897_v45, 0.0  ;;  %v7913_v0 = vmul.f32 0.2, %v7897_v45  ;;  %v7920_v52 = vsel %vm7904_vm15, %v7896_v62, %v7912_v35 }
 0x596   :  { %v7928_v44 = vpack.c.bf16 %v7920_v52, %v7920_v52 }
 0x597   :  { %v7921_v39 = vsel %vm7905_vm0, %v7897_v45, %v7913_v0 }
 0x598   :  { %v7929_v34 = vpack.c.bf16 %v7921_v39, %v7921_v39 }
 0x59a   :  { %8601 = vmatprep.mubr.bf16.mxu1 %v7929_v34 }
 0x59b   :  { %8602 = vmatmul.mubr.bf16.vlgmr.msra.gmra.mxu1 %v7928_v44 }
 0x5db   :  { %v9778_v57 = vpop.f32.mrf.mxu0 }
 0x5dd   :  { %v9779_v37 = vpop.f32.mrf.mxu0 }
 0x5de   :  { %v9780_v40 = vadd.f32 %v9779_v37, %v9778_v57 }
 0x5df   :  { %v9781_v14 = vpop.f32.mrf.mxu0 }
 0x5e0   :  { %v8564_v46 = vadd.f32 %v9780_v40, %v8524_v59 }
 0x5e1   :  { %v9782_v22 = vpop.f32.mrf.mxu0 }
 0x65b   :  { %v9800_v36 = vpop.f32.mrf.mxu1 }
 0x65d   :  { %v9801_v29 = vpop.f32.mrf.mxu1 }
 0x65e   :  { %v9802_v58 = vadd.f32 %v9801_v29, %v9800_v36 }
 0x65f   :  { %v9803_v48 = vpop.f32.mrf.mxu1 }
 0x660   :  { %v8604_v23 = vadd.f32 %v9802_v58, %v8564_v46 }
 0x661   :  { %v9804_v42 = vpop.f32.mrf.mxu1 }
 0x662   :  { %8610 = vst.msk [vmem:[#allocation13] sm:$0x3] %vm8609_vm1, %v8604_v23 }
 0x663   :  { %10033 = shalt.err (!%p10030_p6)
}
 0x664   :  { %8620 = dma.vmem_to_hbm [thread:$0]  %s8618_s16, 32, %s10668_s7, [#allocation4]  }
 0x665   :  { %10050 = dma.done.wait [#allocation4], 32  }
 0x666   :  { %10051 = vsyncadd [#allocation4], 4294967264 }
 0x667   :  { %8624 = vsyncpa [#allocation3], 1 }
 0x668   :  { %8625 = vsyncpa [#allocation6], 1 }
 0x669   :  { %8626 = vsyncpa [#allocation9], 1 }
 0x66a   :  { %8627 = vsyncpa [#allocation12], 1 }
 0x66b   :  { %8628 = vsyncpa [#allocation4], 1 }

</bundles_post_ra>
